<compile_context>
chip_gen: v6e
topology: v6e:2x2x1
jax: 0.10.0
libtpu: 0.0.40
codegen_flags: <defaults>
</compile_context>

<pallas_src>
import functools
import math

import numpy as np
import jax
import jax.numpy as jnp
from jax.experimental import pallas as pl
from jax.experimental.pallas import tpu as pltpu

ALPHA = 5                       # unused (enhanced_penalty=False)
ENHANCED_PENALTY = False
GRAD_LAM = 0.01                 # SpatialGradientLoss lam
MS_LAM = 0.12                   # Multi_Scale lam
NUM_LEVELS = 5                  # num_levels_in_an_octave
STARTING_SIGMA = 0.51


# ----------------------------- glue (plain numpy) -----------------------------

def _gaussian_1d(sigma):
    radius = max(1, int(math.ceil(3.0 * sigma)))
    xs = np.arange(-radius, radius + 1, dtype=np.float64)
    g = np.exp(-(xs ** 2) / (2.0 * sigma ** 2))
    g /= g.sum()
    return g, radius


def _blur_matrix(n, sigma):
    # 'same' zero-padded 1D Gaussian convolution as an (n, n) matrix.
    # Symmetric by construction (K[i, j] = g(|i - j|)).
    g, r = _gaussian_1d(sigma)
    K = np.zeros((n, n), dtype=np.float64)
    for i in range(n):
        for k in range(-r, r + 1):
            j = i + k
            if 0 <= j < n:
                K[i, j] += g[k + r]
    return K


def _build_blur_mats(H, W):
    sigmas = [STARTING_SIGMA * (2.0 ** (i / NUM_LEVELS))
              for i in range(1, NUM_LEVELS + 1)]
    kh = np.stack([np.eye(H)] + [_blur_matrix(H, s) for s in sigmas])
    kw = np.stack([np.eye(W)] + [_blur_matrix(W, s) for s in sigmas])
    return jnp.asarray(kh, jnp.float32), jnp.asarray(kw, jnp.float32)


# --------------------------------- kernel --------------------------------------

def _ms_grad_l1_kernel(x_ref, y_ref, kh_ref, kw_ref, o_ref, *, n_planes):
    # x_ref / y_ref : (Bt, H, W) blocks of planes
    # kh_ref        : (S, H, H) blur matrices, whole-array VMEM resident
    # kw_ref        : (S, W, W) blur matrices, whole-array VMEM resident
    # o_ref         : (1, 8, 128) per-block partial loss (lane-dense tile)
    x = x_ref[...].astype(jnp.float32)       # cast on the VMEM tile (free on VPU)
    y = y_ref[...].astype(jnp.float32)
    d = x - y                                # blur is linear -> blur the difference once
    Bt, H, W = d.shape

    # global-mean denominators (L1 reduction='mean' over the full un-padded tensor)
    n_base = float(n_planes * H * W)
    n_dw = float(n_planes * H * (W - 1))
    n_dh = float(n_planes * (H - 1) * W)

    # matmul operands in bf16 (MXU-native on v6e/v7x), f32 accumulation;
    # all elementwise work below stays f32 (no bf16 VPU path on v5e).
    d2 = d.reshape(Bt * H, W).astype(jnp.bfloat16)

    S = kh_ref.shape[0]
    acc = jnp.float32(0.0)
    for s in range(S):                       # static unroll over scales
        kw_s = kw_ref[s].astype(jnp.bfloat16)    # (W, W), symmetric -> no transpose
        kh_s = kh_ref[s].astype(jnp.bfloat16)    # (H, H), symmetric

        # right blur for all Bt planes as ONE (Bt*H, W) @ (W, W) matmul
        t = jnp.dot(d2, kw_s, preferred_element_type=jnp.float32)
        t3 = t.reshape(Bt, H, W).astype(jnp.bfloat16)

        # left blur as a batched matmul (kh broadcast across the plane batch)
        khb = jnp.broadcast_to(kh_s, (Bt, H, H))
        ds = jnp.einsum('bij,bjk->bik', khb, t3,
                        preferred_element_type=jnp.float32)     # (Bt, H, W) f32

        base = jnp.sum(jnp.abs(ds)) / n_base
        # TODO(synk): for large H/W use pltpu.roll + boundary mask instead of
        # off-by-one slices; at 16x16 the slice relayout cost is negligible.
        gw = jnp.sum(jnp.abs(ds[:, :, 1:] - ds[:, :, :-1])) / n_dw
        gh = jnp.sum(jnp.abs(ds[:, 1:, :] - ds[:, :-1, :])) / n_dh

        weight = 1.0 if s == 0 else MS_LAM       # level 0 = original resolution
        acc = acc + jnp.float32(weight) * (base + GRAD_LAM * (gw + gh))

    # per-block partial loss; distinct output block per grid step -> grid can be
    # "parallel" (no serialized scalar accumulator).
    o_ref[...] = jnp.full(o_ref.shape, acc, dtype=jnp.float32)


# -------------------------------- wrapper ---------------------------------------

def grad_loss_l1_ms(x, y, *, block_planes=None):
    N, C, H, W = x.shape
    B = N * C

    # planes per grid step: push the matmul M-dim toward >=256 (v6e/v7x; >=128 is
    # already fine on v5e), capped so double-buffered input blocks stay small.
    if block_planes is None:
        block_planes = max(1, min(B, max(1, 256 // max(H, 1))))
        max_block_bytes = 8 * 1024 * 1024
        block_planes = max(1, min(block_planes, max_block_bytes // (H * W * 4)))
    G = -(-B // block_planes)
    Bp = G * block_planes

    # keep original dtype in HBM; cast to f32 inside the kernel.
    xf = x.reshape(B, H, W)
    yf = y.reshape(B, H, W)
    if Bp != B:
        # zero-pad planes: d = 0 there, so they contribute nothing to the sums.
        xf = jnp.pad(xf, ((0, Bp - B), (0, 0), (0, 0)))
        yf = jnp.pad(yf, ((0, Bp - B), (0, 0), (0, 0)))

    kh, kw = _build_blur_mats(H, W)
    S = NUM_LEVELS + 1

    elt = jnp.dtype(x.dtype).itemsize
    vmem_est = (2 * 2 * block_planes * H * W * elt            # double-buffered x/y blocks
                + S * (H * H + W * W) * 4                     # blur matrices (one copy)
                + 2 * 8 * 128 * 4                             # output tiles
                + 16 * block_planes * H * W * 4               # in-kernel temporaries
                + (2 << 20))
    # explicit limit, kept well inside v7x's 64 MiB physical VMEM.
    vmem_limit = int(min(max(vmem_est, 16 * 1024 * 1024), 48 * 1024 * 1024))

    kernel = functools.partial(_ms_grad_l1_kernel, n_planes=B)

    out = pl.pallas_call(
        kernel,
        out_shape=jax.ShapeDtypeStruct((G, 8, 128), jnp.float32),
        grid_spec=pltpu.PrefetchScalarGridSpec(
            num_scalar_prefetch=0,
            grid=(G,),
            in_specs=[
                pl.BlockSpec((block_planes, H, W), lambda g: (g, 0, 0)),
                pl.BlockSpec((block_planes, H, W), lambda g: (g, 0, 0)),
                # constant blur matrices: whole-array, single VMEM copy
                pl.BlockSpec(memory_space=pltpu.MemorySpace.VMEM),
                pl.BlockSpec(memory_space=pltpu.MemorySpace.VMEM),
            ],
            out_specs=pl.BlockSpec((1, 8, 128), lambda g: (g, 0, 0)),
        ),
        compiler_params=pltpu.CompilerParams(
            dimension_semantics=("parallel",),
            vmem_limit_bytes=vmem_limit),
    )(xf, yf, kh, kw)

    return jnp.sum(out[:, 0, 0])


# ---------------------------- pure-JAX reference --------------------------------

def _reference(x, y):
    N, C, H, W = x.shape
    xf = x.reshape(N * C, H, W).astype(jnp.float32)
    yf = y.reshape(N * C, H, W).astype(jnp.float32)
    kh, kw = _build_blur_mats(H, W)

    def level_loss(a, b):
        base = jnp.mean(jnp.abs(a - b))
        gw = jnp.mean(jnp.abs((a[:, :, 1:] - a[:, :, :-1])
                              - (b[:, :, 1:] - b[:, :, :-1])))
        gh = jnp.mean(jnp.abs((a[:, 1:, :] - a[:, :-1, :])
                              - (b[:, 1:, :] - b[:, :-1, :])))
        return base + GRAD_LAM * (gw + gh)

    total = jnp.float32(0.0)
    for s in range(NUM_LEVELS + 1):
        xs = jnp.einsum('ij,bjk,lk->bil', kh[s], xf, kw[s])
        ys = jnp.einsum('ij,bjk,lk->bil', kh[s], yf, kw[s])
        w = 1.0 if s == 0 else MS_LAM
        total = total + w * level_loss(xs, ys)
    return total


# ---------------------------------- main -----------------------------------------

if __name__ == "__main__":
    key = jax.random.PRNGKey(0)
    k1, k2 = jax.random.split(key)
    x = jax.random.normal(k1, (2, 4, 16, 16), dtype=jnp.float32)
    y = jax.random.normal(k2, (2, 4, 16, 16), dtype=jnp.float32)

    loss = jax.block_until_ready(grad_loss_l1_ms(x, y))
    ref = jax.block_until_ready(_reference(x, y))
    assert np.isfinite(float(loss))
    # tolerance loosened for bf16 matmul operands (f32 accumulation)
    np.testing.assert_allclose(float(loss), float(ref), rtol=2e-2, atol=2e-3)
    print("KERNEL_OK")
</pallas_src>

<mosaic_0001>
module attributes {stable_mosaic.version = 11 : i64} {
  func.func @_ms_grad_l1_kernel(%arg0: i32, %arg1: memref<8x16x16xf32, #tpu.memory_space<vmem>>, %arg2: memref<8x16x16xf32, #tpu.memory_space<vmem>>, %arg3: memref<6x16x16xf32, #tpu.memory_space<vmem>>, %arg4: memref<6x16x16xf32, #tpu.memory_space<vmem>>, %arg5: memref<1x8x128xf32, #tpu.memory_space<vmem>>) attributes {dimension_semantics = [#tpu.dimension_semantics<parallel>], iteration_bounds = array<i64: 1>, scalar_prefetch = 0 : i64, scratch_operands = 0 : i64, tpu.core_type = #tpu.core_type<tc>, window_params = [{transform_indices = @transform_0, window_bounds = array<i64: 8, 16, 16>}, {transform_indices = @transform_1, window_bounds = array<i64: 8, 16, 16>}, {pipeline_mode = #tpu.pipeline_mode<synchronous>, transform_indices = @transform_2, window_bounds = array<i64: 6, 16, 16>}, {pipeline_mode = #tpu.pipeline_mode<synchronous>, transform_indices = @transform_3, window_bounds = array<i64: 6, 16, 16>}, {transform_indices = @transform_4, window_bounds = array<i64: 1, 8, 128>}]} {
    %c0 = arith.constant 0 : index
    %c0_0 = arith.constant 0 : index
    %c0_1 = arith.constant 0 : index
    %0 = vector.load %arg1[%c0, %c0_0, %c0_1] : memref<8x16x16xf32, #tpu.memory_space<vmem>>, vector<8x16x16xf32>
    %c0_2 = arith.constant 0 : index
    %c0_3 = arith.constant 0 : index
    %c0_4 = arith.constant 0 : index
    %1 = vector.load %arg2[%c0_2, %c0_3, %c0_4] : memref<8x16x16xf32, #tpu.memory_space<vmem>>, vector<8x16x16xf32>
    %2 = arith.subf %0, %1 : vector<8x16x16xf32>
    %3 = vector.shape_cast %2 : vector<8x16x16xf32> to vector<128x16xf32>
    %4 = arith.truncf %3 : vector<128x16xf32> to vector<128x16xbf16>
    %c0_5 = arith.constant 0 : index
    %c0_6 = arith.constant 0 : index
    %c0_7 = arith.constant 0 : index
    %5 = vector.load %arg4[%c0_5, %c0_6, %c0_7] : memref<6x16x16xf32, #tpu.memory_space<vmem>>, vector<1x16x16xf32>
    %6 = vector.shape_cast %5 : vector<1x16x16xf32> to vector<16x16xf32>
    %7 = arith.truncf %6 : vector<16x16xf32> to vector<16x16xbf16>
    %c0_8 = arith.constant 0 : index
    %c0_9 = arith.constant 0 : index
    %c0_10 = arith.constant 0 : index
    %8 = vector.load %arg3[%c0_8, %c0_9, %c0_10] : memref<6x16x16xf32, #tpu.memory_space<vmem>>, vector<1x16x16xf32>
    %9 = vector.shape_cast %8 : vector<1x16x16xf32> to vector<16x16xf32>
    %10 = arith.truncf %9 : vector<16x16xf32> to vector<16x16xbf16>
    %cst = arith.constant dense<0.000000e+00> : vector<128x16xf32>
    %11 = tpu.matmul %4, %7, %cst {dimension_numbers = #tpu.dot_dimension_numbers<[1], [0], [0], [1], [0, 0, 1, 1], [], []>} : vector<128x16xbf16>, vector<16x16xbf16>, vector<128x16xf32> -> vector<128x16xf32>
    %12 = vector.shape_cast %11 : vector<128x16xf32> to vector<8x16x16xf32>
    %13 = arith.truncf %12 : vector<8x16x16xf32> to vector<8x16x16xbf16>
    %14 = vector.shape_cast %10 : vector<16x16xbf16> to vector<1x16x16xbf16>
    %15 = vector.broadcast %14 : vector<1x16x16xbf16> to vector<8x16x16xbf16>
    "tpu.trace_start"() <{level = 10 : i32, message = "bij,bjk->bik"}> : () -> ()
    %cst_11 = arith.constant dense<0.000000e+00> : vector<8x16x16xf32>
    %16 = tpu.matmul %15, %13, %cst_11 {dimension_numbers = #tpu.dot_dimension_numbers<[2], [1], [1], [2], [0, 0, 0, 1, 1, 2], [0], [0]>} : vector<8x16x16xbf16>, vector<8x16x16xbf16>, vector<8x16x16xf32> -> vector<8x16x16xf32>
    "tpu.trace_stop"() : () -> ()
    %17 = math.absf %16 : vector<8x16x16xf32>
    %18 = vector.shape_cast %17 : vector<8x16x16xf32> to vector<1x8x16x16xf32>
    %cst_12 = arith.constant dense<0.000000e+00> : vector<1xf32>
    %19 = vector.multi_reduction <add>, %18, %cst_12 [1, 2, 3] : vector<1x8x16x16xf32> to vector<1xf32>
    %20 = vector.shape_cast %19 : vector<1xf32> to vector<1x1x1x1xf32>
    %21 = vector.extract %20[0, 0, 0, 0] : f32 from vector<1x1x1x1xf32>
    %cst_13 = arith.constant 2.048000e+03 : f32
    %22 = arith.divf %21, %cst_13 : f32
    %23 = vector.extract_strided_slice %16 {offsets = [0, 0, 1], sizes = [8, 16, 15], strides = [1, 1, 1]} : vector<8x16x16xf32> to vector<8x16x15xf32>
    %24 = vector.extract_strided_slice %16 {offsets = [0, 0, 0], sizes = [8, 16, 15], strides = [1, 1, 1]} : vector<8x16x16xf32> to vector<8x16x15xf32>
    %25 = arith.subf %23, %24 : vector<8x16x15xf32>
    %26 = math.absf %25 : vector<8x16x15xf32>
    %27 = vector.shape_cast %26 : vector<8x16x15xf32> to vector<1x8x16x15xf32>
    %cst_14 = arith.constant dense<0.000000e+00> : vector<1xf32>
    %28 = vector.multi_reduction <add>, %27, %cst_14 [1, 2, 3] : vector<1x8x16x15xf32> to vector<1xf32>
    %29 = vector.shape_cast %28 : vector<1xf32> to vector<1x1x1x1xf32>
    %30 = vector.extract %29[0, 0, 0, 0] : f32 from vector<1x1x1x1xf32>
    %cst_15 = arith.constant 1.920000e+03 : f32
    %31 = arith.divf %30, %cst_15 : f32
    %32 = vector.extract_strided_slice %16 {offsets = [0, 1, 0], sizes = [8, 15, 16], strides = [1, 1, 1]} : vector<8x16x16xf32> to vector<8x15x16xf32>
    %33 = vector.extract_strided_slice %16 {offsets = [0, 0, 0], sizes = [8, 15, 16], strides = [1, 1, 1]} : vector<8x16x16xf32> to vector<8x15x16xf32>
    %34 = arith.subf %32, %33 : vector<8x15x16xf32>
    %35 = math.absf %34 : vector<8x15x16xf32>
    %36 = vector.shape_cast %35 : vector<8x15x16xf32> to vector<1x8x15x16xf32>
    %cst_16 = arith.constant dense<0.000000e+00> : vector<1xf32>
    %37 = vector.multi_reduction <add>, %36, %cst_16 [1, 2, 3] : vector<1x8x15x16xf32> to vector<1xf32>
    %38 = vector.shape_cast %37 : vector<1xf32> to vector<1x1x1x1xf32>
    %39 = vector.extract %38[0, 0, 0, 0] : f32 from vector<1x1x1x1xf32>
    %cst_17 = arith.constant 1.920000e+03 : f32
    %40 = arith.divf %39, %cst_17 : f32
    %41 = arith.addf %31, %40 : f32
    %cst_18 = arith.constant 0.00999999977 : f32
    %42 = arith.mulf %cst_18, %41 : f32
    %43 = arith.addf %22, %42 : f32
    %cst_19 = arith.constant 1.000000e+00 : f32
    %44 = arith.mulf %cst_19, %43 : f32
    %cst_20 = arith.constant 0.000000e+00 : f32
    %45 = arith.addf %cst_20, %44 : f32
    %c1 = arith.constant 1 : index
    %c0_21 = arith.constant 0 : index
    %c0_22 = arith.constant 0 : index
    %46 = vector.load %arg4[%c1, %c0_21, %c0_22] : memref<6x16x16xf32, #tpu.memory_space<vmem>>, vector<1x16x16xf32>
    %47 = vector.shape_cast %46 : vector<1x16x16xf32> to vector<16x16xf32>
    %48 = arith.truncf %47 : vector<16x16xf32> to vector<16x16xbf16>
    %c1_23 = arith.constant 1 : index
    %c0_24 = arith.constant 0 : index
    %c0_25 = arith.constant 0 : index
    %49 = vector.load %arg3[%c1_23, %c0_24, %c0_25] : memref<6x16x16xf32, #tpu.memory_space<vmem>>, vector<1x16x16xf32>
    %50 = vector.shape_cast %49 : vector<1x16x16xf32> to vector<16x16xf32>
    %51 = arith.truncf %50 : vector<16x16xf32> to vector<16x16xbf16>
    %cst_26 = arith.constant dense<0.000000e+00> : vector<128x16xf32>
    %52 = tpu.matmul %4, %48, %cst_26 {dimension_numbers = #tpu.dot_dimension_numbers<[1], [0], [0], [1], [0, 0, 1, 1], [], []>} : vector<128x16xbf16>, vector<16x16xbf16>, vector<128x16xf32> -> vector<128x16xf32>
    %53 = vector.shape_cast %52 : vector<128x16xf32> to vector<8x16x16xf32>
    %54 = arith.truncf %53 : vector<8x16x16xf32> to vector<8x16x16xbf16>
    %55 = vector.shape_cast %51 : vector<16x16xbf16> to vector<1x16x16xbf16>
    %56 = vector.broadcast %55 : vector<1x16x16xbf16> to vector<8x16x16xbf16>
    "tpu.trace_start"() <{level = 10 : i32, message = "bij,bjk->bik"}> : () -> ()
    %cst_27 = arith.constant dense<0.000000e+00> : vector<8x16x16xf32>
    %57 = tpu.matmul %56, %54, %cst_27 {dimension_numbers = #tpu.dot_dimension_numbers<[2], [1], [1], [2], [0, 0, 0, 1, 1, 2], [0], [0]>} : vector<8x16x16xbf16>, vector<8x16x16xbf16>, vector<8x16x16xf32> -> vector<8x16x16xf32>
    "tpu.trace_stop"() : () -> ()
    %58 = math.absf %57 : vector<8x16x16xf32>
    %59 = vector.shape_cast %58 : vector<8x16x16xf32> to vector<1x8x16x16xf32>
    %cst_28 = arith.constant dense<0.000000e+00> : vector<1xf32>
    %60 = vector.multi_reduction <add>, %59, %cst_28 [1, 2, 3] : vector<1x8x16x16xf32> to vector<1xf32>
    %61 = vector.shape_cast %60 : vector<1xf32> to vector<1x1x1x1xf32>
    %62 = vector.extract %61[0, 0, 0, 0] : f32 from vector<1x1x1x1xf32>
    %cst_29 = arith.constant 2.048000e+03 : f32
    %63 = arith.divf %62, %cst_29 : f32
    %64 = vector.extract_strided_slice %57 {offsets = [0, 0, 1], sizes = [8, 16, 15], strides = [1, 1, 1]} : vector<8x16x16xf32> to vector<8x16x15xf32>
    %65 = vector.extract_strided_slice %57 {offsets = [0, 0, 0], sizes = [8, 16, 15], strides = [1, 1, 1]} : vector<8x16x16xf32> to vector<8x16x15xf32>
    %66 = arith.subf %64, %65 : vector<8x16x15xf32>
    %67 = math.absf %66 : vector<8x16x15xf32>
    %68 = vector.shape_cast %67 : vector<8x16x15xf32> to vector<1x8x16x15xf32>
    %cst_30 = arith.constant dense<0.000000e+00> : vector<1xf32>
    %69 = vector.multi_reduction <add>, %68, %cst_30 [1, 2, 3] : vector<1x8x16x15xf32> to vector<1xf32>
    %70 = vector.shape_cast %69 : vector<1xf32> to vector<1x1x1x1xf32>
    %71 = vector.extract %70[0, 0, 0, 0] : f32 from vector<1x1x1x1xf32>
    %cst_31 = arith.constant 1.920000e+03 : f32
    %72 = arith.divf %71, %cst_31 : f32
    %73 = vector.extract_strided_slice %57 {offsets = [0, 1, 0], sizes = [8, 15, 16], strides = [1, 1, 1]} : vector<8x16x16xf32> to vector<8x15x16xf32>
    %74 = vector.extract_strided_slice %57 {offsets = [0, 0, 0], sizes = [8, 15, 16], strides = [1, 1, 1]} : vector<8x16x16xf32> to vector<8x15x16xf32>
    %75 = arith.subf %73, %74 : vector<8x15x16xf32>
    %76 = math.absf %75 : vector<8x15x16xf32>
    %77 = vector.shape_cast %76 : vector<8x15x16xf32> to vector<1x8x15x16xf32>
    %cst_32 = arith.constant dense<0.000000e+00> : vector<1xf32>
    %78 = vector.multi_reduction <add>, %77, %cst_32 [1, 2, 3] : vector<1x8x15x16xf32> to vector<1xf32>
    %79 = vector.shape_cast %78 : vector<1xf32> to vector<1x1x1x1xf32>
    %80 = vector.extract %79[0, 0, 0, 0] : f32 from vector<1x1x1x1xf32>
    %cst_33 = arith.constant 1.920000e+03 : f32
    %81 = arith.divf %80, %cst_33 : f32
    %82 = arith.addf %72, %81 : f32
    %cst_34 = arith.constant 0.00999999977 : f32
    %83 = arith.mulf %cst_34, %82 : f32
    %84 = arith.addf %63, %83 : f32
    %cst_35 = arith.constant 1.200000e-01 : f32
    %85 = arith.mulf %cst_35, %84 : f32
    %86 = arith.addf %45, %85 : f32
    %c2 = arith.constant 2 : index
    %c0_36 = arith.constant 0 : index
    %c0_37 = arith.constant 0 : index
    %87 = vector.load %arg4[%c2, %c0_36, %c0_37] : memref<6x16x16xf32, #tpu.memory_space<vmem>>, vector<1x16x16xf32>
    %88 = vector.shape_cast %87 : vector<1x16x16xf32> to vector<16x16xf32>
    %89 = arith.truncf %88 : vector<16x16xf32> to vector<16x16xbf16>
    %c2_38 = arith.constant 2 : index
    %c0_39 = arith.constant 0 : index
    %c0_40 = arith.constant 0 : index
    %90 = vector.load %arg3[%c2_38, %c0_39, %c0_40] : memref<6x16x16xf32, #tpu.memory_space<vmem>>, vector<1x16x16xf32>
    %91 = vector.shape_cast %90 : vector<1x16x16xf32> to vector<16x16xf32>
    %92 = arith.truncf %91 : vector<16x16xf32> to vector<16x16xbf16>
    %cst_41 = arith.constant dense<0.000000e+00> : vector<128x16xf32>
    %93 = tpu.matmul %4, %89, %cst_41 {dimension_numbers = #tpu.dot_dimension_numbers<[1], [0], [0], [1], [0, 0, 1, 1], [], []>} : vector<128x16xbf16>, vector<16x16xbf16>, vector<128x16xf32> -> vector<128x16xf32>
    %94 = vector.shape_cast %93 : vector<128x16xf32> to vector<8x16x16xf32>
    %95 = arith.truncf %94 : vector<8x16x16xf32> to vector<8x16x16xbf16>
    %96 = vector.shape_cast %92 : vector<16x16xbf16> to vector<1x16x16xbf16>
    %97 = vector.broadcast %96 : vector<1x16x16xbf16> to vector<8x16x16xbf16>
    "tpu.trace_start"() <{level = 10 : i32, message = "bij,bjk->bik"}> : () -> ()
    %cst_42 = arith.constant dense<0.000000e+00> : vector<8x16x16xf32>
    %98 = tpu.matmul %97, %95, %cst_42 {dimension_numbers = #tpu.dot_dimension_numbers<[2], [1], [1], [2], [0, 0, 0, 1, 1, 2], [0], [0]>} : vector<8x16x16xbf16>, vector<8x16x16xbf16>, vector<8x16x16xf32> -> vector<8x16x16xf32>
    "tpu.trace_stop"() : () -> ()
    %99 = math.absf %98 : vector<8x16x16xf32>
    %100 = vector.shape_cast %99 : vector<8x16x16xf32> to vector<1x8x16x16xf32>
    %cst_43 = arith.constant dense<0.000000e+00> : vector<1xf32>
    %101 = vector.multi_reduction <add>, %100, %cst_43 [1, 2, 3] : vector<1x8x16x16xf32> to vector<1xf32>
    %102 = vector.shape_cast %101 : vector<1xf32> to vector<1x1x1x1xf32>
    %103 = vector.extract %102[0, 0, 0, 0] : f32 from vector<1x1x1x1xf32>
    %cst_44 = arith.constant 2.048000e+03 : f32
    %104 = arith.divf %103, %cst_44 : f32
    %105 = vector.extract_strided_slice %98 {offsets = [0, 0, 1], sizes = [8, 16, 15], strides = [1, 1, 1]} : vector<8x16x16xf32> to vector<8x16x15xf32>
    %106 = vector.extract_strided_slice %98 {offsets = [0, 0, 0], sizes = [8, 16, 15], strides = [1, 1, 1]} : vector<8x16x16xf32> to vector<8x16x15xf32>
    %107 = arith.subf %105, %106 : vector<8x16x15xf32>
    %108 = math.absf %107 : vector<8x16x15xf32>
    %109 = vector.shape_cast %108 : vector<8x16x15xf32> to vector<1x8x16x15xf32>
    %cst_45 = arith.constant dense<0.000000e+00> : vector<1xf32>
    %110 = vector.multi_reduction <add>, %109, %cst_45 [1, 2, 3] : vector<1x8x16x15xf32> to vector<1xf32>
    %111 = vector.shape_cast %110 : vector<1xf32> to vector<1x1x1x1xf32>
    %112 = vector.extract %111[0, 0, 0, 0] : f32 from vector<1x1x1x1xf32>
    %cst_46 = arith.constant 1.920000e+03 : f32
    %113 = arith.divf %112, %cst_46 : f32
    %114 = vector.extract_strided_slice %98 {offsets = [0, 1, 0], sizes = [8, 15, 16], strides = [1, 1, 1]} : vector<8x16x16xf32> to vector<8x15x16xf32>
    %115 = vector.extract_strided_slice %98 {offsets = [0, 0, 0], sizes = [8, 15, 16], strides = [1, 1, 1]} : vector<8x16x16xf32> to vector<8x15x16xf32>
    %116 = arith.subf %114, %115 : vector<8x15x16xf32>
    %117 = math.absf %116 : vector<8x15x16xf32>
    %118 = vector.shape_cast %117 : vector<8x15x16xf32> to vector<1x8x15x16xf32>
    %cst_47 = arith.constant dense<0.000000e+00> : vector<1xf32>
    %119 = vector.multi_reduction <add>, %118, %cst_47 [1, 2, 3] : vector<1x8x15x16xf32> to vector<1xf32>
    %120 = vector.shape_cast %119 : vector<1xf32> to vector<1x1x1x1xf32>
    %121 = vector.extract %120[0, 0, 0, 0] : f32 from vector<1x1x1x1xf32>
    %cst_48 = arith.constant 1.920000e+03 : f32
    %122 = arith.divf %121, %cst_48 : f32
    %123 = arith.addf %113, %122 : f32
    %cst_49 = arith.constant 0.00999999977 : f32
    %124 = arith.mulf %cst_49, %123 : f32
    %125 = arith.addf %104, %124 : f32
    %cst_50 = arith.constant 1.200000e-01 : f32
    %126 = arith.mulf %cst_50, %125 : f32
    %127 = arith.addf %86, %126 : f32
    %c3 = arith.constant 3 : index
    %c0_51 = arith.constant 0 : index
    %c0_52 = arith.constant 0 : index
    %128 = vector.load %arg4[%c3, %c0_51, %c0_52] : memref<6x16x16xf32, #tpu.memory_space<vmem>>, vector<1x16x16xf32>
    %129 = vector.shape_cast %128 : vector<1x16x16xf32> to vector<16x16xf32>
    %130 = arith.truncf %129 : vector<16x16xf32> to vector<16x16xbf16>
    %c3_53 = arith.constant 3 : index
    %c0_54 = arith.constant 0 : index
    %c0_55 = arith.constant 0 : index
    %131 = vector.load %arg3[%c3_53, %c0_54, %c0_55] : memref<6x16x16xf32, #tpu.memory_space<vmem>>, vector<1x16x16xf32>
    %132 = vector.shape_cast %131 : vector<1x16x16xf32> to vector<16x16xf32>
    %133 = arith.truncf %132 : vector<16x16xf32> to vector<16x16xbf16>
    %cst_56 = arith.constant dense<0.000000e+00> : vector<128x16xf32>
    %134 = tpu.matmul %4, %130, %cst_56 {dimension_numbers = #tpu.dot_dimension_numbers<[1], [0], [0], [1], [0, 0, 1, 1], [], []>} : vector<128x16xbf16>, vector<16x16xbf16>, vector<128x16xf32> -> vector<128x16xf32>
    %135 = vector.shape_cast %134 : vector<128x16xf32> to vector<8x16x16xf32>
    %136 = arith.truncf %135 : vector<8x16x16xf32> to vector<8x16x16xbf16>
    %137 = vector.shape_cast %133 : vector<16x16xbf16> to vector<1x16x16xbf16>
    %138 = vector.broadcast %137 : vector<1x16x16xbf16> to vector<8x16x16xbf16>
    "tpu.trace_start"() <{level = 10 : i32, message = "bij,bjk->bik"}> : () -> ()
    %cst_57 = arith.constant dense<0.000000e+00> : vector<8x16x16xf32>
    %139 = tpu.matmul %138, %136, %cst_57 {dimension_numbers = #tpu.dot_dimension_numbers<[2], [1], [1], [2], [0, 0, 0, 1, 1, 2], [0], [0]>} : vector<8x16x16xbf16>, vector<8x16x16xbf16>, vector<8x16x16xf32> -> vector<8x16x16xf32>
    "tpu.trace_stop"() : () -> ()
    %140 = math.absf %139 : vector<8x16x16xf32>
    %141 = vector.shape_cast %140 : vector<8x16x16xf32> to vector<1x8x16x16xf32>
    %cst_58 = arith.constant dense<0.000000e+00> : vector<1xf32>
    %142 = vector.multi_reduction <add>, %141, %cst_58 [1, 2, 3] : vector<1x8x16x16xf32> to vector<1xf32>
    %143 = vector.shape_cast %142 : vector<1xf32> to vector<1x1x1x1xf32>
    %144 = vector.extract %143[0, 0, 0, 0] : f32 from vector<1x1x1x1xf32>
    %cst_59 = arith.constant 2.048000e+03 : f32
    %145 = arith.divf %144, %cst_59 : f32
    %146 = vector.extract_strided_slice %139 {offsets = [0, 0, 1], sizes = [8, 16, 15], strides = [1, 1, 1]} : vector<8x16x16xf32> to vector<8x16x15xf32>
    %147 = vector.extract_strided_slice %139 {offsets = [0, 0, 0], sizes = [8, 16, 15], strides = [1, 1, 1]} : vector<8x16x16xf32> to vector<8x16x15xf32>
    %148 = arith.subf %146, %147 : vector<8x16x15xf32>
    %149 = math.absf %148 : vector<8x16x15xf32>
    %150 = vector.shape_cast %149 : vector<8x16x15xf32> to vector<1x8x16x15xf32>
    %cst_60 = arith.constant dense<0.000000e+00> : vector<1xf32>
    %151 = vector.multi_reduction <add>, %150, %cst_60 [1, 2, 3] : vector<1x8x16x15xf32> to vector<1xf32>
    %152 = vector.shape_cast %151 : vector<1xf32> to vector<1x1x1x1xf32>
    %153 = vector.extract %152[0, 0, 0, 0] : f32 from vector<1x1x1x1xf32>
    %cst_61 = arith.constant 1.920000e+03 : f32
    %154 = arith.divf %153, %cst_61 : f32
    %155 = vector.extract_strided_slice %139 {offsets = [0, 1, 0], sizes = [8, 15, 16], strides = [1, 1, 1]} : vector<8x16x16xf32> to vector<8x15x16xf32>
    %156 = vector.extract_strided_slice %139 {offsets = [0, 0, 0], sizes = [8, 15, 16], strides = [1, 1, 1]} : vector<8x16x16xf32> to vector<8x15x16xf32>
    %157 = arith.subf %155, %156 : vector<8x15x16xf32>
    %158 = math.absf %157 : vector<8x15x16xf32>
    %159 = vector.shape_cast %158 : vector<8x15x16xf32> to vector<1x8x15x16xf32>
    %cst_62 = arith.constant dense<0.000000e+00> : vector<1xf32>
    %160 = vector.multi_reduction <add>, %159, %cst_62 [1, 2, 3] : vector<1x8x15x16xf32> to vector<1xf32>
    %161 = vector.shape_cast %160 : vector<1xf32> to vector<1x1x1x1xf32>
    %162 = vector.extract %161[0, 0, 0, 0] : f32 from vector<1x1x1x1xf32>
    %cst_63 = arith.constant 1.920000e+03 : f32
    %163 = arith.divf %162, %cst_63 : f32
    %164 = arith.addf %154, %163 : f32
    %cst_64 = arith.constant 0.00999999977 : f32
    %165 = arith.mulf %cst_64, %164 : f32
    %166 = arith.addf %145, %165 : f32
    %cst_65 = arith.constant 1.200000e-01 : f32
    %167 = arith.mulf %cst_65, %166 : f32
    %168 = arith.addf %127, %167 : f32
    %c4 = arith.constant 4 : index
    %c0_66 = arith.constant 0 : index
    %c0_67 = arith.constant 0 : index
    %169 = vector.load %arg4[%c4, %c0_66, %c0_67] : memref<6x16x16xf32, #tpu.memory_space<vmem>>, vector<1x16x16xf32>
    %170 = vector.shape_cast %169 : vector<1x16x16xf32> to vector<16x16xf32>
    %171 = arith.truncf %170 : vector<16x16xf32> to vector<16x16xbf16>
    %c4_68 = arith.constant 4 : index
    %c0_69 = arith.constant 0 : index
    %c0_70 = arith.constant 0 : index
    %172 = vector.load %arg3[%c4_68, %c0_69, %c0_70] : memref<6x16x16xf32, #tpu.memory_space<vmem>>, vector<1x16x16xf32>
    %173 = vector.shape_cast %172 : vector<1x16x16xf32> to vector<16x16xf32>
    %174 = arith.truncf %173 : vector<16x16xf32> to vector<16x16xbf16>
    %cst_71 = arith.constant dense<0.000000e+00> : vector<128x16xf32>
    %175 = tpu.matmul %4, %171, %cst_71 {dimension_numbers = #tpu.dot_dimension_numbers<[1], [0], [0], [1], [0, 0, 1, 1], [], []>} : vector<128x16xbf16>, vector<16x16xbf16>, vector<128x16xf32> -> vector<128x16xf32>
    %176 = vector.shape_cast %175 : vector<128x16xf32> to vector<8x16x16xf32>
    %177 = arith.truncf %176 : vector<8x16x16xf32> to vector<8x16x16xbf16>
    %178 = vector.shape_cast %174 : vector<16x16xbf16> to vector<1x16x16xbf16>
    %179 = vector.broadcast %178 : vector<1x16x16xbf16> to vector<8x16x16xbf16>
    "tpu.trace_start"() <{level = 10 : i32, message = "bij,bjk->bik"}> : () -> ()
    %cst_72 = arith.constant dense<0.000000e+00> : vector<8x16x16xf32>
    %180 = tpu.matmul %179, %177, %cst_72 {dimension_numbers = #tpu.dot_dimension_numbers<[2], [1], [1], [2], [0, 0, 0, 1, 1, 2], [0], [0]>} : vector<8x16x16xbf16>, vector<8x16x16xbf16>, vector<8x16x16xf32> -> vector<8x16x16xf32>
    "tpu.trace_stop"() : () -> ()
    %181 = math.absf %180 : vector<8x16x16xf32>
    %182 = vector.shape_cast %181 : vector<8x16x16xf32> to vector<1x8x16x16xf32>
    %cst_73 = arith.constant dense<0.000000e+00> : vector<1xf32>
    %183 = vector.multi_reduction <add>, %182, %cst_73 [1, 2, 3] : vector<1x8x16x16xf32> to vector<1xf32>
    %184 = vector.shape_cast %183 : vector<1xf32> to vector<1x1x1x1xf32>
    %185 = vector.extract %184[0, 0, 0, 0] : f32 from vector<1x1x1x1xf32>
    %cst_74 = arith.constant 2.048000e+03 : f32
    %186 = arith.divf %185, %cst_74 : f32
    %187 = vector.extract_strided_slice %180 {offsets = [0, 0, 1], sizes = [8, 16, 15], strides = [1, 1, 1]} : vector<8x16x16xf32> to vector<8x16x15xf32>
    %188 = vector.extract_strided_slice %180 {offsets = [0, 0, 0], sizes = [8, 16, 15], strides = [1, 1, 1]} : vector<8x16x16xf32> to vector<8x16x15xf32>
    %189 = arith.subf %187, %188 : vector<8x16x15xf32>
    %190 = math.absf %189 : vector<8x16x15xf32>
    %191 = vector.shape_cast %190 : vector<8x16x15xf32> to vector<1x8x16x15xf32>
    %cst_75 = arith.constant dense<0.000000e+00> : vector<1xf32>
    %192 = vector.multi_reduction <add>, %191, %cst_75 [1, 2, 3] : vector<1x8x16x15xf32> to vector<1xf32>
    %193 = vector.shape_cast %192 : vector<1xf32> to vector<1x1x1x1xf32>
    %194 = vector.extract %193[0, 0, 0, 0] : f32 from vector<1x1x1x1xf32>
    %cst_76 = arith.constant 1.920000e+03 : f32
    %195 = arith.divf %194, %cst_76 : f32
    %196 = vector.extract_strided_slice %180 {offsets = [0, 1, 0], sizes = [8, 15, 16], strides = [1, 1, 1]} : vector<8x16x16xf32> to vector<8x15x16xf32>
    %197 = vector.extract_strided_slice %180 {offsets = [0, 0, 0], sizes = [8, 15, 16], strides = [1, 1, 1]} : vector<8x16x16xf32> to vector<8x15x16xf32>
    %198 = arith.subf %196, %197 : vector<8x15x16xf32>
    %199 = math.absf %198 : vector<8x15x16xf32>
    %200 = vector.shape_cast %199 : vector<8x15x16xf32> to vector<1x8x15x16xf32>
    %cst_77 = arith.constant dense<0.000000e+00> : vector<1xf32>
    %201 = vector.multi_reduction <add>, %200, %cst_77 [1, 2, 3] : vector<1x8x15x16xf32> to vector<1xf32>
    %202 = vector.shape_cast %201 : vector<1xf32> to vector<1x1x1x1xf32>
    %203 = vector.extract %202[0, 0, 0, 0] : f32 from vector<1x1x1x1xf32>
    %cst_78 = arith.constant 1.920000e+03 : f32
    %204 = arith.divf %203, %cst_78 : f32
    %205 = arith.addf %195, %204 : f32
    %cst_79 = arith.constant 0.00999999977 : f32
    %206 = arith.mulf %cst_79, %205 : f32
    %207 = arith.addf %186, %206 : f32
    %cst_80 = arith.constant 1.200000e-01 : f32
    %208 = arith.mulf %cst_80, %207 : f32
    %209 = arith.addf %168, %208 : f32
    %c5 = arith.constant 5 : index
    %c0_81 = arith.constant 0 : index
    %c0_82 = arith.constant 0 : index
    %210 = vector.load %arg4[%c5, %c0_81, %c0_82] : memref<6x16x16xf32, #tpu.memory_space<vmem>>, vector<1x16x16xf32>
    %211 = vector.shape_cast %210 : vector<1x16x16xf32> to vector<16x16xf32>
    %212 = arith.truncf %211 : vector<16x16xf32> to vector<16x16xbf16>
    %c5_83 = arith.constant 5 : index
    %c0_84 = arith.constant 0 : index
    %c0_85 = arith.constant 0 : index
    %213 = vector.load %arg3[%c5_83, %c0_84, %c0_85] : memref<6x16x16xf32, #tpu.memory_space<vmem>>, vector<1x16x16xf32>
    %214 = vector.shape_cast %213 : vector<1x16x16xf32> to vector<16x16xf32>
    %215 = arith.truncf %214 : vector<16x16xf32> to vector<16x16xbf16>
    %cst_86 = arith.constant dense<0.000000e+00> : vector<128x16xf32>
    %216 = tpu.matmul %4, %212, %cst_86 {dimension_numbers = #tpu.dot_dimension_numbers<[1], [0], [0], [1], [0, 0, 1, 1], [], []>} : vector<128x16xbf16>, vector<16x16xbf16>, vector<128x16xf32> -> vector<128x16xf32>
    %217 = vector.shape_cast %216 : vector<128x16xf32> to vector<8x16x16xf32>
    %218 = arith.truncf %217 : vector<8x16x16xf32> to vector<8x16x16xbf16>
    %219 = vector.shape_cast %215 : vector<16x16xbf16> to vector<1x16x16xbf16>
    %220 = vector.broadcast %219 : vector<1x16x16xbf16> to vector<8x16x16xbf16>
    "tpu.trace_start"() <{level = 10 : i32, message = "bij,bjk->bik"}> : () -> ()
    %cst_87 = arith.constant dense<0.000000e+00> : vector<8x16x16xf32>
    %221 = tpu.matmul %220, %218, %cst_87 {dimension_numbers = #tpu.dot_dimension_numbers<[2], [1], [1], [2], [0, 0, 0, 1, 1, 2], [0], [0]>} : vector<8x16x16xbf16>, vector<8x16x16xbf16>, vector<8x16x16xf32> -> vector<8x16x16xf32>
    "tpu.trace_stop"() : () -> ()
    %222 = math.absf %221 : vector<8x16x16xf32>
    %223 = vector.shape_cast %222 : vector<8x16x16xf32> to vector<1x8x16x16xf32>
    %cst_88 = arith.constant dense<0.000000e+00> : vector<1xf32>
    %224 = vector.multi_reduction <add>, %223, %cst_88 [1, 2, 3] : vector<1x8x16x16xf32> to vector<1xf32>
    %225 = vector.shape_cast %224 : vector<1xf32> to vector<1x1x1x1xf32>
    %226 = vector.extract %225[0, 0, 0, 0] : f32 from vector<1x1x1x1xf32>
    %cst_89 = arith.constant 2.048000e+03 : f32
    %227 = arith.divf %226, %cst_89 : f32
    %228 = vector.extract_strided_slice %221 {offsets = [0, 0, 1], sizes = [8, 16, 15], strides = [1, 1, 1]} : vector<8x16x16xf32> to vector<8x16x15xf32>
    %229 = vector.extract_strided_slice %221 {offsets = [0, 0, 0], sizes = [8, 16, 15], strides = [1, 1, 1]} : vector<8x16x16xf32> to vector<8x16x15xf32>
    %230 = arith.subf %228, %229 : vector<8x16x15xf32>
    %231 = math.absf %230 : vector<8x16x15xf32>
    %232 = vector.shape_cast %231 : vector<8x16x15xf32> to vector<1x8x16x15xf32>
    %cst_90 = arith.constant dense<0.000000e+00> : vector<1xf32>
    %233 = vector.multi_reduction <add>, %232, %cst_90 [1, 2, 3] : vector<1x8x16x15xf32> to vector<1xf32>
    %234 = vector.shape_cast %233 : vector<1xf32> to vector<1x1x1x1xf32>
    %235 = vector.extract %234[0, 0, 0, 0] : f32 from vector<1x1x1x1xf32>
    %cst_91 = arith.constant 1.920000e+03 : f32
    %236 = arith.divf %235, %cst_91 : f32
    %237 = vector.extract_strided_slice %221 {offsets = [0, 1, 0], sizes = [8, 15, 16], strides = [1, 1, 1]} : vector<8x16x16xf32> to vector<8x15x16xf32>
    %238 = vector.extract_strided_slice %221 {offsets = [0, 0, 0], sizes = [8, 15, 16], strides = [1, 1, 1]} : vector<8x16x16xf32> to vector<8x15x16xf32>
    %239 = arith.subf %237, %238 : vector<8x15x16xf32>
    %240 = math.absf %239 : vector<8x15x16xf32>
    %241 = vector.shape_cast %240 : vector<8x15x16xf32> to vector<1x8x15x16xf32>
    %cst_92 = arith.constant dense<0.000000e+00> : vector<1xf32>
    %242 = vector.multi_reduction <add>, %241, %cst_92 [1, 2, 3] : vector<1x8x15x16xf32> to vector<1xf32>
    %243 = vector.shape_cast %242 : vector<1xf32> to vector<1x1x1x1xf32>
    %244 = vector.extract %243[0, 0, 0, 0] : f32 from vector<1x1x1x1xf32>
    %cst_93 = arith.constant 1.920000e+03 : f32
    %245 = arith.divf %244, %cst_93 : f32
    %246 = arith.addf %236, %245 : f32
    %cst_94 = arith.constant 0.00999999977 : f32
    %247 = arith.mulf %cst_94, %246 : f32
    %248 = arith.addf %227, %247 : f32
    %cst_95 = arith.constant 1.200000e-01 : f32
    %249 = arith.mulf %cst_95, %248 : f32
    %250 = arith.addf %209, %249 : f32
    %251 = vector.broadcast %250 : f32 to vector<1x8x128xf32>
    %c0_96 = arith.constant 0 : index
    %c0_97 = arith.constant 0 : index
    %c0_98 = arith.constant 0 : index
    %252 = vector.load %arg5[%c0_96, %c0_97, %c0_98] : memref<1x8x128xf32, #tpu.memory_space<vmem>>, vector<1x8x128xf32>
    tpu.vector_store %arg5[%c0_96, %c0_97, %c0_98], %251 {strides = array<i32>} : memref<1x8x128xf32, #tpu.memory_space<vmem>>, vector<1x8x128xf32>,
    return
  }
  func.func @transform_0(%arg0: i32) -> (i32, i32, i32) {
    %c0_i32 = arith.constant 0 : i32
    %c0_i32_0 = arith.constant 0 : i32
    %c0_i32_1 = arith.constant 0 : i32
    return %arg0, %c0_i32, %c0_i32_0 : i32, i32, i32
  }
  func.func @transform_1(%arg0: i32) -> (i32, i32, i32) {
    %c0_i32 = arith.constant 0 : i32
    %c0_i32_0 = arith.constant 0 : i32
    %c0_i32_1 = arith.constant 0 : i32
    return %arg0, %c0_i32, %c0_i32_0 : i32, i32, i32
  }
  func.func @transform_2(%arg0: i32) -> (i32, i32, i32) {
    %c0_i32 = arith.constant 0 : i32
    %c0_i32_0 = arith.constant 0 : i32
    %c0_i32_1 = arith.constant 0 : i32
    %c0_i32_2 = arith.constant 0 : i32
    return %c0_i32, %c0_i32_0, %c0_i32_1 : i32, i32, i32
  }
  func.func @transform_3(%arg0: i32) -> (i32, i32, i32) {
    %c0_i32 = arith.constant 0 : i32
    %c0_i32_0 = arith.constant 0 : i32
    %c0_i32_1 = arith.constant 0 : i32
    %c0_i32_2 = arith.constant 0 : i32
    return %c0_i32, %c0_i32_0, %c0_i32_1 : i32, i32, i32
  }
  func.func @transform_4(%arg0: i32) -> (i32, i32, i32) {
    %c0_i32 = arith.constant 0 : i32
    %c0_i32_0 = arith.constant 0 : i32
    %c0_i32_1 = arith.constant 0 : i32
    return %arg0, %c0_i32, %c0_i32_0 : i32, i32, i32
  }
}

</mosaic_0001>

<bundles_post_ra>
// kernel: tpu_custom_call.1
= control target key start
LH: loop header
LB: loop body
LE: loop exit
PB: predicated region body
PF: predicated region fallthrough
CT: control target
= control target key end

     0   :  { %9 = vsyncpa [#allocation3], 0  ;;  %s8246_s0 = inlined_call_operand.hbm [shape: f32[8,16,16], index: 0, kind: input, shape index: {}]   ;;  %s8247_s1 = inlined_call_operand.hbm [shape: f32[8,16,16], index: 1, kind: input, shape index: {}]   ;;  %s8248_s2 = inlined_call_operand.hbm [shape: f32[6,16,16], index: 2, kind: input, shape index: {}]   ;;  %s8249_s3 = inlined_call_operand.hbm [shape: f32[6,16,16], index: 3, kind: input, shape index: {}]   ;;  %s8250_s4 = inlined_call_operand.hbm [shape: f32[1,8,128], index: 4, kind: output, shape index: {}]  }
   0x1   :  { %10 = vsyncpa [#allocation6], 0 }
   0x2   :  { %11 = vsyncpa [#allocation9], 0 }
   0x3   :  { %12 = vsyncpa [#allocation4], 0  ;;  %s6264_s15 = smov [#allocation5]   ;;  %s6265_s17 = smov [#allocation2]  }
   0x4   :  { %s30_s16 = sshll.u32 %s6264_s15, 4  ;;  %s18_s18 = sshll.u32 %s6265_s17, 4  ;;  %s31_s16 = int_to_ptr.vmem [resolvable:$true] %s30_s16  ;;  %s19_s18 = int_to_ptr.vmem [resolvable:$true] %s18_s18 }
   0x5   :  { %s6164_s19 = scalar_lea.vmem %s31_s16, 2048  ;;  %p6169_p1 = scmp.lt.s32.totalorder %s31_s16, %s31_s16 }
   0x6   :  { %p6165_p0 = scmp.ne.s32.totalorder %s31_s16, %s6164_s19  ;;  %p6170_p2 = scmp.lt.s32.totalorder %s6164_s19, %s6164_s19 }
   0x8   :  { %p6171_p3 = por %p6170_p2, %p6169_p1 }
   0xa   :  { %p6172_p4 = pnand %p6171_p3, %p6165_p0 }
   0xc   :  { %6175 = shalt.err (!%p6172_p4)
}
   0xd   :  { %s6266_s20 = smov 128   ;;  %s6267_s21 = smov 8  }
   0xe   :  { %36 = dma.hbm_to_vmem [thread:$0]  %s8247_s1, 2048, %s31_s16, [#allocation6], %s6266_s20, %s6266_s20, %s6267_s21  }
   0xf   :  { %s6184_s24 = scalar_lea.vmem %s19_s18, 2048  ;;  %p6189_p6 = scmp.lt.s32.totalorder %s19_s18, %s19_s18 }
  0x10   :  { %p6185_p5 = scmp.ne.s32.totalorder %s19_s18, %s6184_s24  ;;  %p6190_p7 = scmp.lt.s32.totalorder %s6184_s24, %s6184_s24 }
  0x12   :  { %p6191_p8 = por %p6190_p7, %p6189_p6 }
  0x14   :  { %p6192_p9 = pnand %p6191_p8, %p6185_p5 }
  0x16   :  { %6195 = shalt.err (!%p6192_p9)
}
  0x17   :  { %24 = dma.hbm_to_vmem [thread:$0]  %s8246_s0, 2048, %s19_s18, [#allocation3], %s6266_s20, %s6266_s20, %s6267_s21  }
  0x18   :  { %s6268_s27 = smov [#allocation7]   ;;  %s6269_s29 = smov [#allocation8]  }
  0x19   :  { %s42_s28 = sshll.u32 %s6268_s27, 4  ;;  %s54_s30 = sshll.u32 %s6269_s29, 4  ;;  %s43_s28 = int_to_ptr.vmem [resolvable:$true] %s42_s28  ;;  %s55_s30 = int_to_ptr.vmem [resolvable:$true] %s54_s30 }
  0x1a   :  { %s6204_s1 = scalar_lea.vmem %s43_s28, 1536  ;;  %p6209_p11 = scmp.lt.s32.totalorder %s43_s28, %s43_s28 }
  0x1b   :  { %p6205_p10 = scmp.ne.s32.totalorder %s43_s28, %s6204_s1  ;;  %p6210_p12 = scmp.lt.s32.totalorder %s6204_s1, %s6204_s1 }
  0x1d   :  { %p6211_p13 = por %p6210_p12, %p6209_p11 }
  0x1f   :  { %p6212_p0 = pnand %p6211_p13, %p6205_p10 }
  0x21   :  { %6215 = shalt.err (!%p6212_p0)
}
  0x22   :  { %48 = dma.hbm_to_vmem [thread:$0]  %s8248_s2, 1536, %s43_s28, [#allocation6], %s6266_s20, %s6266_s20, %s6267_s21  }
  0x23   :  { %s6224_s0 = scalar_lea.vmem %s55_s30, 1536  ;;  %p6229_p2 = scmp.lt.s32.totalorder %s55_s30, %s55_s30 }
  0x24   :  { %p6225_p1 = scmp.ne.s32.totalorder %s55_s30, %s6224_s0  ;;  %p6230_p3 = scmp.lt.s32.totalorder %s6224_s0, %s6224_s0 }
  0x26   :  { %p6231_p4 = por %p6230_p3, %p6229_p2 }
  0x28   :  { %p6232_p5 = pnand %p6231_p4, %p6225_p1 }
  0x2a   :  { %6235 = shalt.err (!%p6232_p5)
}
  0x2b   :  { %60 = dma.hbm_to_vmem [thread:$0]  %s8249_s3, 1536, %s55_s30, [#allocation9], %s6266_s20, %s6266_s20, %s6267_s21  }
  0x2c   :  { %6256 = dma.done.wait [#allocation3], 2048  }
  0x2d   :  { %6257 = vsyncadd [#allocation3], 4294965248 }
  0x2e   :  { %6258 = dma.done.wait [#allocation6], 3584  }
  0x2f   :  { %6259 = vsyncadd [#allocation6], 4294963712 }
  0x30   :  { %6260 = dma.done.wait [#allocation9], 1536  }
  0x31   :  { %6261 = vsyncadd [#allocation9], 4294965760  ;;  %v130_v0 = vld [vmem:[#allocation8] sm:$0xff]  ;;  %v131_v1 = vld [vmem:[#allocation8 + $0x8] sm:$0xff]  ;;  %vm136_vm0 = vcmask 130048   ;;  %v8251_v59 = vmov 0.0  }
  0x32   :  { %v74_v2 = vld [vmem:[#allocation2] sm:$0xff]  ;;  %v132_v3 = vpack.c.bf16 %v131_v1, %v130_v0  ;;  %v75_v4 = vld [vmem:[#allocation2 + $0x8] sm:$0xff]  ;;  %v76_v9 = vld [vmem:[#allocation2 + $0x10] sm:$0xff]  ;;  %5731 = vmatprep.subr.bf16.mxu1 %v8251_v59  ;;  %vm6271_vm1 = vmmov 0   ;;  %s6272_s2 = smov 1   ;;  %vm860_vm2 = vcmask 1040384  }
  0x33   :  { %v90_v5 = vld [vmem:[#allocation5] sm:$0xff]  ;;  %v91_v6 = vld [vmem:[#allocation5 + $0x8] sm:$0xff]  ;;  %v77_v10 = vld [vmem:[#allocation2 + $0x18] sm:$0xff]  ;;  %5733 = vmatprep.mubr.msk.bf16.mxu1 %vm6271_vm1, %v8251_v59  ;;  %vm949_vm3 = vcmask 1046528   ;;  %vm991_vm4 = vcmask 129024   ;;  %s6273_s3 = smov 127  }
  0x34   :  { %v106_v7 = vsub.f32 %v74_v2, %v90_v5  ;;  %v107_v8 = vsub.f32 %v75_v4, %v91_v6  ;;  %v92_v11 = vld [vmem:[#allocation5 + $0x10] sm:$0xff]  ;;  %5713 = vmatprep.subr.bf16.mxu0 %v132_v3  ;;  %v93_v12 = vld [vmem:[#allocation5 + $0x18] sm:$0xff]  ;;  %v78_v14 = vld [vmem:[#allocation2 + $0x20] sm:$0xff]  ;;  %vm816_vm5 = vcmask 121856  }
  0x35   :  { %v108_v13 = vsub.f32 %v76_v9, %v92_v11  ;;  %v79_v15 = vld [vmem:[#allocation2 + $0x28] sm:$0xff]  ;;  %5714 = vmatpush3.bf16.msra.mxu0 %v132_v3  ;;  %v109_v17 = vsub.f32 %v77_v10, %v93_v12  ;;  %v94_v18 = vld [vmem:[#allocation5 + $0x20] sm:$0xff]  ;;  %v80_v20 = vld [vmem:[#allocation2 + $0x30] sm:$0xff] }
  0x36   :  { %v6324_v16 = vpack.c.bf16 %v107_v8, %v106_v7  ;;  %v95_v19 = vld [vmem:[#allocation5 + $0x28] sm:$0xff]  ;;  %v110_v21 = vsub.f32 %v78_v14, %v94_v18  ;;  %v81_v23 = vld [vmem:[#allocation2 + $0x38] sm:$0xff]  ;;  %v96_v24 = vld [vmem:[#allocation5 + $0x30] sm:$0xff]  ;;  %5755 = vmatprep.subr.bf16.mxu0 %v8251_v59 }
  0x37   :  { %v111_v22 = vsub.f32 %v79_v15, %v95_v19  ;;  %v97_v25 = vld [vmem:[#allocation5 + $0x38] sm:$0xff]  ;;  %v6328_v26 = vpack.c.bf16 %v109_v17, %v108_v13  ;;  %v82_v27 = vld [vmem:[#allocation2 + $0x40] sm:$0xff]  ;;  %v83_v28 = vld [vmem:[#allocation2 + $0x48] sm:$0xff]  ;;  %v112_v32 = vsub.f32 %v80_v20, %v96_v24 }
  0x38   :  { %5715 = vmatprep.mubr.msk.bf16.mxu0 %vm136_vm0, %v6324_v16  ;;  %v98_v29 = vld [vmem:[#allocation5 + $0x40] sm:$0xff]  ;;  %v99_v31 = vld [vmem:[#allocation5 + $0x48] sm:$0xff]  ;;  %v113_v33 = vsub.f32 %v81_v23, %v97_v25  ;;  %v84_v37 = vld [vmem:[#allocation2 + $0x50] sm:$0xff] }
  0x39   :  { %v6330_v30 = vpack.c.bf16 %v111_v22, %v110_v21  ;;  %5716 = vmatmul.mubr.msk.bf16.vlgmr.msra.gmra.mxu0 %vm136_vm0, %v6328_v26  ;;  %v114_v34 = vsub.f32 %v82_v27, %v98_v29  ;;  %v115_v35 = vsub.f32 %v83_v28, %v99_v31  ;;  %v85_v38 = vld [vmem:[#allocation2 + $0x58] sm:$0xff]  ;;  %v100_v40 = vld [vmem:[#allocation5 + $0x50] sm:$0xff]  ;;  %v86_v42 = vld [vmem:[#allocation2 + $0x60] sm:$0xff] }
  0x3a   :  { %v6336_v36 = vpack.c.bf16 %v113_v33, %v112_v32  ;;  %v101_v41 = vld [vmem:[#allocation5 + $0x58] sm:$0xff]  ;;  %v87_v43 = vld [vmem:[#allocation2 + $0x68] sm:$0xff]  ;;  %v102_v44 = vld [vmem:[#allocation5 + $0x60] sm:$0xff]  ;;  %v116_v46 = vsub.f32 %v84_v37, %v100_v40 }
  0x3b   :  { %5719 = vmatprep.mubr.msk.bf16.mxu0 %vm136_vm0, %v6330_v30  ;;  %v6338_v39 = vpack.c.bf16 %v115_v35, %v114_v34  ;;  %v103_v45 = vld [vmem:[#allocation5 + $0x68] sm:$0xff]  ;;  %v117_v47 = vsub.f32 %v85_v38, %v101_v41  ;;  %v118_v48 = vsub.f32 %v86_v42, %v102_v44  ;;  %v88_v51 = vld [vmem:[#allocation2 + $0x70] sm:$0xff]  ;;  %v89_v53 = vld [vmem:[#allocation2 + $0x78] sm:$0xff] }
  0x3c   :  { %v119_v49 = vsub.f32 %v87_v43, %v103_v45  ;;  %v104_v54 = vld [vmem:[#allocation5 + $0x70] sm:$0xff]  ;;  %v105_v55 = vld [vmem:[#allocation5 + $0x78] sm:$0xff]  ;;  %v133_v63 = vld [vmem:[#allocation7] sm:$0xff] }
  0x3d   :  { %v6344_v50 = vpack.c.bf16 %v117_v47, %v116_v46  ;;  %v120_v56 = vsub.f32 %v88_v51, %v104_v54  ;;  %v121_v57 = vsub.f32 %v89_v53, %v105_v55  ;;  %v134_v0 = vld [vmem:[#allocation7 + $0x8] sm:$0xff]  ;;  %v1039_v19 = vld [vmem:[#allocation8 + $0x10] sm:$0xff]  ;;  %v1040_v20 = vld [vmem:[#allocation8 + $0x18] sm:$0xff] }
  0x3e   :  { %v6346_v52 = vpack.c.bf16 %v119_v49, %v118_v48  ;;  %v135_v4 = vpack.c.bf16 %v134_v0, %v133_v63  ;;  %v1041_v23 = vpack.c.bf16 %v1040_v20, %v1039_v19 }
  0x3f   :  { %v6352_v58 = vpack.c.bf16 %v121_v57, %v120_v56 }
  0x41   :  { %5720 = vmatmul.mubr.msk.bf16.gmra.mxu0 %vm136_vm0, %v6336_v36 }
  0x42   :  { %5723 = vmatprep.mubr.msk.bf16.mxu0 %vm136_vm0, %v6338_v39 }
  0x49   :  { %5724 = vmatmul.mubr.msk.bf16.gmra.mxu0 %vm136_vm0, %v6344_v50 }
  0x4a   :  { %5727 = vmatprep.mubr.msk.bf16.mxu0 %vm136_vm0, %v6346_v52 }
  0x51   :  { %5728 = vmatmul.mubr.msk.bf16.gmra.mxu0 %vm136_vm0, %v6352_v58 }
  0x52   :  { %5757 = vmatprep.mubr.msk.bf16.mxu0 %vm6271_vm1, %v8251_v59 }
  0xf9   :  { %v5717_v60 = vpop.f32.mrf.mxu0 }
  0xfb   :  { %v195_v61 = vpop.f32.mrf.mxu0 }
  0xfd   :  { %v5718_v62 = vpop.f32.mrf.mxu0 }
  0xfe   :  { %v259_v6 = vpack.c.bf16 %v5718_v62, %v5717_v60 }
  0xff   :  { %v198_v1 = vpop.f32.mrf.mxu0 }
 0x100   :  { %v258_v2 = vpack.c.bf16 %v198_v1, %v195_v61 }
 0x101   :  { %v5721_v3 = vpop.f32.mrf.mxu0 }
 0x102   :  { %5732 = vmatpush3.bf16.msra.mxu1 %v258_v2 }
 0x103   :  { %v211_v5 = vpop.f32.mrf.mxu0  ;;  %5737 = vmatprep.subr.bf16.mxu1 %v8251_v59 }
 0x105   :  { %v5722_v7 = vpop.f32.mrf.mxu0  ;;  %5734 = vmatmul.mubr.msk.bf16.vlgmr.msra.gmra.mxu1 %vm136_vm0, %v135_v4 }
 0x106   :  { %5738 = vmatpush3.bf16.msra.mxu1 %v259_v6  ;;  %5739 = vmatprep.mubr.msk.bf16.mxu1 %vm6271_vm1, %v8251_v59  ;;  %v261_v18 = vpack.c.bf16 %v5722_v7, %v5721_v3 }
 0x107   :  { %v214_v8 = vpop.f32.mrf.mxu0  ;;  %5743 = vmatprep.subr.bf16.mxu1 %v8251_v59 }
 0x108   :  { %v260_v11 = vpack.c.bf16 %v214_v8, %v211_v5 }
 0x109   :  { %v5725_v9 = vpop.f32.mrf.mxu0 }
 0x10b   :  { %v227_v10 = vpop.f32.mrf.mxu0 }
 0x10d   :  { %v5726_v12 = vpop.f32.mrf.mxu0  ;;  %5740 = vmatmul.mubr.msk.bf16.vlgmr.msra.gmra.mxu1 %vm136_vm0, %v135_v4 }
 0x10e   :  { %5744 = vmatpush3.bf16.msra.mxu1 %v260_v11  ;;  %5745 = vmatprep.mubr.msk.bf16.mxu1 %vm6271_vm1, %v8251_v59  ;;  %v263_v25 = vpack.c.bf16 %v5726_v12, %v5725_v9 }
 0x10f   :  { %v230_v13 = vpop.f32.mrf.mxu0  ;;  %5749 = vmatprep.subr.bf16.mxu1 %v8251_v59 }
 0x110   :  { %v262_v14 = vpack.c.bf16 %v230_v13, %v227_v10 }
 0x111   :  { %v5729_v15 = vpop.f32.mrf.mxu0 }
 0x112   :  { %5756 = vmatpush3.bf16.msra.mxu0 %v262_v14 }
 0x113   :  { %v243_v17 = vpop.f32.mrf.mxu0  ;;  %5767 = vmatprep.subr.bf16.mxu0 %v8251_v59 }
 0x115   :  { %v5730_v21 = vpop.f32.mrf.mxu0  ;;  %5746 = vmatmul.mubr.msk.bf16.vlgmr.msra.gmra.mxu1 %vm136_vm0, %v135_v4  ;;  %5758 = vmatmul.mubr.msk.bf16.vlgmr.msra.gmra.mxu0 %vm136_vm0, %v135_v4 }
 0x116   :  { %5750 = vmatpush3.bf16.msra.mxu1 %v261_v18  ;;  %5751 = vmatprep.mubr.msk.bf16.mxu1 %vm6271_vm1, %v8251_v59  ;;  %v265_v27 = vpack.c.bf16 %v5730_v21, %v5729_v15 }
 0x117   :  { %v246_v22 = vpop.f32.mrf.mxu0  ;;  %5761 = vmatprep.subr.bf16.mxu1 %v8251_v59  ;;  %5769 = vmatprep.mubr.msk.bf16.mxu0 %vm6271_vm1, %v8251_v59 }
 0x118   :  { %v264_v24 = vpack.c.bf16 %v246_v22, %v243_v17 }
 0x11a   :  { %5768 = vmatpush3.bf16.msra.mxu0 %v264_v24 }
 0x11b   :  { %5779 = vmatprep.subr.bf16.mxu0 %v1041_v23 }
 0x11d   :  { %5752 = vmatmul.mubr.msk.bf16.vlgmr.msra.gmra.mxu1 %vm136_vm0, %v135_v4  ;;  %5770 = vmatmul.mubr.msk.bf16.vlgmr.msra.gmra.mxu0 %vm136_vm0, %v135_v4 }
 0x11e   :  { %5762 = vmatpush3.bf16.msra.mxu1 %v263_v25  ;;  %5780 = vmatpush3.bf16.msra.mxu0 %v1041_v23 }
 0x11f   :  { %5763 = vmatprep.mubr.msk.bf16.mxu1 %vm6271_vm1, %v8251_v59  ;;  %5773 = vmatprep.subr.bf16.mxu1 %v8251_v59 }
 0x120   :  { %5781 = vmatprep.mubr.msk.bf16.mxu0 %vm136_vm0, %v6324_v16  ;;  %5821 = vmatprep.subr.bf16.mxu0 %v8251_v59 }
 0x125   :  { %5764 = vmatmul.mubr.msk.bf16.vlgmr.msra.gmra.mxu1 %vm136_vm0, %v135_v4  ;;  %5782 = vmatmul.mubr.msk.bf16.vlgmr.msra.gmra.mxu0 %vm136_vm0, %v6328_v26 }
 0x126   :  { %5774 = vmatpush3.bf16.msra.mxu1 %v265_v27  ;;  %5775 = vmatprep.mubr.msk.bf16.mxu1 %vm6271_vm1, %v8251_v59 }
 0x127   :  { %5785 = vmatprep.mubr.msk.bf16.mxu0 %vm136_vm0, %v6330_v30  ;;  %5797 = vmatprep.subr.bf16.mxu1 %v8251_v59 }
 0x12d   :  { %5776 = vmatmul.mubr.msk.bf16.vlgmr.msra.gmra.mxu1 %vm136_vm0, %v135_v4  ;;  %5786 = vmatmul.mubr.msk.bf16.gmra.mxu0 %vm136_vm0, %v6336_v36 }
 0x12e   :  { %5789 = vmatprep.mubr.msk.bf16.mxu0 %vm136_vm0, %v6338_v39  ;;  %5799 = vmatprep.mubr.msk.bf16.mxu1 %vm6271_vm1, %v8251_v59 }
 0x135   :  { %5790 = vmatmul.mubr.msk.bf16.gmra.mxu0 %vm136_vm0, %v6344_v50 }
 0x136   :  { %5793 = vmatprep.mubr.msk.bf16.mxu0 %vm136_vm0, %v6346_v52 }
 0x13d   :  { %5794 = vmatmul.mubr.msk.bf16.gmra.mxu0 %vm136_vm0, %v6352_v58 }
 0x13e   :  { %5823 = vmatprep.mubr.msk.bf16.mxu0 %vm6271_vm1, %v8251_v59 }
 0x1c5   :  { %v6410_v28 = vpop.f32.mrf.mxu1 }
 0x1c6   :  { %v861_v29 = vrot.slane %v6410_v28, 7  ;;  %672 = vrot.lane.b32.xlu0 %v6410_v28, %s6272_s2  ;;  %v597_v35 = vand.u32 2147483647, %v6410_v28 }
 0x1c7   :  { %v5735_v31 = vpop.f32.mrf.mxu1 }
 0x1c8   :  { %v901_v32 = vsub.f32 %v6410_v28, %v861_v29  ;;  %v613_v45 = vsel %vm136_vm0, %v597_v35, 0.0 }
 0x1c9   :  { %v6416_v33 = vpop.f32.mrf.mxu1 }
 0x1ca   :  { %v862_v34 = vrot.slane %v6416_v33, 7  ;;  %674 = vrot.lane.b32.xlu1 %v6416_v33, %s6272_s2  ;;  %v598_v37 = vand.u32 2147483647, %v6416_v33  ;;  %v917_v40 = vand.u32 2147483647, %v901_v32 }
 0x1cb   :  { %v5736_v38 = vpop.f32.mrf.mxu1 }
 0x1cc   :  { %v863_v41 = vsel %vm860_vm2, %v861_v29, %v862_v34  ;;  %v614_v46 = vsel %vm136_vm0, %v598_v37, 0.0  ;;  %v950_v51 = vrot.slane %v917_v40, 1 }
 0x1cd   :  { %v902_v42 = vsub.f32 %v6416_v33, %v863_v41  ;;  %v6425_v43 = vpop.f32.mrf.mxu1  ;;  %v615_v56 = vadd.f32 %v614_v46, %v613_v45 }
 0x1ce   :  { %v864_v44 = vrot.slane %v6425_v43, 7  ;;  %676 = vrot.lane.b32.xlu1 %v6425_v43, %s6272_s2  ;;  %v599_v48 = vand.u32 2147483647, %v6425_v43 }
 0x1cf   :  { %v918_v47 = vand.u32 2147483647, %v902_v42  ;;  %v5741_v49 = vpop.f32.mrf.mxu1 }
 0x1d0   :  { %v903_v53 = vsub.f32 %v6425_v43, %v864_v44  ;;  %v616_v60 = vsel %vm136_vm0, %v599_v48, 0.0 }
 0x1d1   :  { %v951_v54 = vrot.slane %v918_v47, 1  ;;  %v6434_v55 = vpop.f32.mrf.mxu1  ;;  %v617_v5 = vadd.f32 %v616_v60, %v615_v56 }
 0x1d2   :  { %v865_v57 = vrot.slane %v6434_v55, 7  ;;  %678 = vrot.lane.b32.xlu1 %v6434_v55, %s6272_s2  ;;  %v919_v61 = vand.u32 2147483647, %v903_v53  ;;  %v600_v0 = vand.u32 2147483647, %v6434_v55 }
 0x1d3   :  { %v5742_v62 = vpop.f32.mrf.mxu1  ;;  %v952_v63 = vsel %vm949_vm3, %v950_v51, %v951_v54  ;;  %v992_v8 = vsel %vm991_vm4, %v951_v54, 0.0 }
 0x1d4   :  { %v866_v1 = vsel %vm860_vm2, %v864_v44, %v865_v57  ;;  %v990_v7 = vsel %vm136_vm0, %v952_v63, 0.0  ;;  %v953_v9 = vrot.slane %v919_v61, 1  ;;  %v618_v13 = vsel %vm136_vm0, %v600_v0, 0.0 }
 0x1d5   :  { %v904_v2 = vsub.f32 %v6434_v55, %v866_v1  ;;  %v6444_v3 = vpop.f32.mrf.mxu1  ;;  %v6446_v4 = vpop.f32.mrf.mxu0  ;;  %v993_v20 = vadd.f32 %v992_v8, %v990_v7  ;;  %v619_v21 = vadd.f32 %v618_v13, %v617_v5 }
 0x1d6   :  { %v867_v6 = vrot.slane %v6444_v3, 7  ;;  %680 = vrot.lane.b32.xlu1 %v6444_v3, %s6272_s2  ;;  %688 = vrot.lane.b32.xlu0 %v6446_v4, %s6272_s2  ;;  %v601_v14 = vand.u32 2147483647, %v6444_v3  ;;  %v873_v60 = vrot.slane %v6446_v4, 7 }
 0x1d7   :  { %v920_v10 = vand.u32 2147483647, %v904_v2  ;;  %v5747_v11 = vpop.f32.mrf.mxu1  ;;  %v5759_v12 = vpop.f32.mrf.mxu0 }
 0x1d8   :  { %v905_v15 = vsub.f32 %v6444_v3, %v867_v6  ;;  %v620_v31 = vsel %vm136_vm0, %v601_v14, 0.0 }
 0x1d9   :  { %v954_v17 = vrot.slane %v920_v10, 1  ;;  %v6458_v18 = vpop.f32.mrf.mxu1  ;;  %v6460_v19 = vpop.f32.mrf.mxu0  ;;  %v621_v44 = vadd.f32 %v620_v31, %v619_v21 }
 0x1da   :  { %682 = vrot.lane.b32.xlu1 %v6458_v18, %s6272_s2  ;;  %v921_v23 = vand.u32 2147483647, %v905_v15  ;;  %v868_v24 = vrot.slane %v6458_v18, 7  ;;  %v602_v32 = vand.u32 2147483647, %v6458_v18  ;;  %v874_v51 = vrot.slane %v6460_v19, 7 }
 0x1db   :  { %v955_v22 = vsel %vm949_vm3, %v953_v9, %v954_v17  ;;  %v5748_v25 = vpop.f32.mrf.mxu1  ;;  %v5760_v27 = vpop.f32.mrf.mxu0  ;;  %v996_v42 = vsel %vm991_vm4, %v954_v17, 0.0 }
 0x1dc   :  { %v994_v29 = vsel %vm136_vm0, %v955_v22, 0.0  ;;  %v869_v34 = vsel %vm860_vm2, %v867_v6, %v868_v24  ;;  %v956_v45 = vrot.slane %v921_v23, 1  ;;  %v622_v48 = vsel %vm136_vm0, %v602_v32, 0.0 }
 0x1dd   :  { %v6470_v35 = vpop.f32.mrf.mxu1  ;;  %v6472_v37 = vpop.f32.mrf.mxu0  ;;  %v906_v38 = vsub.f32 %v6458_v18, %v869_v34  ;;  %v995_v41 = vadd.f32 %v994_v29, %v993_v20  ;;  %v623_v0 = vadd.f32 %v622_v48, %v621_v44  ;;  %v875_v6 = vsel %vm860_vm2, %v873_v60, %v874_v51 }
 0x1de   :  { %v870_v40 = vrot.slane %v6470_v35, 7  ;;  %690 = vrot.lane.b32.xlu1 %v6460_v19, %s6272_s2  ;;  %696 = vrot.lane.b32.xlu0 %v6472_v37, %s6272_s2  ;;  %v603_v53 = vand.u32 2147483647, %v6470_v35  ;;  %v910_v14 = vsub.f32 %v6460_v19, %v875_v6  ;;  %v605_v22 = vand.u32 2147483647, %v6446_v4 }
 0x1df   :  { %v5753_v46 = vpop.f32.mrf.mxu1  ;;  %v5771_v47 = vpop.f32.mrf.mxu0  ;;  %v922_v49 = vand.u32 2147483647, %v906_v38  ;;  %v997_v63 = vadd.f32 %v996_v42, %v995_v41  ;;  %v909_v23 = vsub.f32 %v6446_v4, %v873_v60  ;;  %v1043_v41 = vld [vmem:[#allocation7 + $0x10] sm:$0xff]  ;;  %v1044_v42 = vld [vmem:[#allocation7 + $0x18] sm:$0xff] }
 0x1e0   :  { %v907_v54 = vsub.f32 %v6470_v35, %v870_v40  ;;  %v624_v7 = vsel %vm136_vm0, %v603_v53, 0.0  ;;  %v6519_v44 = vand.u32 2147483647, %v910_v14 }
 0x1e1   :  { %v6485_v56 = vpop.f32.mrf.mxu1  ;;  %v6487_v57 = vpop.f32.mrf.mxu0  ;;  %v957_v61 = vrot.slane %v922_v49, 1  ;;  %v625_v15 = vadd.f32 %v624_v7, %v623_v0  ;;  %v925_v60 = vand.u32 2147483647, %v909_v23  ;;  %v6528_v0 = vpack.c.bf16 %v1044_v42, %v1043_v41 }
 0x1e2   :  { %v871_v62 = vrot.slane %v6485_v56, 7  ;;  %684 = vrot.lane.b32.xlu1 %v6470_v35, %s6272_s2  ;;  %v604_v8 = vand.u32 2147483647, %v6485_v56  ;;  %v923_v10 = vand.u32 2147483647, %v907_v54  ;;  %v628_v54 = vsel %vm136_vm0, %v605_v22, 0.0 }
 0x1e3   :  { %v5754_v1 = vpop.f32.mrf.mxu1  ;;  %v5772_v2 = vpop.f32.mrf.mxu0  ;;  %v958_v5 = vsel %vm949_vm3, %v956_v45, %v957_v61  ;;  %v1000_v27 = vsel %vm991_vm4, %v957_v61, 0.0  ;;  %v963_v7 = vrot.slane %v6519_v44, 1  ;;  %v880_v14 = vrot.slane %v6487_v57, 7 }
 0x1e4   :  { %v998_v9 = vsel %vm136_vm0, %v958_v5, 0.0  ;;  %v872_v13 = vsel %vm860_vm2, %v870_v40, %v871_v62  ;;  %v626_v25 = vsel %vm136_vm0, %v604_v8, 0.0  ;;  %v959_v29 = vrot.slane %v923_v10, 1 }
 0x1e5   :  { %v6498_v11 = vpop.f32.mrf.mxu1  ;;  %v6500_v12 = vpop.f32.mrf.mxu0  ;;  %v908_v17 = vsub.f32 %v6485_v56, %v872_v13  ;;  %v999_v24 = vadd.f32 %v998_v9, %v997_v63  ;;  %v627_v45 = vadd.f32 %v626_v25, %v625_v15  ;;  %v606_v1 = vand.u32 2147483647, %v6460_v19 }
 0x1e6   :  { %686 = vrot.lane.b32.xlu1 %v6485_v56, %s6272_s2  ;;  %692 = vrot.lane.b32.xlu0 %v6498_v11, %s6272_s2  ;;  %v876_v32 = vrot.slane %v6498_v11, 7  ;;  %v607_v15 = vand.u32 2147483647, %v6498_v11  ;;  %v879_v25 = vrot.slane %v6472_v37, 7 }
 0x1e7   :  { %v5765_v20 = vpop.f32.mrf.mxu1  ;;  %v1080_v21 = vpop.f32.mrf.mxu0  ;;  %v924_v31 = vand.u32 2147483647, %v908_v17  ;;  %v1001_v49 = vadd.f32 %v1000_v27, %v999_v24  ;;  %v629_v8 = vadd.f32 %v628_v54, %v627_v45  ;;  %v962_v17 = vrot.slane %v925_v60, 1 }
 0x1e8   :  { %v911_v5 = vsub.f32 %v6498_v11, %v876_v32  ;;  %v630_v24 = vsel %vm136_vm0, %v606_v1, 0.0  ;;  %v881_v41 = vsel %vm860_vm2, %v879_v25, %v880_v14  ;;  %v632_v42 = vsel %vm136_vm0, %v607_v15, 0.0 }
 0x1e9   :  { %v6514_v34 = vpop.f32.mrf.mxu1  ;;  %v5784_v38 = vpop.f32.mrf.mxu0  ;;  %v960_v46 = vrot.slane %v924_v31, 1  ;;  %v964_v31 = vsel %vm949_vm3, %v962_v17, %v963_v7 }
 0x1ea   :  { %v877_v40 = vrot.slane %v6514_v34, 7  ;;  %698 = vrot.lane.b32.xlu1 %v6487_v57, %s6272_s2  ;;  %v927_v27 = vand.u32 2147483647, %v911_v5  ;;  %v608_v44 = vand.u32 2147483647, %v6514_v34 }
 0x1eb   :  { %v5766_v47 = vpop.f32.mrf.mxu1  ;;  %v1083_v48 = vpop.f32.mrf.mxu0  ;;  %v961_v61 = vsel %vm949_vm3, %v959_v29, %v960_v46  ;;  %v1004_v20 = vsel %vm991_vm4, %v960_v46, 0.0  ;;  %v1006_v46 = vsel %vm136_vm0, %v964_v31, 0.0 }
 0x1ec   :  { %v878_v51 = vsel %vm860_vm2, %v876_v32, %v877_v40  ;;  %v1143_v53 = vpack.c.bf16 %v1083_v48, %v1080_v21  ;;  %v1002_v2 = vsel %vm136_vm0, %v961_v61, 0.0  ;;  %v1144_v21 = vpack.c.bf16 %v5784_v38, %v6500_v12 }
 0x1ed   :  { %v6524_v62 = vpop.f32.mrf.mxu1  ;;  %v6526_v63 = vpop.f32.mrf.mxu0  ;;  %v912_v6 = vsub.f32 %v6514_v34, %v878_v51  ;;  %v1003_v13 = vadd.f32 %v1002_v2, %v1001_v49  ;;  %v631_v32 = vadd.f32 %v630_v24, %v629_v8  ;;  %v965_v47 = vrot.slane %v927_v27, 1 }
 0x1ee   :  { %700 = vrot.lane.b32.xlu0 %v6524_v62, %s6272_s2  ;;  %694 = vrot.lane.b32.xlu1 %v6514_v34, %s6272_s2  ;;  %v914_v49 = vsub.f32 %v6487_v57, %v881_v41  ;;  %v882_v51 = vrot.slane %v6524_v62, 7  ;;  %v634_v1 = vsel %vm136_vm0, %v608_v44, 0.0  ;;  %v913_v2 = vsub.f32 %v6472_v37, %v879_v25  ;;  %v1922_v44 = vld [vmem:[#allocation8 + $0x28] sm:$0xff] }
 0x1ef   :  { %5798 = vmatpush3.bf16.msra.mxu1 %v1143_v53  ;;  %v5777_v9 = vpop.f32.mrf.mxu1  ;;  %v1096_v10 = vpop.f32.mrf.mxu0  ;;  %v928_v29 = vand.u32 2147483647, %v912_v6  ;;  %v1005_v40 = vadd.f32 %v1004_v20, %v1003_v13  ;;  %v633_v60 = vadd.f32 %v632_v42, %v631_v32  ;;  %v609_v8 = vand.u32 2147483647, %v6472_v37  ;;  %v1921_v42 = vld [vmem:[#allocation8 + $0x20] sm:$0xff] }
 0x1f0   :  { %5803 = vmatprep.subr.bf16.mxu1 %v8251_v59  ;;  %v1008_v13 = vsel %vm991_vm4, %v963_v7, 0.0  ;;  %v929_v24 = vand.u32 2147483647, %v913_v2  ;;  %v915_v7 = vsub.f32 %v6524_v62, %v882_v51  ;;  %v611_v41 = vand.u32 2147483647, %v6524_v62 }
 0x1f1   :  { %v6544_v22 = vpop.f32.mrf.mxu1  ;;  %v6546_v23 = vpop.f32.mrf.mxu0  ;;  %v966_v48 = vrot.slane %v928_v29, 1  ;;  %v1007_v61 = vadd.f32 %v1006_v46, %v1005_v40  ;;  %v635_v15 = vadd.f32 %v634_v1, %v633_v60  ;;  %v610_v29 = vand.u32 2147483647, %v6487_v57 }
 0x1f2   :  { %5800 = vmatmul.mubr.msk.bf16.vlgmr.msra.gmra.mxu1 %vm136_vm0, %v6528_v0  ;;  %702 = vrot.lane.b32.xlu1 %v6544_v22, %s6272_s2  ;;  %v883_v53 = vrot.slane %v6544_v22, 7  ;;  %v636_v31 = vsel %vm136_vm0, %v609_v8, 0.0  ;;  %v640_v8 = vsel %vm136_vm0, %v611_v41, 0.0 }
 0x1f3   :  { %5804 = vmatpush3.bf16.msra.mxu1 %v1144_v21  ;;  %v1099_v12 = vpop.f32.mrf.mxu0  ;;  %5805 = vmatprep.mubr.msk.bf16.mxu1 %vm6271_vm1, %v8251_v59  ;;  %v5778_v38 = vpop.f32.mrf.mxu1  ;;  %v967_v9 = vsel %vm949_vm3, %v965_v47, %v966_v48  ;;  %v1009_v21 = vadd.f32 %v1008_v13, %v1007_v61  ;;  %v968_v47 = vrot.slane %v929_v24, 1  ;;  %v638_v60 = vsel %vm136_vm0, %v610_v29, 0.0 }
 0x1f4   :  { %5809 = vmatprep.subr.bf16.mxu1 %v8251_v59  ;;  %v1145_v5 = vpack.c.bf16 %v1099_v12, %v1096_v10  ;;  %v884_v17 = vsel %vm860_vm2, %v882_v51, %v883_v53  ;;  %v930_v10 = vand.u32 2147483647, %v914_v49  ;;  %v1010_v27 = vsel %vm136_vm0, %v967_v9, 0.0 }
 0x1f5   :  { %v6561_v45 = vpop.f32.mrf.mxu0  ;;  %v916_v12 = vsub.f32 %v6544_v22, %v884_v17  ;;  %v637_v38 = vadd.f32 %v636_v31, %v635_v15  ;;  %v1011_v46 = vadd.f32 %v1010_v27, %v1009_v21  ;;  %v1146_v49 = vpack.c.bf16 %v6546_v23, %v6526_v63 }
 0x1f6   :  { %v969_v40 = vrot.slane %v930_v10, 1  ;;  %v1012_v53 = vsel %vm991_vm4, %v966_v48, 0.0  ;;  %v1923_v23 = vpack.c.bf16 %v1922_v44, %v1921_v42 }
 0x1f7   :  { %v1112_v54 = vpop.f32.mrf.mxu0  ;;  %v932_v61 = vand.u32 2147483647, %v916_v12  ;;  %v639_v63 = vadd.f32 %v638_v60, %v637_v38  ;;  %v1013_v9 = vadd.f32 %v1012_v53, %v1011_v46 }
 0x1f8   :  { %v970_v2 = vsel %vm949_vm3, %v968_v47, %v969_v40 }
 0x1f9   :  { %v6569_v6 = vpop.f32.mrf.mxu0  ;;  %v641_v15 = vadd.f32 %v640_v8, %v639_v63  ;;  %v1014_v17 = vsel %vm136_vm0, %v970_v2, 0.0 }
 0x1fa   :  { %5806 = vmatmul.mubr.msk.bf16.vlgmr.msra.gmra.mxu1 %vm136_vm0, %v6528_v0  ;;  %v1148_v21 = vpack.c.bf16 %v6569_v6, %v6561_v45 }
 0x1fb   :  { %5810 = vmatpush3.bf16.msra.mxu1 %v1145_v5  ;;  %v1115_v14 = vpop.f32.mrf.mxu0  ;;  %5811 = vmatprep.mubr.msk.bf16.mxu1 %vm6271_vm1, %v8251_v59  ;;  %v612_v5 = vand.u32 2147483647, %v6544_v22 }
 0x1fc   :  { %v1147_v20 = vpack.c.bf16 %v1115_v14, %v1112_v54  ;;  %5815 = vmatprep.subr.bf16.mxu1 %v8251_v59  ;;  %v931_v54 = vand.u32 2147483647, %v915_v7  ;;  %v972_v14 = vrot.slane %v932_v61, 1  ;;  %v1016_v7 = vsel %vm991_vm4, %v969_v40, 0.0 }
 0x1fd   :  { %v6580_v25 = vpop.f32.mrf.mxu0  ;;  %v642_v10 = vsel %vm136_vm0, %v612_v5, 0.0 }
 0x1fe   :  { %5822 = vmatpush3.bf16.msra.mxu0 %v1147_v20  ;;  %v971_v13 = vrot.slane %v931_v54, 1  ;;  %v1015_v20 = vadd.f32 %v1014_v17, %v1013_v9  ;;  %v643_v27 = vadd.f32 %v642_v10, %v641_v15  ;;  %v1020_v12 = vsel %vm991_vm4, %v972_v14, 0.0 }
 0x1ff   :  { %v1128_v32 = vpop.f32.mrf.mxu0  ;;  %5833 = vmatprep.subr.bf16.mxu0 %v8251_v59 }
 0x200   :  { %v973_v24 = vsel %vm949_vm3, %v971_v13, %v972_v14  ;;  %v1017_v45 = vadd.f32 %v1016_v7, %v1015_v20 }
 0x201   :  { %v5796_v51 = vpop.f32.mrf.mxu0  ;;  %5824 = vmatmul.mubr.msk.bf16.vlgmr.msra.gmra.mxu0 %vm136_vm0, %v6528_v0  ;;  %v1018_v6 = vsel %vm136_vm0, %v973_v24, 0.0 }
 0x202   :  { %5812 = vmatmul.mubr.msk.bf16.vlgmr.msra.gmra.mxu1 %vm136_vm0, %v6528_v0  ;;  %5835 = vmatprep.mubr.msk.bf16.mxu0 %vm6271_vm1, %v8251_v59  ;;  %v1019_v29 = vadd.f32 %v1018_v6, %v1017_v45  ;;  %v1150_v31 = vpack.c.bf16 %v5796_v51, %v6580_v25 }
 0x203   :  { %5816 = vmatpush3.bf16.msra.mxu1 %v1146_v49  ;;  %v1131_v1 = vpop.f32.mrf.mxu0  ;;  %5817 = vmatprep.mubr.msk.bf16.mxu1 %vm6271_vm1, %v8251_v59 }
 0x204   :  { %v1149_v48 = vpack.c.bf16 %v1131_v1, %v1128_v32  ;;  %5827 = vmatprep.subr.bf16.mxu1 %v8251_v59  ;;  %v1021_v32 = vadd.f32 %v1020_v12, %v1019_v29 }
 0x206   :  { %5834 = vmatpush3.bf16.msra.mxu0 %v1149_v48 }
 0x207   :  { %5845 = vmatprep.subr.bf16.mxu0 %v1923_v23 }
 0x209   :  { %5836 = vmatmul.mubr.msk.bf16.vlgmr.msra.gmra.mxu0 %vm136_vm0, %v6528_v0 }
 0x20a   :  { %5818 = vmatmul.mubr.msk.bf16.vlgmr.msra.gmra.mxu1 %vm136_vm0, %v6528_v0  ;;  %5846 = vmatpush3.bf16.msra.mxu0 %v1923_v23 }
 0x20b   :  { %5828 = vmatpush3.bf16.msra.mxu1 %v1148_v21  ;;  %5829 = vmatprep.mubr.msk.bf16.mxu1 %vm6271_vm1, %v8251_v59 }
 0x20c   :  { %5839 = vmatprep.subr.bf16.mxu1 %v8251_v59  ;;  %5847 = vmatprep.mubr.msk.bf16.mxu0 %vm136_vm0, %v6324_v16 }
 0x20d   :  { %644 = vadd.xlane.f32.xlu0 %v643_v27  ;;  %5887 = vmatprep.subr.bf16.mxu0 %v8251_v59 }
 0x211   :  { %5848 = vmatmul.mubr.msk.bf16.vlgmr.msra.gmra.mxu0 %vm136_vm0, %v6328_v26 }
 0x212   :  { %5830 = vmatmul.mubr.msk.bf16.vlgmr.msra.gmra.mxu1 %vm136_vm0, %v6528_v0  ;;  %5851 = vmatprep.mubr.msk.bf16.mxu0 %vm136_vm0, %v6330_v30 }
 0x213   :  { %5840 = vmatpush3.bf16.msra.mxu1 %v1150_v31  ;;  %5841 = vmatprep.mubr.msk.bf16.mxu1 %vm6271_vm1, %v8251_v59 }
 0x214   :  { %5863 = vmatprep.subr.bf16.mxu1 %v8251_v59 }
 0x216   :  { %1022 = vadd.xlane.f32.xlu1 %v1021_v32 }
 0x219   :  { %5852 = vmatmul.mubr.msk.bf16.gmra.mxu0 %vm136_vm0, %v6336_v36 }
 0x21a   :  { %5842 = vmatmul.mubr.msk.bf16.vlgmr.msra.gmra.mxu1 %vm136_vm0, %v6528_v0  ;;  %5855 = vmatprep.mubr.msk.bf16.mxu0 %vm136_vm0, %v6338_v39 }
 0x21b   :  { %5865 = vmatprep.mubr.msk.bf16.mxu1 %vm6271_vm1, %v8251_v59 }
 0x221   :  { %5856 = vmatmul.mubr.msk.bf16.gmra.mxu0 %vm136_vm0, %v6344_v50 }
 0x222   :  { %5859 = vmatprep.mubr.msk.bf16.mxu0 %vm136_vm0, %v6346_v52 }
 0x229   :  { %5860 = vmatmul.mubr.msk.bf16.gmra.mxu0 %vm136_vm0, %v6352_v58 }
 0x22a   :  { %5889 = vmatprep.mubr.msk.bf16.mxu0 %vm6271_vm1, %v8251_v59 }
 0x238   :  { %v673_v25 = vpop.permute.xlu0 %672 }
 0x239   :  { %v720_v0 = vsub.f32 %v6410_v28, %v673_v25 }
 0x23b   :  { %v736_v38 = vand.u32 2147483647, %v720_v0 }
 0x23c   :  { %v675_v40 = vpop.permute.xlu1 %674 }
 0x23d   :  { %v721_v41 = vsub.f32 %v6416_v33, %v675_v40  ;;  %768 = vrot.lane.b32.xlu0 %v736_v38, %s6273_s3 }
 0x23f   :  { %v737_v42 = vand.u32 2147483647, %v721_v41 }
 0x240   :  { %v677_v44 = vpop.permute.xlu1 %676 }
 0x241   :  { %v722_v46 = vsub.f32 %v6425_v43, %v677_v44  ;;  %770 = vrot.lane.b32.xlu1 %v737_v42, %s6273_s3 }
 0x243   :  { %v738_v47 = vand.u32 2147483647, %v722_v46 }
 0x244   :  { %v679_v49 = vpop.permute.xlu1 %678 }
 0x245   :  { %v723_v51 = vsub.f32 %v6434_v55, %v679_v49  ;;  %772 = vrot.lane.b32.xlu0 %v738_v47, %s6273_s3 }
 0x247   :  { %v739_v28 = vand.u32 2147483647, %v723_v51 }
 0x248   :  { %v681_v53 = vpop.permute.xlu1 %680  ;;  %v689_v54 = vpop.permute.xlu0 %688 }
 0x249   :  { %v724_v33 = vsub.f32 %v6444_v3, %v681_v53  ;;  %774 = vrot.lane.b32.xlu1 %v739_v28, %s6273_s3  ;;  %v728_v61 = vsub.f32 %v6446_v4, %v689_v54 }
 0x24b   :  { %v740_v60 = vand.u32 2147483647, %v724_v33  ;;  %v744_v63 = vand.u32 2147483647, %v728_v61 }
 0x24c   :  { %v683_v1 = vpop.permute.xlu1 %682 }
 0x24d   :  { %v725_v43 = vsub.f32 %v6458_v18, %v683_v1  ;;  %776 = vrot.lane.b32.xlu0 %v740_v60, %s6273_s3 }
 0x24f   :  { %v741_v23 = vand.u32 2147483647, %v725_v43 }
 0x250   :  { %v691_v55 = vpop.permute.xlu1 %690  ;;  %v697_v48 = vpop.permute.xlu0 %696 }
 0x251   :  { %v729_v2 = vsub.f32 %v6460_v19, %v691_v55  ;;  %778 = vrot.lane.b32.xlu1 %v741_v23, %s6273_s3  ;;  %784 = vrot.lane.b32.xlu0 %v744_v63, %s6273_s3  ;;  %v732_v4 = vsub.f32 %v6472_v37, %v697_v48 }
 0x253   :  { %v745_v3 = vand.u32 2147483647, %v729_v2  ;;  %v748_v15 = vand.u32 2147483647, %v732_v4 }
 0x254   :  { %v685_v5 = vpop.permute.xlu1 %684 }
 0x255   :  { %v726_v8 = vsub.f32 %v6470_v35, %v685_v5  ;;  %786 = vrot.lane.b32.xlu1 %v745_v3, %s6273_s3 }
 0x257   :  { %v742_v18 = vand.u32 2147483647, %v726_v8 }
 0x258   :  { %v687_v9 = vpop.permute.xlu1 %686  ;;  %v693_v13 = vpop.permute.xlu0 %692 }
 0x259   :  { %v727_v14 = vsub.f32 %v6485_v56, %v687_v9  ;;  %780 = vrot.lane.b32.xlu0 %v742_v18, %s6273_s3  ;;  %v730_v19 = vsub.f32 %v6498_v11, %v693_v13 }
 0x25b   :  { %v743_v17 = vand.u32 2147483647, %v727_v14  ;;  %v746_v35 = vand.u32 2147483647, %v730_v19 }
 0x25c   :  { %v699_v10 = vpop.permute.xlu1 %698 }
 0x25d   :  { %v733_v20 = vsub.f32 %v6487_v57, %v699_v10  ;;  %782 = vrot.lane.b32.xlu1 %v743_v17, %s6273_s3  ;;  %792 = vrot.lane.b32.xlu0 %v748_v15, %s6273_s3 }
 0x25f   :  { %v749_v37 = vand.u32 2147483647, %v733_v20 }
 0x260   :  { %v695_v21 = vpop.permute.xlu1 %694  ;;  %v701_v24 = vpop.permute.xlu0 %700 }
 0x261   :  { %v731_v27 = vsub.f32 %v6514_v34, %v695_v21  ;;  %794 = vrot.lane.b32.xlu1 %v749_v37, %s6273_s3  ;;  %788 = vrot.lane.b32.xlu0 %v746_v35, %s6273_s3  ;;  %v734_v56 = vsub.f32 %v6524_v62, %v701_v24 }
 0x263   :  { %v747_v11 = vand.u32 2147483647, %v731_v27  ;;  %v750_v7 = vand.u32 2147483647, %v734_v56 }
 0x264   :  { %v703_v45 = vpop.permute.xlu1 %702 }
 0x265   :  { %790 = vrot.lane.b32.xlu1 %v747_v11, %s6273_s3  ;;  %v735_v57 = vsub.f32 %v6544_v22, %v703_v45  ;;  %796 = vrot.lane.b32.xlu0 %v750_v7, %s6273_s3 }
 0x267   :  { %v751_v6 = vand.u32 2147483647, %v735_v57 }
 0x269   :  { %798 = vrot.lane.b32.xlu1 %v751_v6, %s6273_s3 }
 0x296   :  { %v645_v29 = vpop.xlane.xlu0 %644 }
 0x297   :  { %v646_v34 = vrot.slane %v645_v29, 4 }
 0x299   :  { %v647_v31 = vadd.f32 %v646_v34, %v645_v29 }
 0x29b   :  { %v648_v12 = vrot.slane %v647_v31, 2 }
 0x29d   :  { %v649_v32 = vadd.f32 %v648_v12, %v647_v31 }
 0x29f   :  { %v650_v25 = vrot.slane %v649_v32, 1  ;;  %v6696_v51 = vpop.xlane.xlu1 %1022 }
 0x2a1   :  { %v651_v0 = vadd.f32 %v650_v25, %v649_v32 }
 0x2a3   :  { %6109 = vpush %v651_v0 }
 0x2af   :  { %v769_v54 = vpop.permute.xlu0 %768 }
 0x2b0   :  { %v817_v2 = vsel %vm816_vm5, %v769_v54, 0.0 }
 0x2b2   :  { %v6681_v62 = vpop.f32.mrf.mxu1 }
 0x2b3   :  { %1557 = vrot.lane.b32.xlu0 %v6681_v62, %s6272_s2  ;;  %v1744_v22 = vrot.slane %v6681_v62, 7  ;;  %v1482_v43 = vand.u32 2147483647, %v6681_v62  ;;  %v771_v63 = vpop.permute.xlu1 %770 }
 0x2b4   :  { %v5801_v38 = vpop.f32.mrf.mxu1  ;;  %v818_v3 = vsel %vm816_vm5, %v771_v63, 0.0 }
 0x2b5   :  { %v1784_v46 = vsub.f32 %v6681_v62, %v1744_v22  ;;  %v1498_v19 = vsel %vm136_vm0, %v1482_v43, 0.0  ;;  %v819_v15 = vadd.f32 %v818_v3, %v817_v2 }
 0x2b6   :  { %v6686_v40 = vpop.f32.mrf.mxu1 }
 0x2b7   :  { %v1745_v41 = vrot.slane %v6686_v40, 7  ;;  %1559 = vrot.lane.b32.xlu1 %v6686_v40, %s6272_s2  ;;  %v1800_v33 = vand.u32 2147483647, %v1784_v46  ;;  %v1483_v55 = vand.u32 2147483647, %v6686_v40  ;;  %v773_v17 = vpop.permute.xlu0 %772 }
 0x2b8   :  { %v5802_v42 = vpop.f32.mrf.mxu1  ;;  %v820_v37 = vsel %vm816_vm5, %v773_v17, 0.0 }
 0x2b9   :  { %v1746_v44 = vsel %vm860_vm2, %v1744_v22, %v1745_v41  ;;  %v1832_v4 = vrot.slane %v1800_v33, 1  ;;  %v1499_v20 = vsel %vm136_vm0, %v1483_v55, 0.0  ;;  %v821_v31 = vadd.f32 %v820_v37, %v819_v15 }
 0x2ba   :  { %v1785_v47 = vsub.f32 %v6686_v40, %v1746_v44  ;;  %v6694_v49 = vpop.f32.mrf.mxu1  ;;  %v1500_v34 = vadd.f32 %v1499_v20, %v1498_v19 }
 0x2bb   :  { %v1747_v28 = vrot.slane %v6694_v49, 7  ;;  %1561 = vrot.lane.b32.xlu1 %v6694_v49, %s6272_s2  ;;  %v1484_v35 = vand.u32 2147483647, %v6694_v49  ;;  %v775_v56 = vpop.permute.xlu1 %774 }
 0x2bc   :  { %v5807_v53 = vpop.f32.mrf.mxu1  ;;  %v1801_v60 = vand.u32 2147483647, %v1785_v47  ;;  %v822_v25 = vsel %vm816_vm5, %v775_v56, 0.0 }
 0x2bd   :  { %v1786_v61 = vsub.f32 %v6694_v49, %v1747_v28  ;;  %v1501_v12 = vsel %vm136_vm0, %v1484_v35, 0.0 }
 0x2be   :  { %v6702_v1 = vpop.f32.mrf.mxu1  ;;  %v1833_v18 = vrot.slane %v1801_v60, 1  ;;  %v1502_v33 = vadd.f32 %v1501_v12, %v1500_v34  ;;  %v823_v60 = vadd.f32 %v822_v25, %v821_v31 }
 0x2bf   :  { %v1748_v23 = vrot.slane %v6702_v1, 7  ;;  %1563 = vrot.lane.b32.xlu0 %v6702_v1, %s6272_s2  ;;  %v1802_v9 = vand.u32 2147483647, %v1786_v61  ;;  %v1485_v32 = vand.u32 2147483647, %v6702_v1  ;;  %v777_v44 = vpop.permute.xlu0 %776 }
 0x2c0   :  { %v5808_v48 = vpop.f32.mrf.mxu1  ;;  %v1834_v11 = vsel %vm949_vm3, %v1832_v4, %v1833_v18  ;;  %v1873_v42 = vsel %vm991_vm4, %v1833_v18, 0.0  ;;  %v824_v4 = vsel %vm816_vm5, %v777_v44, 0.0 }
 0x2c1   :  { %v1749_v5 = vsel %vm860_vm2, %v1747_v28, %v1748_v23  ;;  %v6712_v8 = vpop.f32.mrf.mxu0  ;;  %v1835_v7 = vrot.slane %v1802_v9, 1  ;;  %v1872_v41 = vsel %vm136_vm0, %v1834_v11, 0.0  ;;  %v1503_v23 = vsel %vm136_vm0, %v1485_v32, 0.0 }
 0x2c2   :  { %v1787_v13 = vsub.f32 %v6702_v1, %v1749_v5  ;;  %v6715_v14 = vpop.f32.mrf.mxu1  ;;  %v1874_v63 = vadd.f32 %v1873_v42, %v1872_v41  ;;  %v1504_v17 = vadd.f32 %v1503_v23, %v1502_v33  ;;  %v1756_v41 = vrot.slane %v6712_v8, 7 }
 0x2c3   :  { %v1750_v10 = vrot.slane %v6715_v14, 7  ;;  %1565 = vrot.lane.b32.xlu1 %v6715_v14, %s6272_s2  ;;  %v5825_v27 = vpop.f32.mrf.mxu0  ;;  %v779_v61 = vpop.permute.xlu1 %778  ;;  %v1486_v55 = vand.u32 2147483647, %v6715_v14 }
 0x2c4   :  { %v1803_v21 = vand.u32 2147483647, %v1787_v13  ;;  %v5813_v24 = vpop.f32.mrf.mxu1 }
 0x2c5   :  { %v1788_v57 = vsub.f32 %v6715_v14, %v1750_v10  ;;  %v6728_v29 = vpop.f32.mrf.mxu0  ;;  %v1505_v24 = vsel %vm136_vm0, %v1486_v55, 0.0 }
 0x2c6   :  { %v1836_v45 = vrot.slane %v1803_v21, 1  ;;  %v6726_v6 = vpop.f32.mrf.mxu1  ;;  %v825_v21 = vadd.f32 %v824_v4, %v823_v60  ;;  %v1757_v34 = vrot.slane %v6728_v29, 7 }
 0x2c7   :  { %1567 = vrot.lane.b32.xlu0 %v6726_v6, %s6272_s2  ;;  %1573 = vrot.lane.b32.xlu1 %v6712_v8, %s6272_s2  ;;  %v1751_v0 = vrot.slane %v6726_v6, 7  ;;  %v5826_v22 = vpop.f32.mrf.mxu0  ;;  %v1804_v47 = vand.u32 2147483647, %v1788_v57  ;;  %v1487_v27 = vand.u32 2147483647, %v6726_v6  ;;  %v826_v57 = vsel %vm816_vm5, %v779_v61, 0.0  ;;  %v6773_v31 = vpop.permute.xlu1 %786 }
 0x2c8   :  { %v5814_v38 = vpop.f32.mrf.mxu1  ;;  %v1837_v46 = vsel %vm949_vm3, %v1835_v7, %v1836_v45  ;;  %v1877_v7 = vsel %vm991_vm4, %v1836_v45, 0.0  ;;  %v1506_v22 = vadd.f32 %v1505_v24, %v1504_v17  ;;  %v1925_v24 = vld [vmem:[#allocation7 + $0x20] sm:$0xff] }
 0x2c9   :  { %v1752_v28 = vsel %vm860_vm2, %v1750_v10, %v1751_v0  ;;  %v6744_v54 = vpop.f32.mrf.mxu0  ;;  %v1875_v5 = vsel %vm136_vm0, %v1837_v46, 0.0  ;;  %v1838_v9 = vrot.slane %v1804_v47, 1  ;;  %v6761_v10 = vpop.permute.xlu0 %784  ;;  %v827_v46 = vadd.f32 %v826_v57, %v825_v21 }
 0x2ca   :  { %v6742_v53 = vpop.f32.mrf.mxu1  ;;  %v1789_v43 = vsub.f32 %v6726_v6, %v1752_v28  ;;  %v1876_v37 = vadd.f32 %v1875_v5, %v1874_v63  ;;  %v1507_v47 = vsel %vm136_vm0, %v1487_v27, 0.0  ;;  %v1926_v27 = vld [vmem:[#allocation7 + $0x28] sm:$0xff] }
 0x2cb   :  { %1569 = vrot.lane.b32.xlu1 %v6742_v53, %s6272_s2  ;;  %1575 = vrot.lane.b32.xlu0 %v6728_v29, %s6272_s2  ;;  %v1753_v2 = vrot.slane %v6742_v53, 7  ;;  %v5837_v48 = vpop.f32.mrf.mxu0  ;;  %v1488_v28 = vand.u32 2147483647, %v6742_v53  ;;  %v1508_v5 = vadd.f32 %v1507_v47, %v1506_v22 }
 0x2cc   :  { %v5819_v3 = vpop.f32.mrf.mxu1  ;;  %v1805_v18 = vand.u32 2147483647, %v1789_v43  ;;  %v1878_v44 = vadd.f32 %v1877_v7, %v1876_v37  ;;  %v1758_v43 = vsel %vm860_vm2, %v1756_v41, %v1757_v34  ;;  %v1792_v34 = vsub.f32 %v6712_v8, %v1756_v41 }
 0x2cd   :  { %v1790_v13 = vsub.f32 %v6742_v53, %v1753_v2  ;;  %v6759_v15 = vpop.f32.mrf.mxu0  ;;  %v781_v42 = vpop.permute.xlu0 %780  ;;  %v1509_v17 = vsel %vm136_vm0, %v1488_v28, 0.0 }
 0x2ce   :  { %v6757_v19 = vpop.f32.mrf.mxu1  ;;  %v1839_v20 = vrot.slane %v1805_v18, 1  ;;  %v828_v63 = vsel %vm816_vm5, %v781_v42, 0.0 }
 0x2cf   :  { %v1754_v35 = vrot.slane %v6757_v19, 7  ;;  %1571 = vrot.lane.b32.xlu0 %v6757_v19, %s6272_s2  ;;  %1581 = vrot.lane.b32.xlu1 %v6744_v54, %s6272_s2  ;;  %v5838_v11 = vpop.f32.mrf.mxu0  ;;  %v1806_v25 = vand.u32 2147483647, %v1790_v13  ;;  %v783_v55 = vpop.permute.xlu1 %782  ;;  %v1793_v13 = vsub.f32 %v6728_v29, %v1758_v43 }
 0x2d0   :  { %v5820_v56 = vpop.f32.mrf.mxu1  ;;  %v1840_v32 = vsel %vm949_vm3, %v1838_v9, %v1839_v20  ;;  %v1489_v11 = vand.u32 2147483647, %v6757_v19  ;;  %v830_v7 = vsel %vm816_vm5, %v783_v55, 0.0 }
 0x2d1   :  { %v1755_v12 = vsel %vm860_vm2, %v1753_v2, %v1754_v35  ;;  %v6779_v38 = vpop.f32.mrf.mxu0  ;;  %v1879_v61 = vsel %vm136_vm0, %v1840_v32, 0.0  ;;  %v1841_v2 = vrot.slane %v1806_v25, 1  ;;  %v829_v35 = vadd.f32 %v828_v63, %v827_v46  ;;  %v6820_v43 = vpop.permute.xlu0 %792 }
 0x2d2   :  { %v6777_v0 = vpop.f32.mrf.mxu1  ;;  %v1791_v45 = vsub.f32 %v6757_v19, %v1755_v12  ;;  %v1880_v9 = vadd.f32 %v1879_v61, %v1878_v44  ;;  %v1881_v56 = vsel %vm991_vm4, %v1839_v20, 0.0  ;;  %v6812_v20 = vpack.c.bf16 %v1926_v27, %v1925_v24 }
 0x2d3   :  { %1583 = vrot.lane.b32.xlu0 %v6759_v15, %s6272_s2  ;;  %1577 = vrot.lane.b32.xlu1 %v6777_v0, %s6272_s2  ;;  %v1962_v60 = vpop.f32.mrf.mxu0  ;;  %v1759_v18 = vrot.slane %v6777_v0, 7  ;;  %v6814_v44 = vand.u32 2147483647, %v1793_v13  ;;  %v1510_v46 = vadd.f32 %v1509_v17, %v1508_v5  ;;  %v831_v47 = vadd.f32 %v830_v7, %v829_v35  ;;  %v6832_v13 = vpop.permute.xlu1 %794 }
 0x2d4   :  { %v5831_v33 = vpop.f32.mrf.mxu1  ;;  %v1807_v23 = vand.u32 2147483647, %v1791_v45  ;;  %v1882_v45 = vadd.f32 %v1881_v56, %v1880_v9  ;;  %v1490_v5 = vand.u32 2147483647, %v6712_v8  ;;  %v832_v9 = vsel %vm816_vm5, %v6761_v10, 0.0  ;;  %s8235_s9 = spop %6109 }
 0x2d5   :  { %v5850_v48 = vpop.f32.mrf.mxu0  ;;  %v1511_v33 = vsel %vm136_vm0, %v1489_v11, 0.0  ;;  %v1794_v63 = vsub.f32 %v6777_v0, %v1759_v18  ;;  %v1491_v56 = vand.u32 2147483647, %v6728_v29  ;;  %v1763_v11 = vrot.slane %v6759_v15, 7  ;;  %v789_v7 = vpop.permute.xlu0 %788  ;;  %s655_s23 = smul.f32 0.00048828125, %s8235_s9 }
 0x2d6   :  { %v6792_v3 = vpop.f32.mrf.mxu1  ;;  %v1842_v4 = vrot.slane %v1807_v23, 1  ;;  %v2026_v17 = vpack.c.bf16 %v5850_v48, %v6779_v38  ;;  %v1512_v35 = vadd.f32 %v1511_v33, %v1510_v46  ;;  %v1492_v33 = vand.u32 2147483647, %v6777_v0 }
 0x2d7   :  { %1579 = vrot.lane.b32.xlu0 %v6792_v3, %s6272_s2  ;;  %v1965_v21 = vpop.f32.mrf.mxu0  ;;  %v1760_v57 = vrot.slane %v6792_v3, 7  ;;  %v1810_v48 = vand.u32 2147483647, %v1794_v63 }
 0x2d8   :  { %v5832_v37 = vpop.f32.mrf.mxu1  ;;  %v1843_v12 = vsel %vm949_vm3, %v1841_v2, %v1842_v4  ;;  %v2025_v42 = vpack.c.bf16 %v1965_v21, %v1962_v60  ;;  %v1808_v60 = vand.u32 2147483647, %v1792_v34  ;;  %v833_v21 = vadd.f32 %v832_v9, %v831_v47 }
 0x2d9   :  { %v6807_v25 = vpop.f32.mrf.mxu0  ;;  %v1761_v22 = vsel %vm860_vm2, %v1759_v18, %v1760_v57  ;;  %v1883_v61 = vsel %vm136_vm0, %v1843_v12, 0.0  ;;  %v1845_v18 = vrot.slane %v6814_v44, 1  ;;  %v1885_v10 = vsel %vm991_vm4, %v1842_v4, 0.0 }
 0x2da   :  { %v6805_v32 = vpop.f32.mrf.mxu1  ;;  %5864 = vmatpush3.bf16.msra.mxu1 %v2025_v42  ;;  %v1795_v23 = vsub.f32 %v6792_v3, %v1761_v22  ;;  %v1884_v37 = vadd.f32 %v1883_v61, %v1882_v45  ;;  %v1844_v38 = vrot.slane %v1808_v60, 1  ;;  %v1513_v12 = vsel %vm136_vm0, %v1490_v5, 0.0 }
 0x2db   :  { %1585 = vrot.lane.b32.xlu1 %v6805_v32, %s6272_s2  ;;  %v6816_v28 = vpop.f32.mrf.mxu0  ;;  %5869 = vmatprep.subr.bf16.mxu1 %v8251_v59  ;;  %v834_v4 = vsel %vm816_vm5, %v6773_v31, 0.0  ;;  %v1762_v22 = vrot.slane %v6744_v54, 7  ;;  %v1514_v45 = vadd.f32 %v1513_v12, %v1512_v35  ;;  %v836_v61 = vsel %vm816_vm5, %v789_v7, 0.0  ;;  %v791_v31 = vpop.permute.xlu1 %790 }
 0x2dc   :  { %v5843_v41 = vpop.f32.mrf.mxu1  ;;  %v6845_v57 = vand.u32 2147483647, %v1795_v23  ;;  %v1846_v42 = vsel %vm949_vm3, %v1844_v38, %v1845_v18  ;;  %v1886_v44 = vadd.f32 %v1885_v10, %v1884_v37  ;;  %v835_v46 = vadd.f32 %v834_v4, %v833_v21 }
 0x2dd   :  { %v6826_v2 = vpop.f32.mrf.mxu0  ;;  %5866 = vmatmul.mubr.msk.bf16.vlgmr.msra.gmra.mxu1 %vm136_vm0, %v6812_v20  ;;  %v1764_v41 = vsel %vm860_vm2, %v1762_v22, %v1763_v11  ;;  %v1515_v60 = vsel %vm136_vm0, %v1491_v56, 0.0  ;;  %v1847_v63 = vrot.slane %v1810_v48, 1  ;;  %v1887_v9 = vsel %vm136_vm0, %v1846_v42, 0.0 }
 0x2de   :  { %v6824_v55 = vpop.f32.mrf.mxu1  ;;  %5870 = vmatpush3.bf16.msra.mxu1 %v2026_v17  ;;  %5871 = vmatprep.mubr.msk.bf16.mxu1 %vm6271_vm1, %v8251_v59  ;;  %v1848_v23 = vrot.slane %v6845_v57, 1  ;;  %v1765_v17 = vrot.slane %v6805_v32, 7  ;;  %v1888_v21 = vadd.f32 %v1887_v9, %v1886_v44  ;;  %v837_v10 = vadd.f32 %v836_v61, %v835_v46  ;;  %v2803_v46 = vld [vmem:[#allocation8 + $0x30] sm:$0xff] }
 0x2df   :  { %1587 = vrot.lane.b32.xlu0 %v6824_v55, %s6272_s2  ;;  %v1981_v24 = vpop.f32.mrf.mxu0  ;;  %5875 = vmatprep.subr.bf16.mxu1 %v8251_v59  ;;  %v1766_v35 = vrot.slane %v6824_v55, 7  ;;  %v1516_v11 = vadd.f32 %v1515_v60, %v1514_v45  ;;  %v1517_v38 = vsel %vm136_vm0, %v1492_v33, 0.0  ;;  %v1493_v48 = vand.u32 2147483647, %v6792_v3 }
 0x2e0   :  { %v5844_v27 = vpop.f32.mrf.mxu1  ;;  %v2027_v37 = vpack.c.bf16 %v1981_v24, %v6816_v28  ;;  %v838_v7 = vsel %vm816_vm5, %v791_v31, 0.0  ;;  %v1796_v28 = vsub.f32 %v6744_v54, %v1762_v22  ;;  %v1849_v12 = vsel %vm949_vm3, %v1847_v63, %v1848_v23 }
 0x2e1   :  { %v6847_v34 = vpop.f32.mrf.mxu0  ;;  %v1797_v27 = vsub.f32 %v6759_v15, %v1764_v41  ;;  %v1889_v4 = vsel %vm991_vm4, %v1845_v18, 0.0  ;;  %v1767_v42 = vsel %vm860_vm2, %v1765_v17, %v1766_v35  ;;  %v839_v45 = vadd.f32 %v838_v7, %v837_v10  ;;  %v797_v7 = vpop.permute.xlu0 %796 }
 0x2e2   :  { %v1518_v41 = vadd.f32 %v1517_v38, %v1516_v11  ;;  %v1890_v22 = vadd.f32 %v1889_v4, %v1888_v21  ;;  %v1519_v61 = vsel %vm136_vm0, %v1493_v48, 0.0  ;;  %v1891_v60 = vsel %vm136_vm0, %v1849_v12, 0.0 }
 0x2e3   :  { %v1994_v47 = vpop.f32.mrf.mxu0  ;;  %v1813_v33 = vand.u32 2147483647, %v1797_v27  ;;  %v1812_v31 = vand.u32 2147483647, %v1796_v28  ;;  %v1798_v63 = vsub.f32 %v6805_v32, %v1765_v17  ;;  %v1799_v9 = vsub.f32 %v6824_v55, %v1767_v42 }
 0x2e4   :  { %v1494_v35 = vand.u32 2147483647, %v6744_v54  ;;  %v2028_v21 = vpack.c.bf16 %v6826_v2, %v6807_v25  ;;  %v1892_v38 = vadd.f32 %v1891_v60, %v1890_v22  ;;  %v842_v28 = vsel %vm816_vm5, %v6832_v13, 0.0 }
 0x2e5   :  { %v6860_v5 = vpop.f32.mrf.mxu0  ;;  %5872 = vmatmul.mubr.msk.bf16.vlgmr.msra.gmra.mxu1 %vm136_vm0, %v6812_v20  ;;  %v1851_v11 = vrot.slane %v1813_v33, 1  ;;  %v1850_v25 = vrot.slane %v1812_v31, 1  ;;  %v1814_v2 = vand.u32 2147483647, %v1798_v63  ;;  %v1495_v12 = vand.u32 2147483647, %v6759_v15  ;;  %v799_v33 = vpop.permute.xlu1 %798 }
 0x2e6   :  { %5876 = vmatpush3.bf16.msra.mxu1 %v2027_v37  ;;  %5877 = vmatprep.mubr.msk.bf16.mxu1 %vm6271_vm1, %v8251_v59  ;;  %v840_v37 = vsel %vm816_vm5, %v6820_v43, 0.0  ;;  %v1893_v43 = vsel %vm991_vm4, %v1848_v23, 0.0  ;;  %v1521_v4 = vsel %vm136_vm0, %v1494_v35, 0.0  ;;  %v2030_v22 = vpack.c.bf16 %v6860_v5, %v6847_v34 }
 0x2e7   :  { %v1997_v56 = vpop.f32.mrf.mxu0  ;;  %5881 = vmatprep.subr.bf16.mxu1 %v8251_v59  ;;  %v841_v17 = vadd.f32 %v840_v37, %v839_v45  ;;  %v1894_v23 = vadd.f32 %v1893_v43, %v1892_v38  ;;  %v846_v35 = vsel %vm816_vm5, %v799_v33, 0.0  ;;  %v1497_v34 = vand.u32 2147483647, %v6824_v55 }
 0x2e8   :  { %v2029_v57 = vpack.c.bf16 %v1997_v56, %v1994_v47  ;;  %v2804_v47 = vld [vmem:[#allocation8 + $0x38] sm:$0xff]  ;;  %v1520_v56 = vadd.f32 %v1519_v61, %v1518_v41  ;;  %v1853_v41 = vrot.slane %v1814_v2, 1  ;;  %v1523_v61 = vsel %vm136_vm0, %v1495_v12, 0.0 }
 0x2e9   :  { %v6875_v24 = vpop.f32.mrf.mxu0  ;;  %v2805_v27 = vpack.c.bf16 %v2804_v47, %v2803_v46  ;;  %v843_v42 = vadd.f32 %v842_v28, %v841_v17  ;;  %v844_v46 = vsel %vm816_vm5, %v797_v7, 0.0  ;;  %v1496_v47 = vand.u32 2147483647, %v6805_v32 }
 0x2ea   :  { %5888 = vmatpush3.bf16.msra.mxu0 %v2029_v57  ;;  %v1815_v57 = vand.u32 2147483647, %v1799_v9  ;;  %v1522_v45 = vadd.f32 %v1521_v4, %v1520_v56  ;;  %v1527_v56 = vsel %vm136_vm0, %v1497_v34, 0.0 }
 0x2eb   :  { %v2010_v44 = vpop.f32.mrf.mxu0  ;;  %5899 = vmatprep.subr.bf16.mxu0 %v8251_v59  ;;  %v845_v31 = vadd.f32 %v844_v46, %v843_v42  ;;  %v1525_v5 = vsel %vm136_vm0, %v1496_v47, 0.0 }
 0x2ec   :  { %v1854_v13 = vrot.slane %v1815_v57, 1  ;;  %v1524_v63 = vadd.f32 %v1523_v61, %v1522_v45 }
 0x2ed   :  { %v6885_v18 = vpop.f32.mrf.mxu0  ;;  %5890 = vmatmul.mubr.msk.bf16.vlgmr.msra.gmra.mxu0 %vm136_vm0, %v6812_v20  ;;  %5878 = vmatmul.mubr.msk.bf16.vlgmr.msra.gmra.mxu1 %vm136_vm0, %v6812_v20 }
 0x2ee   :  { %5901 = vmatprep.mubr.msk.bf16.mxu0 %vm6271_vm1, %v8251_v59  ;;  %5882 = vmatpush3.bf16.msra.mxu1 %v2028_v21  ;;  %v1855_v37 = vsel %vm949_vm3, %v1853_v41, %v1854_v13  ;;  %v1897_v21 = vsel %vm991_vm4, %v1851_v11, 0.0  ;;  %v1526_v17 = vadd.f32 %v1525_v5, %v1524_v63 }
 0x2ef   :  { %v2013_v10 = vpop.f32.mrf.mxu0  ;;  %5883 = vmatprep.mubr.msk.bf16.mxu1 %vm6271_vm1, %v8251_v59  ;;  %5893 = vmatprep.subr.bf16.mxu1 %v8251_v59  ;;  %v1899_v38 = vsel %vm136_vm0, %v1855_v37, 0.0 }
 0x2f0   :  { %v2031_v48 = vpack.c.bf16 %v2013_v10, %v2010_v44  ;;  %v1852_v44 = vsel %vm949_vm3, %v1850_v25, %v1851_v11  ;;  %v1528_v11 = vadd.f32 %v1527_v56, %v1526_v17  ;;  %v1901_v25 = vsel %vm991_vm4, %v1854_v13, 0.0 }
 0x2f1   :  { %v1895_v60 = vsel %vm136_vm0, %v1852_v44, 0.0 }
 0x2f2   :  { %5900 = vmatpush3.bf16.msra.mxu0 %v2031_v48  ;;  %v1896_v9 = vadd.f32 %v1895_v60, %v1894_v23  ;;  %v2032_v48 = vpack.c.bf16 %v6885_v18, %v6875_v24 }
 0x2f3   :  { %5911 = vmatprep.subr.bf16.mxu0 %v2805_v27 }
 0x2f4   :  { %v1898_v10 = vadd.f32 %v1897_v21, %v1896_v9 }
 0x2f5   :  { %5902 = vmatmul.mubr.msk.bf16.vlgmr.msra.gmra.mxu0 %vm136_vm0, %v6812_v20  ;;  %5884 = vmatmul.mubr.msk.bf16.vlgmr.msra.gmra.mxu1 %vm136_vm0, %v6812_v20 }
 0x2f6   :  { %5912 = vmatpush3.bf16.msra.mxu0 %v2805_v27  ;;  %5913 = vmatprep.mubr.msk.bf16.mxu0 %vm136_vm0, %v6324_v16  ;;  %v847_v27 = vadd.f32 %v846_v35, %v845_v31  ;;  %v1900_v43 = vadd.f32 %v1899_v38, %v1898_v10 }
 0x2f7   :  { %5953 = vmatprep.subr.bf16.mxu0 %v8251_v59  ;;  %5894 = vmatpush3.bf16.msra.mxu1 %v2030_v22 }
 0x2f8   :  { %5895 = vmatprep.mubr.msk.bf16.mxu1 %vm6271_vm1, %v8251_v59  ;;  %5905 = vmatprep.subr.bf16.mxu1 %v8251_v59  ;;  %v1902_v2 = vadd.f32 %v1901_v25, %v1900_v43 }
 0x2fd   :  { %5914 = vmatmul.mubr.msk.bf16.vlgmr.msra.gmra.mxu0 %vm136_vm0, %v6328_v26  ;;  %5896 = vmatmul.mubr.msk.bf16.vlgmr.msra.gmra.mxu1 %vm136_vm0, %v6812_v20 }
 0x2fe   :  { %848 = vadd.xlane.f32.xlu0 %v847_v27  ;;  %5917 = vmatprep.mubr.msk.bf16.mxu0 %vm136_vm0, %v6330_v30 }
 0x2ff   :  { %5906 = vmatpush3.bf16.msra.mxu1 %v2032_v48  ;;  %5907 = vmatprep.mubr.msk.bf16.mxu1 %vm6271_vm1, %v8251_v59 }
 0x300   :  { %5929 = vmatprep.subr.bf16.mxu1 %v8251_v59 }
 0x302   :  { %1529 = vadd.xlane.f32.xlu0 %v1528_v11 }
 0x305   :  { %5918 = vmatmul.mubr.msk.bf16.gmra.mxu0 %vm136_vm0, %v6336_v36  ;;  %5908 = vmatmul.mubr.msk.bf16.vlgmr.msra.gmra.mxu1 %vm136_vm0, %v6812_v20 }
 0x306   :  { %1903 = vadd.xlane.f32.xlu0 %v1902_v2  ;;  %5921 = vmatprep.mubr.msk.bf16.mxu0 %vm136_vm0, %v6338_v39 }
 0x307   :  { %5931 = vmatprep.mubr.msk.bf16.mxu1 %vm6271_vm1, %v8251_v59 }
 0x30d   :  { %5922 = vmatmul.mubr.msk.bf16.gmra.mxu0 %vm136_vm0, %v6344_v50 }
 0x30e   :  { %5925 = vmatprep.mubr.msk.bf16.mxu0 %vm136_vm0, %v6346_v52 }
 0x315   :  { %5926 = vmatmul.mubr.msk.bf16.gmra.mxu0 %vm136_vm0, %v6352_v58 }
 0x316   :  { %5955 = vmatprep.mubr.msk.bf16.mxu0 %vm6271_vm1, %v8251_v59 }
 0x325   :  { %v1558_v24 = vpop.permute.xlu0 %1557 }
 0x326   :  { %v1605_v18 = vsub.f32 %v6681_v62, %v1558_v24 }
 0x328   :  { %v1621_v7 = vand.u32 2147483647, %v1605_v18 }
 0x329   :  { %v1560_v20 = vpop.permute.xlu1 %1559 }
 0x32a   :  { %v1606_v57 = vsub.f32 %v6686_v40, %v1560_v20  ;;  %1653 = vrot.lane.b32.xlu1 %v1621_v7, %s6273_s3 }
 0x32c   :  { %v1622_v28 = vand.u32 2147483647, %v1606_v57 }
 0x32d   :  { %v1562_v12 = vpop.permute.xlu1 %1561 }
 0x32e   :  { %v1607_v4 = vsub.f32 %v6694_v49, %v1562_v12  ;;  %1655 = vrot.lane.b32.xlu0 %v1622_v28, %s6273_s3 }
 0x330   :  { %v1623_v42 = vand.u32 2147483647, %v1607_v4 }
 0x331   :  { %v1564_v45 = vpop.permute.xlu0 %1563 }
 0x332   :  { %v1608_v44 = vsub.f32 %v6702_v1, %v1564_v45  ;;  %1657 = vrot.lane.b32.xlu1 %v1623_v42, %s6273_s3 }
 0x334   :  { %v1624_v23 = vand.u32 2147483647, %v1608_v44 }
 0x335   :  { %v1566_v62 = vpop.permute.xlu1 %1565 }
 0x336   :  { %v1609_v46 = vsub.f32 %v6715_v14, %v1566_v62  ;;  %1659 = vrot.lane.b32.xlu0 %v1624_v23, %s6273_s3 }
 0x338   :  { %v1625_v40 = vand.u32 2147483647, %v1609_v46 }
 0x339   :  { %v1568_v47 = vpop.permute.xlu0 %1567  ;;  %v1574_v41 = vpop.permute.xlu1 %1573 }
 0x33a   :  { %v1610_v33 = vsub.f32 %v6726_v6, %v1568_v47  ;;  %v1613_v49 = vsub.f32 %v6712_v8, %v1574_v41  ;;  %1661 = vrot.lane.b32.xlu1 %v1625_v40, %s6273_s3 }
 0x33c   :  { %v1626_v13 = vand.u32 2147483647, %v1610_v33  ;;  %v1629_v22 = vand.u32 2147483647, %v1613_v49 }
 0x33d   :  { %v1570_v1 = vpop.permute.xlu1 %1569  ;;  %v1576_v61 = vpop.permute.xlu0 %1575 }
 0x33e   :  { %v1611_v60 = vsub.f32 %v6742_v53, %v1570_v1  ;;  %v1614_v31 = vsub.f32 %v6728_v29, %v1576_v61  ;;  %1669 = vrot.lane.b32.xlu1 %v1629_v22, %s6273_s3  ;;  %1663 = vrot.lane.b32.xlu0 %v1626_v13, %s6273_s3 }
 0x340   :  { %v1627_v14 = vand.u32 2147483647, %v1611_v60  ;;  %v1630_v63 = vand.u32 2147483647, %v1614_v31 }
 0x341   :  { %v1572_v9 = vpop.permute.xlu0 %1571  ;;  %v1582_v6 = vpop.permute.xlu1 %1581 }
 0x342   :  { %v1612_v8 = vsub.f32 %v6757_v19, %v1572_v9  ;;  %v1617_v35 = vsub.f32 %v6744_v54, %v1582_v6  ;;  %1665 = vrot.lane.b32.xlu1 %v1627_v14, %s6273_s3  ;;  %1671 = vrot.lane.b32.xlu0 %v1630_v63, %s6273_s3 }
 0x344   :  { %v1628_v34 = vand.u32 2147483647, %v1612_v8  ;;  %v1633_v53 = vand.u32 2147483647, %v1617_v35 }
 0x345   :  { %v1584_v5 = vpop.permute.xlu0 %1583  ;;  %v1578_v29 = vpop.permute.xlu1 %1577 }
 0x346   :  { %v1618_v37 = vsub.f32 %v6759_v15, %v1584_v5  ;;  %1677 = vrot.lane.b32.xlu1 %v1633_v53, %s6273_s3  ;;  %1667 = vrot.lane.b32.xlu0 %v1628_v34, %s6273_s3  ;;  %v1615_v21 = vsub.f32 %v6777_v0, %v1578_v29 }
 0x348   :  { %v1634_v27 = vand.u32 2147483647, %v1618_v37  ;;  %v1631_v19 = vand.u32 2147483647, %v1615_v21 }
 0x349   :  { %v1580_v17 = vpop.permute.xlu0 %1579 }
 0x34a   :  { %v1616_v54 = vsub.f32 %v6792_v3, %v1580_v17  ;;  %1679 = vrot.lane.b32.xlu0 %v1634_v27, %s6273_s3  ;;  %1673 = vrot.lane.b32.xlu1 %v1631_v19, %s6273_s3  ;;  %v1024_v3 = vrot.slane %v6696_v51, 4 }
 0x34c   :  { %v1632_v10 = vand.u32 2147483647, %v1616_v54  ;;  %v1025_v43 = vadd.f32 %v1024_v3, %v6696_v51 }
 0x34d   :  { %v1586_v56 = vpop.permute.xlu1 %1585 }
 0x34e   :  { %1675 = vrot.lane.b32.xlu0 %v1632_v10, %s6273_s3  ;;  %v1619_v15 = vsub.f32 %v6805_v32, %v1586_v56  ;;  %v1026_v2 = vrot.slane %v1025_v43, 2 }
 0x350   :  { %v1635_v38 = vand.u32 2147483647, %v1619_v15  ;;  %v1027_v20 = vadd.f32 %v1026_v2, %v1025_v43 }
 0x351   :  { %v1588_v48 = vpop.permute.xlu0 %1587 }
 0x352   :  { %v1620_v11 = vsub.f32 %v6824_v55, %v1588_v48  ;;  %1681 = vrot.lane.b32.xlu1 %v1635_v38, %s6273_s3  ;;  %v1028_v55 = vrot.slane %v1027_v20, 1 }
 0x354   :  { %v1636_v0 = vand.u32 2147483647, %v1620_v11  ;;  %v1029_v23 = vadd.f32 %v1028_v55, %v1027_v20 }
 0x356   :  { %1683 = vrot.lane.b32.xlu0 %v1636_v0, %s6273_s3 }
 0x387   :  { %v849_v25 = vpop.xlane.xlu0 %848 }
 0x388   :  { %v850_v24 = vrot.slane %v849_v25, 4 }
 0x38a   :  { %v851_v18 = vadd.f32 %v850_v24, %v849_v25 }
 0x38b   :  { %v1530_v7 = vpop.xlane.xlu0 %1529 }
 0x38c   :  { %v1531_v32 = vrot.slane %v1530_v7, 4  ;;  %v852_v57 = vrot.slane %v851_v18, 2 }
 0x38e   :  { %v1532_v28 = vadd.f32 %v1531_v32, %v1530_v7  ;;  %v853_v12 = vadd.f32 %v852_v57, %v851_v18 }
 0x38f   :  { %v7012_v14 = vpop.xlane.xlu0 %1903 }
 0x390   :  { %v854_v4 = vrot.slane %v853_v12, 1  ;;  %v1533_v42 = vrot.slane %v1532_v28, 2 }
 0x392   :  { %v855_v45 = vadd.f32 %v854_v4, %v853_v12  ;;  %v1534_v44 = vadd.f32 %v1533_v42, %v1532_v28 }
 0x394   :  { %6111 = vpush %v855_v45  ;;  %v1535_v62 = vrot.slane %v1534_v44, 1 }
 0x395   :  { %6113 = vpush %v1029_v23 }
 0x396   :  { %v1536_v51 = vadd.f32 %v1535_v62, %v1534_v44 }
 0x398   :  { %6115 = vpush %v1536_v51 }
 0x39c   :  { %v1654_v8 = vpop.permute.xlu1 %1653 }
 0x39d   :  { %v6993_v46 = vpop.f32.mrf.mxu1  ;;  %v1701_v19 = vsel %vm816_vm5, %v1654_v8, 0.0 }
 0x39e   :  { %2439 = vrot.lane.b32.xlu1 %v6993_v46, %s6272_s2  ;;  %v2364_v33 = vand.u32 2147483647, %v6993_v46 }
 0x39f   :  { %v5867_v40 = vpop.f32.mrf.mxu1 }
 0x3a0   :  { %v2380_v1 = vsel %vm136_vm0, %v2364_v33, 0.0  ;;  %v1656_v5 = vpop.permute.xlu0 %1655 }
 0x3a1   :  { %v6997_v47 = vpop.f32.mrf.mxu1  ;;  %v1702_v17 = vsel %vm816_vm5, %v1656_v5, 0.0 }
 0x3a2   :  { %2441 = vrot.lane.b32.xlu0 %v6997_v47, %s6272_s2  ;;  %v2365_v49 = vand.u32 2147483647, %v6997_v47  ;;  %v1703_v11 = vadd.f32 %v1702_v17, %v1701_v19 }
 0x3a3   :  { %v5868_v41 = vpop.f32.mrf.mxu1 }
 0x3a4   :  { %v2381_v61 = vsel %vm136_vm0, %v2365_v49, 0.0  ;;  %v1658_v15 = vpop.permute.xlu1 %1657 }
 0x3a5   :  { %v7003_v13 = vpop.f32.mrf.mxu1  ;;  %v2382_v6 = vadd.f32 %v2381_v61, %v2380_v1  ;;  %v1704_v25 = vsel %vm816_vm5, %v1658_v15, 0.0 }
 0x3a6   :  { %2443 = vrot.lane.b32.xlu1 %v7003_v13, %s6272_s2  ;;  %v2366_v60 = vand.u32 2147483647, %v7003_v13  ;;  %v1705_v57 = vadd.f32 %v1704_v25, %v1703_v11 }
 0x3a7   :  { %v5873_v22 = vpop.f32.mrf.mxu1 }
 0x3a8   :  { %v2383_v35 = vsel %vm136_vm0, %v2366_v60, 0.0  ;;  %v1660_v3 = vpop.permute.xlu0 %1659 }
 0x3a9   :  { %v7010_v31 = vpop.f32.mrf.mxu1  ;;  %v2384_v21 = vadd.f32 %v2383_v35, %v2382_v6  ;;  %v1706_v55 = vsel %vm816_vm5, %v1660_v3, 0.0 }
 0x3aa   :  { %2445 = vrot.lane.b32.xlu1 %v7010_v31, %s6272_s2  ;;  %v2367_v34 = vand.u32 2147483647, %v7010_v31  ;;  %v1707_v51 = vadd.f32 %v1706_v55, %v1705_v57 }
 0x3ab   :  { %v5874_v63 = vpop.f32.mrf.mxu1 }
 0x3ac   :  { %v2385_v54 = vsel %vm136_vm0, %v2367_v34, 0.0  ;;  %v1662_v32 = vpop.permute.xlu1 %1661 }
 0x3ad   :  { %v7016_v9 = vpop.f32.mrf.mxu0  ;;  %v7020_v53 = vpop.f32.mrf.mxu1  ;;  %v2386_v0 = vadd.f32 %v2385_v54, %v2384_v21  ;;  %v1708_v33 = vsel %vm816_vm5, %v1662_v32, 0.0  ;;  %v2807_v54 = vld [vmem:[#allocation7 + $0x30] sm:$0xff] }
 0x3ae   :  { %2447 = vrot.lane.b32.xlu0 %v7020_v53, %s6272_s2  ;;  %v2368_v10 = vand.u32 2147483647, %v7020_v53  ;;  %v1709_v6 = vadd.f32 %v1708_v33, %v1707_v51  ;;  %v2372_v19 = vand.u32 2147483647, %v7016_v9 }
 0x3af   :  { %v5891_v29 = vpop.f32.mrf.mxu0  ;;  %v5879_v37 = vpop.f32.mrf.mxu1 }
 0x3b0   :  { %v2387_v2 = vsel %vm136_vm0, %v2368_v10, 0.0  ;;  %v1664_v44 = vpop.permute.xlu0 %1663  ;;  %v1670_v61 = vpop.permute.xlu1 %1669  ;;  %v2808_v10 = vld [vmem:[#allocation7 + $0x38] sm:$0xff] }
 0x3b1   :  { %v7024_v27 = vpop.f32.mrf.mxu0  ;;  %v7030_v56 = vpop.f32.mrf.mxu1  ;;  %v2388_v28 = vadd.f32 %v2387_v2, %v2386_v0  ;;  %v1710_v5 = vsel %vm816_vm5, %v1664_v44, 0.0 }
 0x3b2   :  { %2449 = vrot.lane.b32.xlu1 %v7030_v56, %s6272_s2  ;;  %2455 = vrot.lane.b32.xlu0 %v7016_v9, %s6272_s2  ;;  %v2369_v24 = vand.u32 2147483647, %v7030_v56  ;;  %v1711_v15 = vadd.f32 %v1710_v5, %v1709_v6  ;;  %v2373_v32 = vand.u32 2147483647, %v7024_v27 }
 0x3b3   :  { %v5892_v38 = vpop.f32.mrf.mxu0  ;;  %v5880_v48 = vpop.f32.mrf.mxu1 }
 0x3b4   :  { %v2389_v4 = vsel %vm136_vm0, %v2369_v24, 0.0  ;;  %v1672_v8 = vpop.permute.xlu0 %1671  ;;  %v1666_v38 = vpop.permute.xlu1 %1665 }
 0x3b5   :  { %v7036_v43 = vpop.f32.mrf.mxu0  ;;  %v7041_v18 = vpop.f32.mrf.mxu1  ;;  %v2390_v40 = vadd.f32 %v2389_v4, %v2388_v28  ;;  %v1712_v0 = vsel %vm816_vm5, %v1666_v38, 0.0 }
 0x3b6   :  { %2451 = vrot.lane.b32.xlu0 %v7041_v18, %s6272_s2  ;;  %2457 = vrot.lane.b32.xlu1 %v7024_v27, %s6272_s2  ;;  %v2370_v42 = vand.u32 2147483647, %v7041_v18  ;;  %v1713_v28 = vadd.f32 %v1712_v0, %v1711_v15 }
 0x3b7   :  { %v5903_v7 = vpop.f32.mrf.mxu0  ;;  %v5885_v20 = vpop.f32.mrf.mxu1 }
 0x3b8   :  { %v2391_v49 = vsel %vm136_vm0, %v2370_v42, 0.0  ;;  %v1668_v2 = vpop.permute.xlu0 %1667  ;;  %v7081_v7 = vpack.c.bf16 %v2808_v10, %v2807_v54  ;;  %v2395_v20 = vsel %vm136_vm0, %v2372_v19, 0.0  ;;  %v1678_v6 = vpop.permute.xlu1 %1677  ;;  %v2376_v10 = vand.u32 2147483647, %v7036_v43 }
 0x3b9   :  { %v7047_v12 = vpop.f32.mrf.mxu0  ;;  %v7052_v45 = vpop.f32.mrf.mxu1  ;;  %v2392_v35 = vadd.f32 %v2391_v49, %v2390_v40  ;;  %v1714_v44 = vsel %vm816_vm5, %v1668_v2, 0.0  ;;  %v2397_v40 = vsel %vm136_vm0, %v2373_v32, 0.0 }
 0x3ba   :  { %2453 = vrot.lane.b32.xlu1 %v7052_v45, %s6272_s2  ;;  %2463 = vrot.lane.b32.xlu0 %v7036_v43, %s6272_s2  ;;  %v2371_v22 = vand.u32 2147483647, %v7052_v45  ;;  %v1715_v49 = vadd.f32 %v1714_v44, %v1713_v28 }
 0x3bb   :  { %v5904_v23 = vpop.f32.mrf.mxu0  ;;  %v5886_v62 = vpop.f32.mrf.mxu1 }
 0x3bc   :  { %v2393_v29 = vsel %vm136_vm0, %v2371_v22, 0.0  ;;  %v1674_v15 = vpop.permute.xlu1 %1673 }
 0x3bd   :  { %v5915_v41 = vpop.f32.mrf.mxu0  ;;  %v7061_v1 = vpop.f32.mrf.mxu1  ;;  %v2394_v48 = vadd.f32 %v2393_v29, %v2392_v35 }
 0x3be   :  { %2465 = vrot.lane.b32.xlu1 %v7047_v12, %s6272_s2  ;;  %2459 = vrot.lane.b32.xlu0 %v7061_v1, %s6272_s2  ;;  %v2374_v4 = vand.u32 2147483647, %v7061_v1 }
 0x3bf   :  { %v2844_v60 = vpop.f32.mrf.mxu0  ;;  %v5897_v63 = vpop.f32.mrf.mxu1  ;;  %v2396_v55 = vadd.f32 %v2395_v20, %v2394_v48  ;;  %v1718_v48 = vsel %vm816_vm5, %v1672_v8, 0.0  ;;  %v2403_v8 = vsel %vm136_vm0, %v2376_v10, 0.0 }
 0x3c0   :  { %v2399_v22 = vsel %vm136_vm0, %v2374_v4, 0.0  ;;  %v3686_v4 = vld [vmem:[#allocation8 + $0x48] sm:$0xff] }
 0x3c1   :  { %v5916_v34 = vpop.f32.mrf.mxu0  ;;  %v7069_v37 = vpop.f32.mrf.mxu1  ;;  %v2398_v63 = vadd.f32 %v2397_v40, %v2396_v55  ;;  %v3685_v55 = vld [vmem:[#allocation8 + $0x40] sm:$0xff] }
 0x3c2   :  { %2461 = vrot.lane.b32.xlu1 %v7069_v37, %s6272_s2  ;;  %v2908_v23 = vpack.c.bf16 %v5916_v34, %v5915_v41  ;;  %v2375_v41 = vand.u32 2147483647, %v7069_v37  ;;  %v1716_v34 = vsel %vm816_vm5, %v1670_v61, 0.0 }
 0x3c3   :  { %v2847_v21 = vpop.f32.mrf.mxu0  ;;  %v5898_v17 = vpop.f32.mrf.mxu1  ;;  %v2400_v5 = vadd.f32 %v2399_v22, %v2398_v63  ;;  %v1717_v29 = vadd.f32 %v1716_v34, %v1715_v49 }
 0x3c4   :  { %v2907_v3 = vpack.c.bf16 %v2847_v21, %v2844_v60  ;;  %v1680_v21 = vpop.permute.xlu0 %1679  ;;  %v2401_v17 = vsel %vm136_vm0, %v2375_v41, 0.0  ;;  %v3687_v41 = vpack.c.bf16 %v3686_v4, %v3685_v55 }
 0x3c5   :  { %v7074_v11 = vpop.f32.mrf.mxu0  ;;  %v7077_v25 = vpop.f32.mrf.mxu1  ;;  %v2402_v61 = vadd.f32 %v2401_v17, %v2400_v5  ;;  %v1724_v5 = vsel %vm816_vm5, %v1678_v6, 0.0  ;;  %v1726_v6 = vsel %vm816_vm5, %v1680_v21, 0.0  ;;  %s6112_s10 = spop %6111 }
 0x3c6   :  { %2467 = vrot.lane.b32.xlu0 %v7077_v25, %s6272_s2  ;;  %5930 = vmatpush3.bf16.msra.mxu1 %v2907_v3  ;;  %v1719_v3 = vadd.f32 %v1718_v48, %v1717_v29  ;;  %s6114_s11 = spop %6113  ;;  %s859_s18 = smul.f32 0.00052083336, %s6112_s10 }
 0x3c7   :  { %v2860_v24 = vpop.f32.mrf.mxu0  ;;  %v5909_v57 = vpop.f32.mrf.mxu1  ;;  %5935 = vmatprep.subr.bf16.mxu1 %v8251_v59  ;;  %v2404_v28 = vadd.f32 %v2403_v8, %v2402_v61  ;;  %s1033_s22 = smul.f32 0.00052083336, %s6114_s11 }
 0x3c8   :  { %v1676_v20 = vpop.permute.xlu0 %1675  ;;  %v2377_v57 = vand.u32 2147483647, %v7047_v12 }
 0x3c9   :  { %v5920_v42 = vpop.f32.mrf.mxu0  ;;  %v7088_v62 = vpop.f32.mrf.mxu1  ;;  %5932 = vmatmul.mubr.msk.bf16.vlgmr.msra.gmra.mxu1 %vm136_vm0, %v7081_v7  ;;  %v1722_v40 = vsel %vm816_vm5, %v1676_v20, 0.0  ;;  %s6116_s12 = spop %6115  ;;  %s8238_s26 = sadd.f32 %s1033_s22, %s859_s18 }
 0x3ca   :  { %2469 = vrot.lane.b32.xlu1 %v7088_v62, %s6272_s2  ;;  %5936 = vmatpush3.bf16.msra.mxu1 %v2908_v23  ;;  %v2405_v22 = vsel %vm136_vm0, %v2377_v57, 0.0  ;;  %s1540_s28 = smul.f32 0.00048828125, %s6116_s12 }
 0x3cb   :  { %v2863_v51 = vpop.f32.mrf.mxu0  ;;  %5937 = vmatprep.mubr.msk.bf16.mxu1 %vm6271_vm1, %v8251_v59  ;;  %v5910_v33 = vpop.f32.mrf.mxu1  ;;  %5941 = vmatprep.subr.bf16.mxu1 %v8251_v59  ;;  %s1035_s8 = smul.f32 0.01, %s8238_s26 }
 0x3cc   :  { %v2909_v54 = vpack.c.bf16 %v2863_v51, %v2860_v24  ;;  %v1720_v24 = vsel %vm816_vm5, %v1674_v15, 0.0  ;;  %v2378_v51 = vand.u32 2147483647, %v7077_v25  ;;  %v2910_v33 = vpack.c.bf16 %v5920_v42, %v7074_v11  ;;  %v1682_v15 = vpop.permute.xlu1 %1681 }
 0x3cd   :  { %v7099_v60 = vpop.f32.mrf.mxu0  ;;  %v1721_v44 = vadd.f32 %v1720_v24, %v1719_v3  ;;  %v2379_v11 = vand.u32 2147483647, %v7088_v62  ;;  %s1036_s26 = sadd.f32 %s1035_s8, %s655_s23 }
 0x3ce   :  { %v2407_v42 = vsel %vm136_vm0, %v2378_v51, 0.0 }
 0x3cf   :  { %v2876_v35 = vpop.f32.mrf.mxu0  ;;  %v1723_v34 = vadd.f32 %v1722_v40, %v1721_v44 }
 0x3d1   :  { %v5924_v19 = vpop.f32.mrf.mxu0  ;;  %5938 = vmatmul.mubr.msk.bf16.vlgmr.msra.gmra.mxu1 %vm136_vm0, %v7081_v7  ;;  %v1725_v17 = vadd.f32 %v1724_v5, %v1723_v34 }
 0x3d2   :  { %5942 = vmatpush3.bf16.msra.mxu1 %v2909_v54  ;;  %5943 = vmatprep.mubr.msk.bf16.mxu1 %vm6271_vm1, %v8251_v59  ;;  %v2409_v54 = vsel %vm136_vm0, %v2379_v11, 0.0  ;;  %v2912_v10 = vpack.c.bf16 %v5924_v19, %v7099_v60  ;;  %v1728_v60 = vsel %vm816_vm5, %v1682_v15, 0.0  ;;  %v1684_v19 = vpop.permute.xlu0 %1683 }
 0x3d3   :  { %v2879_v38 = vpop.f32.mrf.mxu0  ;;  %5947 = vmatprep.subr.bf16.mxu1 %v8251_v59  ;;  %v1727_v48 = vadd.f32 %v1726_v6, %v1725_v17  ;;  %v1730_v61 = vsel %vm816_vm5, %v1684_v19, 0.0 }
 0x3d4   :  { %v2911_v0 = vpack.c.bf16 %v2879_v38, %v2876_v35  ;;  %v2406_v35 = vadd.f32 %v2405_v22, %v2404_v28 }
 0x3d5   :  { %v5927_v2 = vpop.f32.mrf.mxu0 }
 0x3d6   :  { %5954 = vmatpush3.bf16.msra.mxu0 %v2911_v0  ;;  %v2408_v29 = vadd.f32 %v2407_v42, %v2406_v35  ;;  %v1729_v0 = vadd.f32 %v1728_v60, %v1727_v48 }
 0x3d7   :  { %v2892_v32 = vpop.f32.mrf.mxu0  ;;  %5965 = vmatprep.subr.bf16.mxu0 %v8251_v59 }
 0x3d8   :  { %v2410_v38 = vadd.f32 %v2409_v54, %v2408_v29  ;;  %v1731_v21 = vadd.f32 %v1730_v61, %v1729_v0 }
 0x3d9   :  { %v5928_v23 = vpop.f32.mrf.mxu0  ;;  %5956 = vmatmul.mubr.msk.bf16.vlgmr.msra.gmra.mxu0 %vm136_vm0, %v7081_v7  ;;  %5944 = vmatmul.mubr.msk.bf16.vlgmr.msra.gmra.mxu1 %vm136_vm0, %v7081_v7 }
 0x3da   :  { %5967 = vmatprep.mubr.msk.bf16.mxu0 %vm6271_vm1, %v8251_v59  ;;  %5948 = vmatpush3.bf16.msra.mxu1 %v2910_v33  ;;  %v2914_v3 = vpack.c.bf16 %v5928_v23, %v5927_v2 }
 0x3db   :  { %v2895_v49 = vpop.f32.mrf.mxu0  ;;  %5949 = vmatprep.mubr.msk.bf16.mxu1 %vm6271_vm1, %v8251_v59  ;;  %5959 = vmatprep.subr.bf16.mxu1 %v8251_v59 }
 0x3dc   :  { %v2913_v63 = vpack.c.bf16 %v2895_v49, %v2892_v32 }
 0x3de   :  { %5966 = vmatpush3.bf16.msra.mxu0 %v2913_v63 }
 0x3df   :  { %5977 = vmatprep.subr.bf16.mxu0 %v3687_v41 }
 0x3e1   :  { %5968 = vmatmul.mubr.msk.bf16.vlgmr.msra.gmra.mxu0 %vm136_vm0, %v7081_v7  ;;  %5950 = vmatmul.mubr.msk.bf16.vlgmr.msra.gmra.mxu1 %vm136_vm0, %v7081_v7 }
 0x3e2   :  { %5978 = vmatpush3.bf16.msra.mxu0 %v3687_v41  ;;  %5979 = vmatprep.mubr.msk.bf16.mxu0 %vm136_vm0, %v6324_v16 }
 0x3e3   :  { %6019 = vmatprep.subr.bf16.mxu0 %v8251_v59  ;;  %5960 = vmatpush3.bf16.msra.mxu1 %v2912_v10 }
 0x3e4   :  { %5961 = vmatprep.mubr.msk.bf16.mxu1 %vm6271_vm1, %v8251_v59  ;;  %5971 = vmatprep.subr.bf16.mxu1 %v8251_v59 }
 0x3e5   :  { %2411 = vadd.xlane.f32.xlu0 %v2410_v38 }
 0x3e9   :  { %5980 = vmatmul.mubr.msk.bf16.vlgmr.msra.gmra.mxu0 %vm136_vm0, %v6328_v26  ;;  %5962 = vmatmul.mubr.msk.bf16.vlgmr.msra.gmra.mxu1 %vm136_vm0, %v7081_v7 }
 0x3ea   :  { %5983 = vmatprep.mubr.msk.bf16.mxu0 %vm136_vm0, %v6330_v30  ;;  %5972 = vmatpush3.bf16.msra.mxu1 %v2914_v3 }
 0x3eb   :  { %5973 = vmatprep.mubr.msk.bf16.mxu1 %vm6271_vm1, %v8251_v59  ;;  %5995 = vmatprep.subr.bf16.mxu1 %v8251_v59 }
 0x3ee   :  { %1732 = vadd.xlane.f32.xlu1 %v1731_v21 }
 0x3f1   :  { %5984 = vmatmul.mubr.msk.bf16.gmra.mxu0 %vm136_vm0, %v6336_v36  ;;  %5974 = vmatmul.mubr.msk.bf16.vlgmr.msra.gmra.mxu1 %vm136_vm0, %v7081_v7 }
 0x3f2   :  { %5987 = vmatprep.mubr.msk.bf16.mxu0 %vm136_vm0, %v6338_v39  ;;  %5997 = vmatprep.mubr.msk.bf16.mxu1 %vm6271_vm1, %v8251_v59 }
 0x3f9   :  { %5988 = vmatmul.mubr.msk.bf16.gmra.mxu0 %vm136_vm0, %v6344_v50 }
 0x3fa   :  { %5991 = vmatprep.mubr.msk.bf16.mxu0 %vm136_vm0, %v6346_v52 }
 0x401   :  { %5992 = vmatmul.mubr.msk.bf16.gmra.mxu0 %vm136_vm0, %v6352_v58 }
 0x402   :  { %6021 = vmatprep.mubr.msk.bf16.mxu0 %vm6271_vm1, %v8251_v59 }
 0x410   :  { %v2440_v2 = vpop.permute.xlu1 %2439 }
 0x411   :  { %v2487_v24 = vsub.f32 %v6993_v46, %v2440_v2 }
 0x413   :  { %v2503_v20 = vand.u32 2147483647, %v2487_v24 }
 0x414   :  { %v2442_v7 = vpop.permute.xlu0 %2441 }
 0x415   :  { %v2488_v32 = vsub.f32 %v6997_v47, %v2442_v7  ;;  %2535 = vrot.lane.b32.xlu0 %v2503_v20, %s6273_s3 }
 0x417   :  { %v2504_v57 = vand.u32 2147483647, %v2488_v32 }
 0x418   :  { %v2444_v8 = vpop.permute.xlu1 %2443 }
 0x419   :  { %v2489_v28 = vsub.f32 %v7003_v13, %v2444_v8  ;;  %2537 = vrot.lane.b32.xlu1 %v2504_v57, %s6273_s3  ;;  %v1905_v8 = vrot.slane %v7012_v14, 4 }
 0x41b   :  { %v2505_v55 = vand.u32 2147483647, %v2489_v28 }
 0x41c   :  { %v2446_v4 = vpop.permute.xlu1 %2445 }
 0x41d   :  { %v2490_v44 = vsub.f32 %v7010_v31, %v2446_v4  ;;  %2539 = vrot.lane.b32.xlu0 %v2505_v55, %s6273_s3  ;;  %v1906_v4 = vadd.f32 %v1905_v8, %v7012_v14 }
 0x41f   :  { %v2506_v23 = vand.u32 2147483647, %v2490_v44 }
 0x420   :  { %v2448_v51 = vpop.permute.xlu0 %2447 }
 0x421   :  { %v2491_v40 = vsub.f32 %v7020_v53, %v2448_v51  ;;  %2541 = vrot.lane.b32.xlu1 %v2506_v23, %s6273_s3  ;;  %v1907_v51 = vrot.slane %v1906_v4, 2 }
 0x423   :  { %v2507_v33 = vand.u32 2147483647, %v2491_v40 }
 0x424   :  { %v2450_v49 = vpop.permute.xlu1 %2449  ;;  %v2456_v22 = vpop.permute.xlu0 %2455 }
 0x425   :  { %v2492_v41 = vsub.f32 %v7030_v56, %v2450_v49  ;;  %v2495_v63 = vsub.f32 %v7016_v9, %v2456_v22  ;;  %2543 = vrot.lane.b32.xlu0 %v2507_v33, %s6273_s3  ;;  %v1908_v22 = vadd.f32 %v1907_v51, %v1906_v4 }
 0x427   :  { %v2508_v35 = vand.u32 2147483647, %v2492_v41  ;;  %v2511_v34 = vand.u32 2147483647, %v2495_v63 }
 0x428   :  { %v2452_v11 = vpop.permute.xlu0 %2451  ;;  %v2458_v42 = vpop.permute.xlu1 %2457 }
 0x429   :  { %v2493_v5 = vsub.f32 %v7041_v18, %v2452_v11  ;;  %v2496_v29 = vsub.f32 %v7024_v27, %v2458_v42  ;;  %2545 = vrot.lane.b32.xlu1 %v2508_v35, %s6273_s3  ;;  %2551 = vrot.lane.b32.xlu0 %v2511_v34, %s6273_s3  ;;  %v1909_v34 = vrot.slane %v1908_v22, 1 }
 0x42b   :  { %v2509_v17 = vand.u32 2147483647, %v2493_v5  ;;  %v2512_v54 = vand.u32 2147483647, %v2496_v29  ;;  %v1910_v29 = vadd.f32 %v1909_v34, %v1908_v22 }
 0x42c   :  { %v2454_v10 = vpop.permute.xlu1 %2453  ;;  %v2464_v15 = vpop.permute.xlu0 %2463 }
 0x42d   :  { %v2494_v6 = vsub.f32 %v7052_v45, %v2454_v10  ;;  %v2499_v38 = vsub.f32 %v7036_v43, %v2464_v15  ;;  %2553 = vrot.lane.b32.xlu1 %v2512_v54, %s6273_s3  ;;  %2547 = vrot.lane.b32.xlu0 %v2509_v17, %s6273_s3 }
 0x42f   :  { %v2510_v48 = vand.u32 2147483647, %v2494_v6  ;;  %v2515_v60 = vand.u32 2147483647, %v2499_v38 }
 0x430   :  { %v2466_v19 = vpop.permute.xlu1 %2465  ;;  %v2460_v0 = vpop.permute.xlu0 %2459 }
 0x431   :  { %v2500_v61 = vsub.f32 %v7047_v12, %v2466_v19  ;;  %2549 = vrot.lane.b32.xlu1 %v2510_v48, %s6273_s3  ;;  %2559 = vrot.lane.b32.xlu0 %v2515_v60, %s6273_s3  ;;  %v2497_v3 = vsub.f32 %v7061_v1, %v2460_v0 }
 0x433   :  { %v2516_v21 = vand.u32 2147483647, %v2500_v61  ;;  %v2513_v2 = vand.u32 2147483647, %v2497_v3 }
 0x434   :  { %v2462_v24 = vpop.permute.xlu1 %2461 }
 0x435   :  { %v2498_v20 = vsub.f32 %v7069_v37, %v2462_v24  ;;  %2561 = vrot.lane.b32.xlu1 %v2516_v21, %s6273_s3  ;;  %2555 = vrot.lane.b32.xlu0 %v2513_v2, %s6273_s3 }
 0x437   :  { %v2514_v7 = vand.u32 2147483647, %v2498_v20 }
 0x438   :  { %v7199_v32 = vpop.permute.xlu0 %2467 }
 0x439   :  { %2557 = vrot.lane.b32.xlu1 %v2514_v7, %s6273_s3 }
 0x43c   :  { %v7202_v55 = vpop.permute.xlu1 %2469 }
 0x46e   :  { %v2412_v57 = vpop.xlane.xlu0 %2411 }
 0x46f   :  { %v2413_v28 = vrot.slane %v2412_v57, 4 }
 0x471   :  { %v2414_v44 = vadd.f32 %v2413_v28, %v2412_v57 }
 0x473   :  { %v2415_v33 = vrot.slane %v2414_v44, 2 }
 0x475   :  { %v2416_v63 = vadd.f32 %v2415_v33, %v2414_v44 }
 0x477   :  { %v1733_v23 = vpop.xlane.xlu1 %1732  ;;  %v2417_v42 = vrot.slane %v2416_v63, 1 }
 0x478   :  { %v1734_v40 = vrot.slane %v1733_v23, 4 }
 0x479   :  { %v2418_v17 = vadd.f32 %v2417_v42, %v2416_v63  ;;  %v3689_v42 = vld [vmem:[#allocation7 + $0x40] sm:$0xff] }
 0x47a   :  { %v1735_v49 = vadd.f32 %v1734_v40, %v1733_v23 }
 0x47c   :  { %v1736_v41 = vrot.slane %v1735_v49, 2 }
 0x47e   :  { %v1737_v35 = vadd.f32 %v1736_v41, %v1735_v49 }
 0x480   :  { %v1738_v11 = vrot.slane %v1737_v35, 1 }
 0x482   :  { %v1739_v5 = vadd.f32 %v1738_v11, %v1737_v35 }
 0x484   :  { %6117 = vpush %v1739_v5  ;;  %v3690_v5 = vld [vmem:[#allocation7 + $0x48] sm:$0xff] }
 0x485   :  { %6119 = vpush %v1910_v29 }
 0x486   :  { %6121 = vpush %v2418_v17 }
 0x489   :  { %v7205_v14 = vpop.f32.mrf.mxu1 }
 0x48a   :  { %3321 = vrot.lane.b32.xlu0 %v7205_v14, %s6272_s2 }
 0x48b   :  { %v5933_v54 = vpop.f32.mrf.mxu1 }
 0x48d   :  { %v7209_v10 = vpop.f32.mrf.mxu1 }
 0x48e   :  { %3323 = vrot.lane.b32.xlu1 %v7209_v10, %s6272_s2 }
 0x48f   :  { %v5934_v15 = vpop.f32.mrf.mxu1 }
 0x491   :  { %v7213_v6 = vpop.f32.mrf.mxu1 }
 0x492   :  { %8304 = vst [vmem:[#allocation15_spill] sm:$0xff] %v7213_v6  ;;  %3325 = vrot.lane.b32.xlu0 %v7213_v6, %s6272_s2 }
 0x493   :  { %v5939_v38 = vpop.f32.mrf.mxu1 }
 0x495   :  { %v7217_v48 = vpop.f32.mrf.mxu1 }
 0x496   :  { %8305 = vst [vmem:[#allocation16_spill] sm:$0xff] %v7217_v48  ;;  %3327 = vrot.lane.b32.xlu1 %v7217_v48, %s6272_s2 }
 0x497   :  { %v5940_v60 = vpop.f32.mrf.mxu1 }
 0x498   :  { %v7265_v60 = vpack.c.bf16 %v3690_v5, %v3689_v42  ;;  %v4568_v42 = vld [vmem:[#allocation8 + $0x58] sm:$0xff] }
 0x499   :  { %v7221_v19 = vpop.f32.mrf.mxu0  ;;  %v7223_v0 = vpop.f32.mrf.mxu1 }
 0x49a   :  { %8306 = vst [vmem:[#allocation17_spill] sm:$0xff] %v7221_v19  ;;  %8307 = vst [vmem:[#allocation18_spill] sm:$0xff] %v7223_v0  ;;  %3329 = vrot.lane.b32.xlu1 %v7223_v0, %s6272_s2 }
 0x49b   :  { %v5957_v61 = vpop.f32.mrf.mxu0  ;;  %v5945_v3 = vpop.f32.mrf.mxu1 }
 0x49d   :  { %v7227_v21 = vpop.f32.mrf.mxu0  ;;  %v7229_v2 = vpop.f32.mrf.mxu1 }
 0x49e   :  { %8308 = vst [vmem:[#allocation19_spill] sm:$0xff] %v7229_v2  ;;  %3331 = vrot.lane.b32.xlu0 %v7229_v2, %s6272_s2  ;;  %3337 = vrot.lane.b32.xlu1 %v7221_v19, %s6272_s2 }
 0x49f   :  { %v5958_v24 = vpop.f32.mrf.mxu0  ;;  %v5946_v20 = vpop.f32.mrf.mxu1 }
 0x4a1   :  { %v7235_v7 = vpop.f32.mrf.mxu0  ;;  %v7237_v57 = vpop.f32.mrf.mxu1 }
 0x4a2   :  { %8309 = vst [vmem:[#allocation20_spill] sm:$0xff] %v7237_v57  ;;  %3333 = vrot.lane.b32.xlu1 %v7237_v57, %s6272_s2  ;;  %3339 = vrot.lane.b32.xlu0 %v7227_v21, %s6272_s2 }
 0x4a3   :  { %v5969_v8 = vpop.f32.mrf.mxu0  ;;  %v5951_v28 = vpop.f32.mrf.mxu1 }
 0x4a5   :  { %v7243_v4 = vpop.f32.mrf.mxu0  ;;  %v7245_v44 = vpop.f32.mrf.mxu1 }
 0x4a6   :  { %8310 = vst [vmem:[#allocation21_spill] sm:$0xff] %v7245_v44  ;;  %3335 = vrot.lane.b32.xlu0 %v7245_v44, %s6272_s2  ;;  %3345 = vrot.lane.b32.xlu1 %v7235_v7, %s6272_s2 }
 0x4a7   :  { %v5970_v23 = vpop.f32.mrf.mxu0  ;;  %v5952_v51 = vpop.f32.mrf.mxu1 }
 0x4a9   :  { %v5981_v40 = vpop.f32.mrf.mxu0  ;;  %v7251_v33 = vpop.f32.mrf.mxu1 }
 0x4aa   :  { %3347 = vrot.lane.b32.xlu0 %v7243_v4, %s6272_s2  ;;  %3341 = vrot.lane.b32.xlu1 %v7251_v33, %s6272_s2 }
 0x4ab   :  { %v3726_v49 = vpop.f32.mrf.mxu0  ;;  %v5963_v22 = vpop.f32.mrf.mxu1 }
 0x4ad   :  { %v5982_v41 = vpop.f32.mrf.mxu0  ;;  %v7257_v63 = vpop.f32.mrf.mxu1 }
 0x4ae   :  { %3343 = vrot.lane.b32.xlu0 %v7257_v63, %s6272_s2  ;;  %v3790_v24 = vpack.c.bf16 %v5982_v41, %v5981_v40 }
 0x4af   :  { %v3729_v35 = vpop.f32.mrf.mxu0  ;;  %v5964_v34 = vpop.f32.mrf.mxu1 }
 0x4b0   :  { %v3789_v54 = vpack.c.bf16 %v3729_v35, %v3726_v49  ;;  %v4567_v34 = vld [vmem:[#allocation8 + $0x50] sm:$0xff] }
 0x4b1   :  { %v5985_v11 = vpop.f32.mrf.mxu0  ;;  %v7261_v29 = vpop.f32.mrf.mxu1 }
 0x4b2   :  { %3349 = vrot.lane.b32.xlu1 %v7261_v29, %s6272_s2  ;;  %5996 = vmatpush3.bf16.msra.mxu1 %v3789_v54 }
 0x4b3   :  { %v3742_v17 = vpop.f32.mrf.mxu0  ;;  %v5975_v15 = vpop.f32.mrf.mxu1  ;;  %6001 = vmatprep.subr.bf16.mxu1 %v8251_v59 }
 0x4b4   :  { %v4569_v15 = vpack.c.bf16 %v4568_v42, %v4567_v34 }
 0x4b5   :  { %v5986_v38 = vpop.f32.mrf.mxu0  ;;  %v7267_v61 = vpop.f32.mrf.mxu1  ;;  %5998 = vmatmul.mubr.msk.bf16.vlgmr.msra.gmra.mxu1 %vm136_vm0, %v7265_v60  ;;  %s6118_s13 = spop %6117 }
 0x4b6   :  { %8311 = vst [vmem:[#allocation22_spill] sm:$0xff] %v7267_v61  ;;  %3351 = vrot.lane.b32.xlu0 %v7267_v61, %s6272_s2  ;;  %6002 = vmatpush3.bf16.msra.mxu1 %v3790_v24  ;;  %s6120_s14 = spop %6119  ;;  %s1743_s15 = smul.f32 0.00052083336, %s6118_s13 }
 0x4b7   :  { %v3745_v3 = vpop.f32.mrf.mxu0  ;;  %v5976_v8 = vpop.f32.mrf.mxu1  ;;  %6003 = vmatprep.mubr.msk.bf16.mxu1 %vm6271_vm1, %v8251_v59  ;;  %6007 = vmatprep.subr.bf16.mxu1 %v8251_v59  ;;  %s1914_s16 = smul.f32 0.00052083336, %s6120_s14  ;;  %s6122_s17 = spop %6121 }
 0x4b8   :  { %v3791_v49 = vpack.c.bf16 %v3745_v3, %v3742_v17  ;;  %v3792_v17 = vpack.c.bf16 %v5986_v38, %v5985_v11  ;;  %v7306_v38 = vpop.permute.xlu0 %2535  ;;  %v7310_v3 = vpop.permute.xlu1 %2537 }
 0x4b9   :  { %v5989_v20 = vpop.f32.mrf.mxu0  ;;  %8312 = vst [vmem:[#allocation23_spill] sm:$0xff] %v7310_v3  ;;  %s1915_s20 = sadd.f32 %s1914_s16, %s1743_s15 }
 0x4bb   :  { %v3758_v28 = vpop.f32.mrf.mxu0  ;;  %s1916_s25 = smul.f32 0.01, %s1915_s20 }
 0x4bd   :  { %v5990_v23 = vpop.f32.mrf.mxu0  ;;  %6004 = vmatmul.mubr.msk.bf16.vlgmr.msra.gmra.mxu1 %vm136_vm0, %v7265_v60  ;;  %s1917_s0 = sadd.f32 %s1916_s25, %s1540_s28 }
 0x4be   :  { %6008 = vmatpush3.bf16.msra.mxu1 %v3791_v49  ;;  %6009 = vmatprep.mubr.msk.bf16.mxu1 %vm6271_vm1, %v8251_v59  ;;  %v3794_v11 = vpack.c.bf16 %v5990_v23, %v5989_v20 }
 0x4bf   :  { %v3761_v51 = vpop.f32.mrf.mxu0  ;;  %6013 = vmatprep.subr.bf16.mxu1 %v8251_v59  ;;  %s1918_s10 = smul.f32 0.12, %s1917_s0 }
 0x4c0   :  { %v3793_v22 = vpack.c.bf16 %v3761_v51, %v3758_v28 }
 0x4c1   :  { %v5993_v40 = vpop.f32.mrf.mxu0 }
 0x4c2   :  { %6020 = vmatpush3.bf16.msra.mxu0 %v3793_v22 }
 0x4c3   :  { %v3774_v41 = vpop.f32.mrf.mxu0  ;;  %6031 = vmatprep.subr.bf16.mxu0 %v8251_v59 }
 0x4c5   :  { %v5994_v35 = vpop.f32.mrf.mxu0  ;;  %6022 = vmatmul.mubr.msk.bf16.vlgmr.msra.gmra.mxu0 %vm136_vm0, %v7265_v60  ;;  %6010 = vmatmul.mubr.msk.bf16.vlgmr.msra.gmra.mxu1 %vm136_vm0, %v7265_v60 }
 0x4c6   :  { %6033 = vmatprep.mubr.msk.bf16.mxu0 %vm6271_vm1, %v8251_v59  ;;  %6014 = vmatpush3.bf16.msra.mxu1 %v3792_v17 }
 0x4c7   :  { %v3777_v5 = vpop.f32.mrf.mxu0  ;;  %6015 = vmatprep.mubr.msk.bf16.mxu1 %vm6271_vm1, %v8251_v59  ;;  %6025 = vmatprep.subr.bf16.mxu1 %v8251_v59 }
 0x4c8   :  { %v3795_v54 = vpack.c.bf16 %v3777_v5, %v3774_v41 }
 0x4ca   :  { %6032 = vmatpush3.bf16.msra.mxu0 %v3795_v54 }
 0x4cb   :  { %6043 = vmatprep.subr.bf16.mxu0 %v4569_v15 }
 0x4cd   :  { %6034 = vmatmul.mubr.msk.bf16.vlgmr.msra.gmra.mxu0 %vm136_vm0, %v7265_v60  ;;  %6016 = vmatmul.mubr.msk.bf16.vlgmr.msra.gmra.mxu1 %vm136_vm0, %v7265_v60 }
 0x4ce   :  { %6044 = vmatpush3.bf16.msra.mxu0 %v4569_v15  ;;  %6045 = vmatprep.mubr.msk.bf16.mxu0 %vm136_vm0, %v6324_v16  ;;  %v3796_v16 = vpack.c.bf16 %v5994_v35, %v5993_v40 }
 0x4cf   :  { %6085 = vmatprep.subr.bf16.mxu0 %v8251_v59  ;;  %6026 = vmatpush3.bf16.msra.mxu1 %v3794_v11 }
 0x4d0   :  { %6027 = vmatprep.mubr.msk.bf16.mxu1 %vm6271_vm1, %v8251_v59  ;;  %6037 = vmatprep.subr.bf16.mxu1 %v8251_v59 }
 0x4d5   :  { %6046 = vmatmul.mubr.msk.bf16.vlgmr.msra.gmra.mxu0 %vm136_vm0, %v6328_v26  ;;  %6028 = vmatmul.mubr.msk.bf16.vlgmr.msra.gmra.mxu1 %vm136_vm0, %v7265_v60  ;;  %v7317_v26 = vpop.permute.xlu0 %2539 }
 0x4d6   :  { %6049 = vmatprep.mubr.msk.bf16.mxu0 %vm136_vm0, %v6330_v30  ;;  %6038 = vmatpush3.bf16.msra.mxu1 %v3796_v16  ;;  %8313 = vst [vmem:[#allocation24_spill] sm:$0xff] %v7317_v26  ;;  %v7321_v30 = vpop.permute.xlu1 %2541 }
 0x4d7   :  { %6039 = vmatprep.mubr.msk.bf16.mxu1 %vm6271_vm1, %v8251_v59  ;;  %6061 = vmatprep.subr.bf16.mxu1 %v8251_v59  ;;  %8314 = vst [vmem:[#allocation25_spill] sm:$0xff] %v7321_v30 }
 0x4d9   :  { %v7327_v24 = vpop.permute.xlu0 %2543 }
 0x4da   :  { %8315 = vst [vmem:[#allocation26_spill] sm:$0xff] %v7327_v24  ;;  %v7331_v20 = vpop.permute.xlu1 %2545 }
 0x4db   :  { %8316 = vst [vmem:[#allocation27_spill] sm:$0xff] %v7331_v20 }
 0x4dd   :  { %6050 = vmatmul.mubr.msk.bf16.gmra.mxu0 %vm136_vm0, %v6336_v36  ;;  %6040 = vmatmul.mubr.msk.bf16.vlgmr.msra.gmra.mxu1 %vm136_vm0, %v7265_v60  ;;  %v7335_v36 = vpop.permute.xlu0 %2551 }
 0x4de   :  { %6053 = vmatprep.mubr.msk.bf16.mxu0 %vm136_vm0, %v6338_v39  ;;  %6063 = vmatprep.mubr.msk.bf16.mxu1 %vm6271_vm1, %v8251_v59  ;;  %8317 = vst [vmem:[#allocation28_spill] sm:$0xff] %v7335_v36  ;;  %v7337_v39 = vpop.permute.xlu1 %2553 }
 0x4df   :  { %8318 = vst [vmem:[#allocation29_spill] sm:$0xff] %v7337_v39 }
 0x4e1   :  { %v7343_v60 = vpop.permute.xlu0 %2547 }
 0x4e2   :  { %8319 = vst [vmem:[#allocation30_spill] sm:$0xff] %v7343_v60  ;;  %v7345_v8 = vpop.permute.xlu1 %2549 }
 0x4e3   :  { %8320 = vst [vmem:[#allocation31_spill] sm:$0xff] %v7345_v8 }
 0x4e5   :  { %6054 = vmatmul.mubr.msk.bf16.gmra.mxu0 %vm136_vm0, %v6344_v50  ;;  %v7347_v50 = vpop.permute.xlu0 %2559 }
 0x4e6   :  { %6057 = vmatprep.mubr.msk.bf16.mxu0 %vm136_vm0, %v6346_v52  ;;  %8321 = vst [vmem:[#allocation32_spill] sm:$0xff] %v7347_v50  ;;  %v7349_v28 = vpop.permute.xlu1 %2561 }
 0x4e7   :  { %8322 = vst [vmem:[#allocation33_spill] sm:$0xff] %v7349_v28 }
 0x4e9   :  { %v7351_v23 = vpop.permute.xlu0 %2555 }
 0x4ea   :  { %8323 = vst [vmem:[#allocation34_spill] sm:$0xff] %v7351_v23  ;;  %v7353_v52 = vpop.permute.xlu1 %2557 }
 0x4eb   :  { %8324 = vst [vmem:[#allocation35_spill] sm:$0xff] %v7353_v52 }
 0x4ed   :  { %6058 = vmatmul.mubr.msk.bf16.gmra.mxu0 %vm136_vm0, %v6352_v58 }
 0x4ee   :  { %6087 = vmatprep.mubr.msk.bf16.mxu0 %vm6271_vm1, %v8251_v59 }
 0x4fc   :  { %v3322_v51 = vpop.permute.xlu0 %3321 }
 0x4fd   :  { %v3369_v49 = vsub.f32 %v7205_v14, %v3322_v51 }
 0x4ff   :  { %v3385_v22 = vand.u32 2147483647, %v3369_v49 }
 0x500   :  { %v3324_v58 = vpop.permute.xlu1 %3323 }
 0x501   :  { %v3370_v40 = vsub.f32 %v7209_v10, %v3324_v58  ;;  %3417 = vrot.lane.b32.xlu0 %v3385_v22, %s6273_s3 }
 0x503   :  { %v3386_v41 = vand.u32 2147483647, %v3370_v40 }
 0x504   :  { %v3326_v35 = vpop.permute.xlu0 %3325 }
 0x505   :  { %3419 = vrot.lane.b32.xlu1 %v3386_v41, %s6273_s3  ;;  %v3371_v34 = vsub.f32 %v7213_v6, %v3326_v35  ;;  %v8338_v6 = vmov 0.0  }
 0x507   :  { %v3387_v42 = vand.u32 2147483647, %v3371_v34 }
 0x508   :  { %v3328_v5 = vpop.permute.xlu1 %3327 }
 0x509   :  { %v3372_v17 = vsub.f32 %v7217_v48, %v3328_v5  ;;  %3421 = vrot.lane.b32.xlu0 %v3387_v42, %s6273_s3 }
 0x50b   :  { %v3388_v54 = vand.u32 2147483647, %v3372_v17 }
 0x50c   :  { %v3330_v15 = vpop.permute.xlu1 %3329 }
 0x50d   :  { %v3373_v11 = vsub.f32 %v7223_v0, %v3330_v15  ;;  %3423 = vrot.lane.b32.xlu1 %v3388_v54, %s6273_s3 }
 0x50f   :  { %v3389_v16 = vand.u32 2147483647, %v3373_v11 }
 0x510   :  { %v3332_v51 = vpop.permute.xlu0 %3331  ;;  %v3338_v49 = vpop.permute.xlu1 %3337 }
 0x511   :  { %v3374_v22 = vsub.f32 %v7229_v2, %v3332_v51  ;;  %v3377_v58 = vsub.f32 %v7221_v19, %v3338_v49  ;;  %3425 = vrot.lane.b32.xlu1 %v3389_v16, %s6273_s3 }
 0x513   :  { %v3390_v40 = vand.u32 2147483647, %v3374_v22  ;;  %v3393_v41 = vand.u32 2147483647, %v3377_v58 }
 0x514   :  { %v3334_v35 = vpop.permute.xlu1 %3333  ;;  %v7367_v34 = vpop.permute.xlu0 %3339 }
 0x515   :  { %v3375_v42 = vsub.f32 %v7237_v57, %v3334_v35  ;;  %3433 = vrot.lane.b32.xlu1 %v3393_v41, %s6273_s3  ;;  %3427 = vrot.lane.b32.xlu0 %v3390_v40, %s6273_s3 }
 0x517   :  { %v3391_v5 = vand.u32 2147483647, %v3375_v42 }
 0x518   :  { %v3336_v17 = vpop.permute.xlu0 %3335  ;;  %v7377_v16 = vpop.permute.xlu1 %3345 }
 0x519   :  { %v3376_v54 = vsub.f32 %v7245_v44, %v3336_v17  ;;  %3429 = vrot.lane.b32.xlu1 %v3391_v5, %s6273_s3 }
 0x51b   :  { %v3392_v15 = vand.u32 2147483647, %v3376_v54 }
 0x51c   :  { %v7375_v11 = vpop.permute.xlu0 %3347  ;;  %v7381_v49 = vpop.permute.xlu1 %3341 }
 0x51d   :  { %3431 = vrot.lane.b32.xlu0 %v3392_v15, %s6273_s3 }
 0x520   :  { %v7379_v51 = vpop.permute.xlu0 %3343 }
 0x524   :  { %v7385_v58 = vpop.permute.xlu1 %3349 }
 0x528   :  { %v7383_v22 = vpop.permute.xlu0 %3351 }
 0x529   :  { %8325 = vst [vmem:[#allocation36_spill] sm:$0xff] %v7383_v22 }
 0x573   :  { %v3418_v40 = vpop.permute.xlu0 %3417 }
 0x574   :  { %v3465_v41 = vsel %vm816_vm5, %v3418_v40, 0.0 }
 0x575   :  { %v7388_v35 = vpop.f32.mrf.mxu1 }
 0x576   :  { %8326 = vst [vmem:[#allocation37_spill] sm:$0xff] %v7388_v35  ;;  %4203 = vrot.lane.b32.xlu1 %v7388_v35, %s6272_s2 }
 0x577   :  { %v3420_v42 = vpop.permute.xlu1 %3419  ;;  %v5999_v17 = vpop.f32.mrf.mxu1 }
 0x578   :  { %v3466_v5 = vsel %vm816_vm5, %v3420_v42, 0.0 }
 0x579   :  { %v3467_v54 = vadd.f32 %v3466_v5, %v3465_v41  ;;  %v7393_v15 = vpop.f32.mrf.mxu1 }
 0x57a   :  { %8327 = vst [vmem:[#allocation38_spill] sm:$0xff] %v7393_v15  ;;  %4205 = vrot.lane.b32.xlu0 %v7393_v15, %s6272_s2 }
 0x57b   :  { %v3422_v59 = vpop.permute.xlu0 %3421  ;;  %v6000_v50 = vpop.f32.mrf.mxu1 }
 0x57c   :  { %v3468_v28 = vsel %vm816_vm5, %v3422_v59, 0.0 }
 0x57d   :  { %v3469_v40 = vadd.f32 %v3468_v28, %v3467_v54  ;;  %v7398_v52 = vpop.f32.mrf.mxu1 }
 0x57e   :  { %8328 = vst [vmem:[#allocation39_spill] sm:$0xff] %v7398_v52  ;;  %4207 = vrot.lane.b32.xlu0 %v7398_v52, %s6272_s2 }
 0x57f   :  { %v3424_v23 = vpop.permute.xlu1 %3423  ;;  %v6005_v17 = vpop.f32.mrf.mxu1 }
 0x580   :  { %v3470_v42 = vsel %vm816_vm5, %v3424_v23, 0.0 }
 0x581   :  { %v3471_v41 = vadd.f32 %v3470_v42, %v3469_v40  ;;  %v7403_v5 = vpop.f32.mrf.mxu1 }
 0x582   :  { %8329 = vst [vmem:[#allocation40_spill] sm:$0xff] %v7403_v5  ;;  %4209 = vrot.lane.b32.xlu0 %v7403_v5, %s6272_s2 }
 0x583   :  { %v3426_v39 = vpop.permute.xlu1 %3425  ;;  %v6006_v59 = vpop.f32.mrf.mxu1 }
 0x584   :  { %v3472_v50 = vsel %vm816_vm5, %v3426_v39, 0.0 }
 0x585   :  { %v7407_v8 = vpop.f32.mrf.mxu0  ;;  %v7410_v54 = vpop.f32.mrf.mxu1  ;;  %v3473_v36 = vadd.f32 %v3472_v50, %v3471_v41 }
 0x586   :  { %8330 = vst [vmem:[#allocation41_spill] sm:$0xff] %v7407_v8  ;;  %8331 = vst [vmem:[#allocation42_spill] sm:$0xff] %v7410_v54  ;;  %4211 = vrot.lane.b32.xlu1 %v7410_v54, %s6272_s2 }
 0x587   :  { %v6023_v28 = vpop.f32.mrf.mxu0  ;;  %v3428_v40 = vpop.permute.xlu0 %3427 }
 0x588   :  { %v3434_v42 = vpop.permute.xlu1 %3433  ;;  %v6011_v17 = vpop.f32.mrf.mxu1  ;;  %v3474_v60 = vsel %vm816_vm5, %v3428_v40, 0.0 }
 0x589   :  { %v7414_v23 = vpop.f32.mrf.mxu0  ;;  %v3475_v59 = vadd.f32 %v3474_v60, %v3473_v36 }
 0x58a   :  { %8332 = vst [vmem:[#allocation43_spill] sm:$0xff] %v7414_v23  ;;  %v7417_v22 = vpop.f32.mrf.mxu1  ;;  %4219 = vrot.lane.b32.xlu1 %v7407_v8, %s6272_s2 }
 0x58b   :  { %v6024_v61 = vpop.f32.mrf.mxu0  ;;  %8333 = vst [vmem:[#allocation44_spill] sm:$0xff] %v7417_v22  ;;  %4213 = vrot.lane.b32.xlu0 %v7417_v22, %s6272_s2 }
 0x58c   :  { %v6012_v28 = vpop.f32.mrf.mxu1  ;;  %v3430_v20 = vpop.permute.xlu1 %3429 }
 0x58d   :  { %v7423_v39 = vpop.f32.mrf.mxu0  ;;  %v3476_v41 = vsel %vm816_vm5, %v3430_v20, 0.0 }
 0x58e   :  { %v7425_v44 = vpop.f32.mrf.mxu1  ;;  %v3477_v57 = vadd.f32 %v3476_v41, %v3475_v59 }
 0x58f   :  { %v6035_v19 = vpop.f32.mrf.mxu0  ;;  %8334 = vst [vmem:[#allocation45_spill] sm:$0xff] %v7425_v44  ;;  %4215 = vrot.lane.b32.xlu1 %v7425_v44, %s6272_s2  ;;  %4221 = vrot.lane.b32.xlu0 %v7414_v23, %s6272_s2  ;;  %v3432_v50 = vpop.permute.xlu0 %3431 }
 0x590   :  { %v6017_v40 = vpop.f32.mrf.mxu1  ;;  %v3478_v19 = vsel %vm816_vm5, %v3432_v50, 0.0  ;;  %v4571_v50 = vld [vmem:[#allocation7 + $0x50] sm:$0xff] }
 0x591   :  { %v7432_v61 = vpop.f32.mrf.mxu0  ;;  %v3479_v24 = vadd.f32 %v3478_v19, %v3477_v57  ;;  %v4572_v40 = vld [vmem:[#allocation7 + $0x58] sm:$0xff] }
 0x592   :  { %8335 = vst [vmem:[#allocation46_spill] sm:$0xff] %v7432_v61  ;;  %v7434_v36 = vpop.f32.mrf.mxu1  ;;  %v4573_v19 = vpack.c.bf16 %v4572_v40, %v4571_v50 }
 0x593   :  { %v6036_v17 = vpop.f32.mrf.mxu0  ;;  %8336 = vst [vmem:[#allocation47_spill] sm:$0xff] %v7434_v36  ;;  %4217 = vrot.lane.b32.xlu0 %v7434_v36, %s6272_s2  ;;  %4227 = vrot.lane.b32.xlu1 %v7423_v39, %s6272_s2 }
 0x594   :  { %v6018_v60 = vpop.f32.mrf.mxu1  ;;  %v3480_v17 = vsel %vm816_vm5, %v3434_v42, 0.0 }
 0x595   :  { %v6047_v20 = vpop.f32.mrf.mxu0  ;;  %v7450_v26 = vadd.f32 %v3480_v17, %v3479_v24 }
 0x596   :  { %v7441_v2 = vpop.f32.mrf.mxu1 }
 0x597   :  { %v4608_v28 = vpop.f32.mrf.mxu0  ;;  %4229 = vrot.lane.b32.xlu0 %v7432_v61, %s6272_s2  ;;  %4223 = vrot.lane.b32.xlu1 %v7441_v2, %s6272_s2  ;;  %8337 = vst [vmem:[#allocation48_spill] sm:$0xff] %v7450_v26 }
 0x598   :  { %v6029_v41 = vpop.f32.mrf.mxu1 }
 0x599   :  { %v6048_v59 = vpop.f32.mrf.mxu0 }
 0x59a   :  { %v7448_v30 = vpop.f32.mrf.mxu1  ;;  %v4672_v41 = vpack.c.bf16 %v6048_v59, %v6047_v20 }
 0x59b   :  { %v4611_v0 = vpop.f32.mrf.mxu0  ;;  %4225 = vrot.lane.b32.xlu0 %v7448_v30, %s6272_s2 }
 0x59c   :  { %v4671_v60 = vpack.c.bf16 %v4611_v0, %v4608_v28  ;;  %v6030_v61 = vpop.f32.mrf.mxu1 }
 0x59d   :  { %v6051_v57 = vpop.f32.mrf.mxu0 }
 0x59e   :  { %6062 = vmatpush3.bf16.msra.mxu1 %v4671_v60  ;;  %v7455_v3 = vpop.f32.mrf.mxu1 }
 0x59f   :  { %v4624_v48 = vpop.f32.mrf.mxu0  ;;  %6067 = vmatprep.subr.bf16.mxu1 %v8338_v6  ;;  %8339 = vst [vmem:[#allocation49_spill] sm:$0xff] %v7455_v3  ;;  %4231 = vrot.lane.b32.xlu1 %v7455_v3, %s6272_s2 }
 0x5a0   :  { %v6041_v0 = vpop.f32.mrf.mxu1 }
 0x5a1   :  { %v6052_v42 = vpop.f32.mrf.mxu0  ;;  %6064 = vmatmul.mubr.msk.bf16.vlgmr.msra.gmra.mxu1 %vm136_vm0, %v4573_v19 }
 0x5a2   :  { %6068 = vmatpush3.bf16.msra.mxu1 %v4672_v41  ;;  %6069 = vmatprep.mubr.msk.bf16.mxu1 %vm6271_vm1, %v8338_v6  ;;  %v7463_v61 = vpop.f32.mrf.mxu1  ;;  %v4674_v26 = vpack.c.bf16 %v6052_v42, %v6051_v57 }
 0x5a3   :  { %v4627_v24 = vpop.f32.mrf.mxu0  ;;  %6073 = vmatprep.subr.bf16.mxu1 %v8338_v6  ;;  %8340 = vst [vmem:[#allocation50_spill] sm:$0xff] %v7463_v61  ;;  %4233 = vrot.lane.b32.xlu1 %v7463_v61, %s6272_s2 }
 0x5a4   :  { %v6042_v20 = vpop.f32.mrf.mxu1  ;;  %v4673_v50 = vpack.c.bf16 %v4627_v24, %v4624_v48 }
 0x5a5   :  { %v6055_v28 = vpop.f32.mrf.mxu0 }
 0x5a7   :  { %v4640_v59 = vpop.f32.mrf.mxu0 }
 0x5a9   :  { %v6056_v40 = vpop.f32.mrf.mxu0  ;;  %6070 = vmatmul.mubr.msk.bf16.vlgmr.msra.gmra.mxu1 %vm136_vm0, %v4573_v19 }
 0x5aa   :  { %6074 = vmatpush3.bf16.msra.mxu1 %v4673_v50  ;;  %6075 = vmatprep.mubr.msk.bf16.mxu1 %vm6271_vm1, %v8338_v6 }
 0x5ab   :  { %v4643_v17 = vpop.f32.mrf.mxu0  ;;  %6079 = vmatprep.subr.bf16.mxu1 %v8338_v6 }
 0x5ac   :  { %v4675_v60 = vpack.c.bf16 %v4643_v17, %v4640_v59  ;;  %v4676_v59 = vpack.c.bf16 %v6056_v40, %v6055_v28 }
 0x5ad   :  { %v6059_v41 = vpop.f32.mrf.mxu0 }
 0x5ae   :  { %6086 = vmatpush3.bf16.msra.mxu0 %v4675_v60 }
 0x5af   :  { %v4656_v0 = vpop.f32.mrf.mxu0  ;;  %6097 = vmatprep.subr.bf16.mxu0 %v8338_v6 }
 0x5b1   :  { %6076 = vmatmul.mubr.msk.bf16.vlgmr.msra.gmra.mxu1 %vm136_vm0, %v4573_v19  ;;  %v6060_v48 = vpop.f32.mrf.mxu0  ;;  %6088 = vmatmul.mubr.msk.bf16.vlgmr.msra.gmra.mxu0 %vm136_vm0, %v4573_v19 }
 0x5b2   :  { %6080 = vmatpush3.bf16.msra.mxu1 %v4674_v26  ;;  %6081 = vmatprep.mubr.msk.bf16.mxu1 %vm6271_vm1, %v8338_v6  ;;  %v4678_v26 = vpack.c.bf16 %v6060_v48, %v6059_v41 }
 0x5b3   :  { %v4659_v24 = vpop.f32.mrf.mxu0  ;;  %6091 = vmatprep.subr.bf16.mxu1 %v8338_v6  ;;  %6099 = vmatprep.mubr.msk.bf16.mxu0 %vm6271_vm1, %v8338_v6 }
 0x5b4   :  { %v4677_v20 = vpack.c.bf16 %v4659_v24, %v4656_v0 }
 0x5b6   :  { %6098 = vmatpush3.bf16.msra.mxu0 %v4677_v20 }
 0x5b9   :  { %6082 = vmatmul.mubr.msk.bf16.vlgmr.msra.gmra.mxu1 %vm136_vm0, %v4573_v19  ;;  %6100 = vmatmul.mubr.msk.bf16.vlgmr.msra.gmra.mxu0 %vm136_vm0, %v4573_v19 }
 0x5ba   :  { %6092 = vmatpush3.bf16.msra.mxu1 %v4676_v59  ;;  %6093 = vmatprep.mubr.msk.bf16.mxu1 %vm6271_vm1, %v8338_v6 }
 0x5bb   :  { %6103 = vmatprep.subr.bf16.mxu1 %v8338_v6 }
 0x5c1   :  { %6094 = vmatmul.mubr.msk.bf16.vlgmr.msra.gmra.mxu1 %vm136_vm0, %v4573_v19 }
 0x5c2   :  { %6104 = vmatpush3.bf16.msra.mxu1 %v4678_v26  ;;  %6105 = vmatprep.mubr.msk.bf16.mxu1 %vm6271_vm1, %v8338_v6 }
 0x5c9   :  { %6106 = vmatmul.mubr.msk.bf16.vlgmr.msra.gmra.mxu1 %vm136_vm0, %v4573_v19 }
 0x5e8   :  { %v4204_v57 = vpop.permute.xlu1 %4203 }
 0x5e9   :  { %v4251_v42 = vsub.f32 %v7388_v35, %v4204_v57 }
 0x5eb   :  { %v4267_v28 = vand.u32 2147483647, %v4251_v42 }
 0x5ec   :  { %v4206_v50 = vpop.permute.xlu0 %4205 }
 0x5ed   :  { %v4252_v40 = vsub.f32 %v7393_v15, %v4206_v50  ;;  %4299 = vrot.lane.b32.xlu1 %v4267_v28, %s6273_s3 }
 0x5ef   :  { %v4268_v17 = vand.u32 2147483647, %v4252_v40 }
 0x5f0   :  { %v4208_v60 = vpop.permute.xlu0 %4207 }
 0x5f1   :  { %v4253_v41 = vsub.f32 %v7398_v52, %v4208_v60  ;;  %4301 = vrot.lane.b32.xlu0 %v4268_v17, %s6273_s3 }
 0x5f3   :  { %v4269_v0 = vand.u32 2147483647, %v4253_v41 }
 0x5f4   :  { %v4210_v48 = vpop.permute.xlu0 %4209 }
 0x5f5   :  { %v4254_v6 = vsub.f32 %v7403_v5, %v4210_v48  ;;  %4303 = vrot.lane.b32.xlu0 %v4269_v0, %s6273_s3 }
 0x5f7   :  { %v4270_v19 = vand.u32 2147483647, %v4254_v6 }
 0x5f8   :  { %v4212_v24 = vpop.permute.xlu1 %4211 }
 0x5f9   :  { %v4255_v20 = vsub.f32 %v7410_v54, %v4212_v24  ;;  %4305 = vrot.lane.b32.xlu0 %v4270_v19, %s6273_s3 }
 0x5fb   :  { %v4271_v59 = vand.u32 2147483647, %v4255_v20 }
 0x5fc   :  { %v7497_v57 = vpop.permute.xlu1 %4219 }
 0x5fd   :  { %v4214_v26 = vpop.permute.xlu0 %4213  ;;  %4307 = vrot.lane.b32.xlu1 %v4271_v59, %s6273_s3 }
 0x5fe   :  { %v4256_v42 = vsub.f32 %v7417_v22, %v4214_v26 }
 0x600   :  { %v4272_v28 = vand.u32 2147483647, %v4256_v42 }
 0x601   :  { %v4216_v50 = vpop.permute.xlu1 %4215  ;;  %v7501_v40 = vpop.permute.xlu0 %4221 }
 0x602   :  { %v4257_v17 = vsub.f32 %v7425_v44, %v4216_v50  ;;  %4309 = vrot.lane.b32.xlu0 %v4272_v28, %s6273_s3 }
 0x604   :  { %v4273_v60 = vand.u32 2147483647, %v4257_v17 }
 0x605   :  { %v4218_v41 = vpop.permute.xlu0 %4217  ;;  %v7508_v6 = vpop.permute.xlu1 %4227 }
 0x606   :  { %v4258_v0 = vsub.f32 %v7434_v36, %v4218_v41  ;;  %4311 = vrot.lane.b32.xlu1 %v4273_v60, %s6273_s3 }
 0x608   :  { %v4274_v48 = vand.u32 2147483647, %v4258_v0 }
 0x609   :  { %v7510_v19 = vpop.permute.xlu1 %4223  ;;  %v7514_v20 = vpop.permute.xlu0 %4229 }
 0x60a   :  { %4313 = vrot.lane.b32.xlu0 %v4274_v48, %s6273_s3 }
 0x60d   :  { %v7520_v42 = vpop.permute.xlu0 %4225 }
 0x611   :  { %v7512_v24 = vpop.permute.xlu1 %4231 }
 0x612   :  { %8341 = vst [vmem:[#allocation51_spill] sm:$0xff] %v7512_v24 }
 0x615   :  { %v7516_v59 = vpop.permute.xlu1 %4233 }
 0x616   :  { %8342 = vst [vmem:[#allocation52_spill] sm:$0xff] %v7516_v59 }
 0x65f   :  { %v4300_v50 = vpop.permute.xlu1 %4299 }
 0x660   :  { %v4347_v48 = vsel %vm816_vm5, %v4300_v50, 0.0 }
 0x661   :  { %v7518_v26 = vpop.f32.mrf.mxu1 }
 0x662   :  { %5085 = vrot.lane.b32.xlu1 %v7518_v26, %s6272_s2 }
 0x663   :  { %v6065_v28 = vpop.f32.mrf.mxu1  ;;  %v4302_v60 = vpop.permute.xlu0 %4301 }
 0x664   :  { %v4348_v41 = vsel %vm816_vm5, %v4302_v60, 0.0 }
 0x665   :  { %v7524_v17 = vpop.f32.mrf.mxu1  ;;  %v4349_v36 = vadd.f32 %v4348_v41, %v4347_v48 }
 0x666   :  { %5087 = vrot.lane.b32.xlu0 %v7524_v17, %s6272_s2 }
 0x667   :  { %v6066_v0 = vpop.f32.mrf.mxu1  ;;  %v4304_v22 = vpop.permute.xlu0 %4303 }
 0x668   :  { %v4350_v28 = vsel %vm816_vm5, %v4304_v22, 0.0 }
 0x669   :  { %v7530_v44 = vpop.f32.mrf.mxu1  ;;  %v4351_v5 = vadd.f32 %v4350_v28, %v4349_v36 }
 0x66a   :  { %5089 = vrot.lane.b32.xlu1 %v7530_v44, %s6272_s2 }
 0x66b   :  { %v6071_v54 = vpop.f32.mrf.mxu1  ;;  %v4306_v15 = vpop.permute.xlu0 %4305 }
 0x66c   :  { %v4352_v60 = vsel %vm816_vm5, %v4306_v15, 0.0 }
 0x66d   :  { %v7535_v52 = vpop.f32.mrf.mxu1  ;;  %v4353_v41 = vadd.f32 %v4352_v60, %v4351_v5 }
 0x66e   :  { %5091 = vrot.lane.b32.xlu0 %v7535_v52, %s6272_s2 }
 0x66f   :  { %v6072_v50 = vpop.f32.mrf.mxu1  ;;  %v4308_v35 = vpop.permute.xlu1 %4307 }
 0x670   :  { %v4354_v22 = vsel %vm816_vm5, %v4308_v35, 0.0 }
 0x671   :  { %v7540_v0 = vpop.f32.mrf.mxu1  ;;  %v7542_v48 = vpop.f32.mrf.mxu0  ;;  %v4355_v28 = vadd.f32 %v4354_v22, %v4353_v41 }
 0x672   :  { %8343 = vst [vmem:[#allocation53_spill] sm:$0xff] %v7542_v48  ;;  %5093 = vrot.lane.b32.xlu1 %v7540_v0, %s6272_s2 }
 0x673   :  { %v6077_v54 = vpop.f32.mrf.mxu1  ;;  %v6089_v36 = vpop.f32.mrf.mxu0 }
 0x674   :  { %v4310_v15 = vpop.permute.xlu0 %4309 }
 0x675   :  { %v7547_v61 = vpop.f32.mrf.mxu1  ;;  %v7549_v59 = vpop.f32.mrf.mxu0  ;;  %v4356_v5 = vsel %vm816_vm5, %v4310_v15, 0.0 }
 0x676   :  { %5095 = vrot.lane.b32.xlu0 %v7547_v61, %s6272_s2  ;;  %5101 = vrot.lane.b32.xlu1 %v7542_v48, %s6272_s2  ;;  %v7556_v3 = vadd.f32 %v4356_v5, %v4355_v28  ;;  %v4259_v5 = vsub.f32 %v7407_v8, %v7497_v57  ;;  %v3378_v57 = vsub.f32 %v7227_v21, %v7367_v34 }
 0x677   :  { %v6078_v60 = vpop.f32.mrf.mxu1  ;;  %v6090_v50 = vpop.f32.mrf.mxu0 }
 0x679   :  { %v7558_v35 = vpop.f32.mrf.mxu1  ;;  %v7560_v41 = vpop.f32.mrf.mxu0 }
 0x67a   :  { %8344 = vst [vmem:[#allocation54_spill] sm:$0xff] %v7560_v41  ;;  %5097 = vrot.lane.b32.xlu1 %v7558_v35, %s6272_s2  ;;  %5103 = vrot.lane.b32.xlu0 %v7549_v59, %s6272_s2 }
 0x67b   :  { %v6083_v22 = vpop.f32.mrf.mxu1  ;;  %v6101_v54 = vpop.f32.mrf.mxu0 }
 0x67c   :  { %v4275_v22 = vand.u32 2147483647, %v4259_v5  ;;  %v3379_v5 = vsub.f32 %v7251_v33, %v7381_v49 }
 0x67d   :  { %v7566_v36 = vpop.f32.mrf.mxu1  ;;  %v7568_v24 = vpop.f32.mrf.mxu0 }
 0x67e   :  { %8345 = vst [vmem:[#allocation55_spill] sm:$0xff] %v7568_v24  ;;  %5099 = vrot.lane.b32.xlu0 %v7566_v36, %s6272_s2  ;;  %5109 = vrot.lane.b32.xlu1 %v7560_v41, %s6272_s2 }
 0x67f   :  { %v6084_v28 = vpop.f32.mrf.mxu1  ;;  %v6102_v15 = vpop.f32.mrf.mxu0 }
 0x681   :  { %v7576_v60 = vpop.f32.mrf.mxu1 }
 0x682   :  { %5105 = vrot.lane.b32.xlu1 %v7576_v60, %s6272_s2  ;;  %5111 = vrot.lane.b32.xlu0 %v7568_v24, %s6272_s2 }
 0x683   :  { %v6095_v50 = vpop.f32.mrf.mxu1 }
 0x684   :  { %v3394_v50 = vand.u32 2147483647, %v3378_v57 }
 0x685   :  { %v7582_v54 = vpop.f32.mrf.mxu1 }
 0x686   :  { %4315 = vrot.lane.b32.xlu1 %v4275_v22, %s6273_s3  ;;  %5107 = vrot.lane.b32.xlu0 %v7582_v54, %s6272_s2  ;;  %v4260_v22 = vsub.f32 %v7414_v23, %v7501_v40  ;;  %v3381_v40 = vsub.f32 %v7235_v7, %v7377_v16 }
 0x687   :  { %v6096_v28 = vpop.f32.mrf.mxu1 }
 0x688   :  { %v3395_v28 = vand.u32 2147483647, %v3379_v5  ;;  %v4276_v49 = vand.u32 2147483647, %v4260_v22  ;;  %v2501_v5 = vsub.f32 %v7077_v25, %v7199_v32  ;;  %v2502_v32 = vsub.f32 %v7088_v62, %v7202_v55 }
 0x689   :  { %v7589_v15 = vpop.f32.mrf.mxu1 }
 0x68a   :  { %8346 = vst [vmem:[#allocation56_spill] sm:$0xff] %v7589_v15  ;;  %5113 = vrot.lane.b32.xlu0 %v7589_v15, %s6272_s2  ;;  %v4261_v15 = vsub.f32 %v7441_v2, %v7510_v19  ;;  %v3397_v19 = vand.u32 2147483647, %v3381_v40  ;;  %v2630_v40 = vrot.slane %v7010_v31, 7 }
 0x68b   :  { %v6107_v8 = vpop.f32.mrf.mxu1 }
 0x68c   :  { %v3380_v8 = vsub.f32 %v7257_v63, %v7379_v51  ;;  %v4277_v57 = vand.u32 2147483647, %v4261_v15  ;;  %v3382_v51 = vsub.f32 %v7243_v4, %v7375_v11  ;;  %v2517_v15 = vand.u32 2147483647, %v2501_v5 }
 0x68d   :  { %v7597_v24 = vpop.f32.mrf.mxu1 }
 0x68e   :  { %5115 = vrot.lane.b32.xlu1 %v7597_v24, %s6272_s2  ;;  %3435 = vrot.lane.b32.xlu0 %v3394_v50, %s6273_s3  ;;  %v3396_v23 = vand.u32 2147483647, %v3380_v8  ;;  %v4262_v50 = vsub.f32 %v7448_v30, %v7520_v42  ;;  %v3398_v16 = vand.u32 2147483647, %v3382_v51  ;;  %v3383_v42 = vsub.f32 %v7261_v29, %v7385_v58 }
 0x68f   :  { %v6108_v34 = vpop.f32.mrf.mxu1  ;;  %v2626_v58 = vrot.slane %v6993_v46, 7  ;;  %v2627_v8 = vrot.slane %v6997_v47, 7 }
 0x690   :  { %v4278_v22 = vand.u32 2147483647, %v4262_v50  ;;  %v3399_v11 = vand.u32 2147483647, %v3383_v42  ;;  %v2633_v42 = vrot.slane %v7030_v56, 7 }
 0x691   :  { %v2666_v55 = vsub.f32 %v6993_v46, %v2626_v58 }
 0x692   :  { %3437 = vrot.lane.b32.xlu1 %v3395_v28, %s6273_s3  ;;  %4317 = vrot.lane.b32.xlu0 %v4276_v49, %s6273_s3  ;;  %v2518_v28 = vand.u32 2147483647, %v2502_v32  ;;  %v2629_v49 = vrot.slane %v7003_v13, 7 }
 0x694   :  { %v2631_v50 = vsel %vm860_vm2, %v2629_v49, %v2630_v40  ;;  %v2668_v5 = vsub.f32 %v7003_v13, %v2629_v49 }
 0x696   :  { %4319 = vrot.lane.b32.xlu1 %v4277_v57, %s6273_s3  ;;  %3439 = vrot.lane.b32.xlu0 %v3396_v23, %s6273_s3  ;;  %v4263_v23 = vsub.f32 %v7423_v39, %v7508_v6  ;;  %v2628_v6 = vsel %vm860_vm2, %v2626_v58, %v2627_v8  ;;  %v2636_v8 = vrot.slane %v7052_v45, 7 }
 0x697   :  { %v2667_v57 = vsub.f32 %v6997_v47, %v2628_v6 }
 0x698   :  { %v4279_v34 = vand.u32 2147483647, %v4263_v23 }
 0x699   :  { %v2683_v51 = vand.u32 2147483647, %v2667_v57 }
 0x69a   :  { %3441 = vrot.lane.b32.xlu1 %v3397_v19, %s6273_s3  ;;  %4321 = vrot.lane.b32.xlu0 %v4278_v22, %s6273_s3  ;;  %v2682_v19 = vand.u32 2147483647, %v2666_v55  ;;  %v2669_v22 = vsub.f32 %v7010_v31, %v2631_v50  ;;  %v2635_v31 = vrot.slane %v7041_v18, 7 }
 0x69b   :  { %v2715_v23 = vrot.slane %v2683_v51, 1 }
 0x69c   :  { %v2685_v32 = vand.u32 2147483647, %v2669_v22  ;;  %v2637_v50 = vsel %vm860_vm2, %v2635_v31, %v2636_v8 }
 0x69d   :  { %v2755_v49 = vsel %vm991_vm4, %v2715_v23, 0.0  ;;  %v2673_v22 = vsub.f32 %v7052_v45, %v2637_v50  ;;  %v2641_v45 = vrot.slane %v7061_v1, 7 }
 0x69e   :  { %3443 = vrot.lane.b32.xlu1 %v3398_v16, %s6273_s3  ;;  %2563 = vrot.lane.b32.xlu0 %v2517_v15, %s6273_s3  ;;  %v2632_v16 = vrot.slane %v7020_v53, 7  ;;  %v2714_v15 = vrot.slane %v2682_v19, 1 }
 0x6a0   :  { %v2634_v46 = vsel %vm860_vm2, %v2632_v16, %v2633_v42  ;;  %v2716_v47 = vsel %vm949_vm3, %v2714_v15, %v2715_v23  ;;  %v2670_v58 = vsub.f32 %v7020_v53, %v2632_v16  ;;  %v2639_v15 = vrot.slane %v7024_v27, 7 }
 0x6a1   :  { %v2671_v13 = vsub.f32 %v7030_v56, %v2634_v46  ;;  %v2754_v6 = vsel %vm136_vm0, %v2716_v47, 0.0  ;;  %v2672_v56 = vsub.f32 %v7041_v18, %v2635_v31  ;;  %v2638_v46 = vrot.slane %v7016_v9, 7 }
 0x6a2   :  { %3445 = vrot.lane.b32.xlu1 %v3399_v11, %s6273_s3  ;;  %4323 = vrot.lane.b32.xlu0 %v4279_v34, %s6273_s3  ;;  %v2684_v11 = vand.u32 2147483647, %v2668_v5  ;;  %v2686_v55 = vand.u32 2147483647, %v2670_v58  ;;  %v2756_v19 = vadd.f32 %v2755_v49, %v2754_v6  ;;  %v2642_v31 = vrot.slane %v7069_v37, 7 }
 0x6a3   :  { %v2687_v57 = vand.u32 2147483647, %v2671_v13  ;;  %v2640_v58 = vsel %vm860_vm2, %v2638_v46, %v2639_v15  ;;  %v2674_v49 = vsub.f32 %v7016_v9, %v2638_v46  ;;  %v7677_v15 = vpop.permute.xlu0 %4313 }
 0x6a4   :  { %v2717_v34 = vrot.slane %v2684_v11, 1  ;;  %v2720_v53 = vrot.slane %v2686_v55, 1  ;;  %v2688_v11 = vand.u32 2147483647, %v2672_v56  ;;  %v2675_v8 = vsub.f32 %v7024_v27, %v2640_v58 }
 0x6a5   :  { %v2721_v5 = vrot.slane %v2687_v57, 1  ;;  %v2643_v55 = vsel %vm860_vm2, %v2641_v45, %v2642_v31  ;;  %v2676_v56 = vsub.f32 %v7061_v1, %v2641_v45  ;;  %v3508_v1 = vrot.slane %v7205_v14, 7 }
 0x6a6   :  { %2565 = vrot.lane.b32.xlu0 %v2518_v28, %s6273_s3  ;;  %v2718_v28 = vrot.slane %v2685_v32, 1  ;;  %v2689_v32 = vand.u32 2147483647, %v2673_v22  ;;  %v2723_v13 = vrot.slane %v2688_v11, 1  ;;  %v2691_v50 = vand.u32 2147483647, %v2675_v8 }
 0x6a7   :  { %v2722_v23 = vsel %vm949_vm3, %v2720_v53, %v2721_v5  ;;  %v2763_v6 = vsel %vm991_vm4, %v2721_v5, 0.0  ;;  %v2677_v27 = vsub.f32 %v7069_v37, %v2643_v55  ;;  %v2690_v22 = vand.u32 2147483647, %v2674_v49 }
 0x6a8   :  { %v2719_v40 = vsel %vm949_vm3, %v2717_v34, %v2718_v28  ;;  %v2759_v42 = vsel %vm991_vm4, %v2718_v28, 0.0  ;;  %v2761_v34 = vsel %vm136_vm0, %v2722_v23, 0.0  ;;  %v2724_v18 = vrot.slane %v2689_v32, 1 }
 0x6a9   :  { %v2757_v51 = vsel %vm136_vm0, %v2719_v40, 0.0  ;;  %v2644_v5 = vrot.slane %v7036_v43, 7  ;;  %v2727_v9 = vrot.slane %v2691_v50, 1  ;;  %v2692_v32 = vand.u32 2147483647, %v2676_v56 }
 0x6aa   :  { %v2758_v16 = vadd.f32 %v2757_v51, %v2756_v19  ;;  %v2725_v40 = vsel %vm949_vm3, %v2723_v13, %v2724_v18  ;;  %v2645_v19 = vrot.slane %v7047_v12, 7  ;;  %v7670_v51 = vpop.permute.xlu1 %4311  ;;  %v2767_v11 = vsel %vm991_vm4, %v2724_v18, 0.0 }
 0x6ab   :  { %v2765_v53 = vsel %vm136_vm0, %v2725_v40, 0.0  ;;  %v2693_v46 = vand.u32 2147483647, %v2677_v27  ;;  %v3509_v37 = vrot.slane %v7209_v10, 7  ;;  %v2678_v58 = vsub.f32 %v7036_v43, %v2644_v5 }
 0x6ac   :  { %v2760_v47 = vadd.f32 %v2759_v42, %v2758_v16  ;;  %v2646_v42 = vsel %vm860_vm2, %v2644_v5, %v2645_v19  ;;  %v2647_v8 = vrot.slane %v7077_v25, 7  ;;  %v2648_v55 = vrot.slane %v7088_v62, 7 }
 0x6ad   :  { %v2730_v49 = vrot.slane %v2693_v46, 1  ;;  %v2771_v50 = vsel %vm991_vm4, %v2727_v9, 0.0 }
 0x6ae   :  { %v2762_v28 = vadd.f32 %v2761_v34, %v2760_v47  ;;  %v2726_v34 = vrot.slane %v2690_v22, 1  ;;  %v2680_v27 = vsub.f32 %v7077_v25, %v2647_v8  ;;  %v2649_v25 = vsel %vm860_vm2, %v2647_v8, %v2648_v55 }
 0x6b0   :  { %v2764_v57 = vadd.f32 %v2763_v6, %v2762_v28  ;;  %v2728_v45 = vsel %vm949_vm3, %v2726_v34, %v2727_v9  ;;  %v2679_v28 = vsub.f32 %v7047_v12, %v2646_v42  ;;  %v2729_v6 = vrot.slane %v2692_v32, 1  ;;  %v8347_v32 = vld [vmem:[#allocation23_spill] sm:$0xff] }
 0x6b1   :  { %v2769_v43 = vsel %vm136_vm0, %v2728_v45, 0.0  ;;  %v3246_v9 = vand.u32 2147483647, %v7205_v14  ;;  %v2584_v46 = vsel %vm816_vm5, %v8347_v32, 0.0  ;;  %v8348_v34 = vld [vmem:[#allocation15_spill] sm:$0xff] }
 0x6b2   :  { %v2766_v16 = vadd.f32 %v2765_v53, %v2764_v57  ;;  %v3510_v57 = vsel %vm860_vm2, %v3508_v1, %v3509_v37  ;;  %v2694_v53 = vand.u32 2147483647, %v2678_v58  ;;  %v7693_v56 = vand.u32 2147483647, %v2679_v28  ;;  %v8349_v37 = vld [vmem:[#allocation16_spill] sm:$0xff] }
 0x6b3   :  { %v2731_v5 = vsel %vm949_vm3, %v2729_v6, %v2730_v49  ;;  %v3549_v42 = vsub.f32 %v7209_v10, %v3510_v57  ;;  %v3512_v58 = vrot.slane %v8349_v37, 7  ;;  %v2696_v8 = vand.u32 2147483647, %v2680_v27 }
 0x6b4   :  { %v2768_v31 = vadd.f32 %v2767_v11, %v2766_v16  ;;  %v3548_v16 = vsub.f32 %v7205_v14, %v3508_v1  ;;  %v2583_v11 = vsel %vm816_vm5, %v7306_v38, 0.0  ;;  %v3511_v1 = vrot.slane %v8348_v34, 7 }
 0x6b5   :  { %v2732_v45 = vrot.slane %v2694_v53, 1  ;;  %v3565_v6 = vand.u32 2147483647, %v3549_v42  ;;  %v3262_v55 = vsel %vm136_vm0, %v3246_v9, 0.0  ;;  %v2585_v57 = vadd.f32 %v2584_v46, %v2583_v11 }
 0x6b6   :  { %v2770_v12 = vadd.f32 %v2769_v43, %v2768_v31  ;;  %v8299_v31 = vrot.slane %v7693_v56, 1  ;;  %v3564_v38 = vand.u32 2147483647, %v3548_v16  ;;  %v8350_v43 = vld [vmem:[#allocation24_spill] sm:$0xff]  ;;  %v3550_v16 = vsub.f32 %v8348_v34, %v3511_v1 }
 0x6b7   :  { %v3597_v9 = vrot.slane %v3565_v6, 1  ;;  %v3249_v6 = vand.u32 2147483647, %v8349_v37 }
 0x6b8   :  { %v2772_v14 = vadd.f32 %v2771_v50, %v2770_v12  ;;  %v3248_v50 = vand.u32 2147483647, %v8348_v34  ;;  %v3513_v12 = vsel %vm860_vm2, %v3511_v1, %v3512_v58  ;;  %v8352_v58 = vld [vmem:[#allocation18_spill] sm:$0xff] }
 0x6ba   :  { %v3265_v1 = vsel %vm136_vm0, %v3248_v50, 0.0 }
 0x6d4   :  { %v5086_v23 = vpop.permute.xlu1 %5085 }
 0x6d5   :  { %v5133_v47 = vsub.f32 %v7518_v26, %v5086_v23 }
 0x6d7   :  { %v5149_v13 = vand.u32 2147483647, %v5133_v47  ;;  %v3247_v47 = vand.u32 2147483647, %v7209_v10  ;;  %v2681_v10 = vsub.f32 %v7088_v62, %v2649_v25  ;;  %v2734_v62 = vsel %vm949_vm3, %v2732_v45, %v8299_v31  ;;  %v8353_v45 = vld [vmem:[#allocation19_spill] sm:$0xff] }
 0x6d8   :  { %v5088_v18 = vpop.permute.xlu0 %5087 }
 0x6d9   :  { %v5134_v40 = vsub.f32 %v7524_v17, %v5088_v18  ;;  %5181 = vrot.lane.b32.xlu1 %v5149_v13, %s6273_s3  ;;  %v2773_v18 = vsel %vm136_vm0, %v2731_v5, 0.0  ;;  %v3263_v53 = vsel %vm136_vm0, %v3247_v47, 0.0  ;;  %v2775_v5 = vsel %vm991_vm4, %v2730_v49, 0.0  ;;  %v8351_v47 = vld [vmem:[#allocation25_spill] sm:$0xff] }
 0x6da   :  { %v2774_v27 = vadd.f32 %v2773_v18, %v2772_v14  ;;  %v7728_v32 = vand.u32 2147483647, %v2681_v10  ;;  %v3264_v46 = vadd.f32 %v3263_v53, %v3262_v55  ;;  %v3551_v49 = vsub.f32 %v8349_v37, %v3513_v12 }
 0x6db   :  { %v5150_v19 = vand.u32 2147483647, %v5134_v40  ;;  %v2588_v34 = vsel %vm816_vm5, %v8351_v47, 0.0  ;;  %v7736_v18 = vrot.slane %v2696_v8, 1  ;;  %v2777_v55 = vsel %vm136_vm0, %v2734_v62, 0.0 }
 0x6dc   :  { %v5090_v22 = vpop.permute.xlu1 %5089  ;;  %v2776_v53 = vadd.f32 %v2775_v5, %v2774_v27  ;;  %v3266_v50 = vadd.f32 %v3265_v1, %v3264_v46  ;;  %v7744_v12 = vand.u32 2147483647, %v3551_v49  ;;  %v3637_v37 = vsel %vm991_vm4, %v3597_v9, 0.0 }
 0x6dd   :  { %v5135_v23 = vsub.f32 %v7530_v44, %v5090_v22  ;;  %5183 = vrot.lane.b32.xlu0 %v5150_v19, %s6273_s3  ;;  %v2586_v19 = vsel %vm816_vm5, %v8350_v43, 0.0  ;;  %v3267_v47 = vsel %vm136_vm0, %v3249_v6, 0.0  ;;  %v8356_v6 = vld [vmem:[#allocation21_spill] sm:$0xff] }
 0x6de   :  { %v2587_v25 = vadd.f32 %v2586_v19, %v2585_v57  ;;  %v3600_v1 = vrot.slane %v7744_v12, 1 }
 0x6df   :  { %v5151_v13 = vand.u32 2147483647, %v5135_v23  ;;  %v3596_v23 = vrot.slane %v3564_v38, 1  ;;  %v3566_v38 = vand.u32 2147483647, %v3550_v16 }
 0x6e0   :  { %v5092_v28 = vpop.permute.xlu0 %5091  ;;  %v2589_v8 = vadd.f32 %v2588_v34, %v2587_v25  ;;  %v3250_v25 = vand.u32 2147483647, %v8352_v58 }
 0x6e1   :  { %v5136_v40 = vsub.f32 %v7535_v52, %v5092_v28  ;;  %5185 = vrot.lane.b32.xlu1 %v5151_v13, %s6273_s3  ;;  %v3514_v13 = vrot.slane %v8352_v58, 7  ;;  %v3515_v28 = vrot.slane %v8353_v45, 7  ;;  %v3598_v57 = vsel %vm949_vm3, %v3596_v23, %v3597_v9 }
 0x6e2   :  { %v3636_v23 = vsel %vm136_vm0, %v3598_v57, 0.0 }
 0x6e3   :  { %v5152_v22 = vand.u32 2147483647, %v5136_v40  ;;  %v3516_v16 = vsel %vm860_vm2, %v3514_v13, %v3515_v28  ;;  %v3552_v49 = vsub.f32 %v8352_v58, %v3514_v13  ;;  %v3638_v57 = vadd.f32 %v3637_v37, %v3636_v23 }
 0x6e4   :  { %v5094_v42 = vpop.permute.xlu1 %5093  ;;  %v3553_v28 = vsub.f32 %v8353_v45, %v3516_v16  ;;  %v7763_v58 = vadd.f32 %v2777_v55, %v2776_v53  ;;  %v3268_v13 = vadd.f32 %v3267_v47, %v3266_v50  ;;  %v3269_v16 = vsel %vm136_vm0, %v3250_v25, 0.0  ;;  %v8360_v47 = vld [vmem:[#allocation51_spill] sm:$0xff] }
 0x6e5   :  { %v5137_v11 = vsub.f32 %v7540_v0, %v5094_v42  ;;  %5187 = vrot.lane.b32.xlu0 %v5152_v22, %s6273_s3  ;;  %v3568_v31 = vand.u32 2147483647, %v3552_v49 }
 0x6e6   :  { %v7774_v53 = vand.u32 2147483647, %v3553_v28 }
 0x6e7   :  { %v5153_v14 = vand.u32 2147483647, %v5137_v11  ;;  %v3599_v11 = vrot.slane %v3566_v38, 1 }
 0x6e8   :  { %v5096_v40 = vpop.permute.xlu0 %5095  ;;  %v5102_v10 = vpop.permute.xlu1 %5101 }
 0x6e9   :  { %v5138_v43 = vsub.f32 %v7547_v61, %v5096_v40  ;;  %v5141_v19 = vsub.f32 %v7542_v48, %v5102_v10  ;;  %5189 = vrot.lane.b32.xlu1 %v5153_v14, %s6273_s3  ;;  %v8354_v40 = vld [vmem:[#allocation26_spill] sm:$0xff]  ;;  %v8355_v14 = vld [vmem:[#allocation20_spill] sm:$0xff]  ;;  %v3518_v10 = vrot.slane %v8356_v6, 7  ;;  %v3601_v55 = vsel %vm949_vm3, %v3599_v11, %v3600_v1 }
 0x6ea   :  { %v2590_v5 = vsel %vm816_vm5, %v8354_v40, 0.0  ;;  %v3517_v38 = vrot.slane %v8355_v14, 7  ;;  %v3251_v11 = vand.u32 2147483647, %v8353_v45 }
 0x6eb   :  { %v5154_v42 = vand.u32 2147483647, %v5138_v43  ;;  %v5157_v62 = vand.u32 2147483647, %v5141_v19  ;;  %v2591_v40 = vadd.f32 %v2590_v5, %v2589_v8  ;;  %v8359_v8 = vld [vmem:[#allocation46_spill] sm:$0xff]  ;;  %v8361_v5 = vld [vmem:[#allocation49_spill] sm:$0xff] }
 0x6ec   :  { %v5098_v27 = vpop.permute.xlu1 %5097  ;;  %v5104_v46 = vpop.permute.xlu0 %5103  ;;  %v3519_v50 = vsel %vm860_vm2, %v3517_v38, %v3518_v10  ;;  %v4264_v23 = vsub.f32 %v8359_v8, %v7514_v20  ;;  %v4265_v25 = vsub.f32 %v8361_v5, %v8360_v47  ;;  %v3639_v10 = vsel %vm136_vm0, %v3601_v55, 0.0 }
 0x6ed   :  { %v5139_v9 = vsub.f32 %v7558_v35, %v5098_v27  ;;  %v5142_v34 = vsub.f32 %v7549_v59, %v5104_v46  ;;  %5197 = vrot.lane.b32.xlu1 %v5157_v62, %s6273_s3  ;;  %5191 = vrot.lane.b32.xlu0 %v5154_v42, %s6273_s3  ;;  %v8357_v27 = vld [vmem:[#allocation17_spill] sm:$0xff]  ;;  %v8358_v62 = vld [vmem:[#allocation27_spill] sm:$0xff]  ;;  %v3521_v20 = vrot.slane %v7227_v21, 7  ;;  %v3555_v45 = vsub.f32 %v8356_v6, %v3519_v50 }
 0x6ee   :  { %v2592_v42 = vsel %vm816_vm5, %v8358_v62, 0.0  ;;  %v3602_v62 = vrot.slane %v3568_v31, 1  ;;  %v8363_v31 = vld [vmem:[#allocation22_spill] sm:$0xff]  ;;  %v3640_v55 = vadd.f32 %v3639_v10, %v3638_v57 }
 0x6ef   :  { %v5155_v43 = vand.u32 2147483647, %v5139_v9  ;;  %v5158_v19 = vand.u32 2147483647, %v5142_v34  ;;  %v3270_v34 = vadd.f32 %v3269_v16, %v3268_v13  ;;  %v4280_v16 = vand.u32 2147483647, %v4264_v23 }
 0x6f0   :  { %v5100_v22 = vpop.permute.xlu0 %5099  ;;  %v5110_v12 = vpop.permute.xlu1 %5109 }
 0x6f1   :  { %v5140_v48 = vsub.f32 %v7566_v36, %v5100_v22  ;;  %v5145_v37 = vsub.f32 %v7560_v41, %v5110_v12  ;;  %5193 = vrot.lane.b32.xlu1 %v5155_v43, %s6273_s3  ;;  %5199 = vrot.lane.b32.xlu0 %v5158_v19, %s6273_s3  ;;  %v4358_v22 = vsel %vm816_vm5, %v7670_v51, 0.0  ;;  %v3520_v43 = vrot.slane %v8357_v27, 7  ;;  %v8364_v41 = vld [vmem:[#allocation30_spill] sm:$0xff] }
 0x6f2   :  { %v2593_v19 = vadd.f32 %v2592_v42, %v2591_v40  ;;  %v4360_v12 = vsel %vm816_vm5, %v7677_v15, 0.0  ;;  %v3554_v51 = vsub.f32 %v8355_v14, %v3517_v38  ;;  %v4359_v13 = vadd.f32 %v4358_v22, %v7556_v3  ;;  %v8362_v40 = vld [vmem:[#allocation36_spill] sm:$0xff] }
 0x6f3   :  { %v5156_v49 = vand.u32 2147483647, %v5140_v48  ;;  %v5161_v9 = vand.u32 2147483647, %v5145_v37  ;;  %v3603_v48 = vrot.slane %v7774_v53, 1  ;;  %v3384_v42 = vsub.f32 %v8363_v31, %v8362_v40 }
 0x6f4   :  { %v5106_v28 = vpop.permute.xlu1 %5105  ;;  %v5112_v47 = vpop.permute.xlu0 %5111  ;;  %v4281_v37 = vand.u32 2147483647, %v4265_v25  ;;  %v4361_v46 = vadd.f32 %v4360_v12, %v4359_v13  ;;  %v3522_v38 = vsel %vm860_vm2, %v3520_v43, %v3521_v20  ;;  %v2594_v50 = vsel %vm816_vm5, %v8364_v41, 0.0  ;;  %v8365_v20 = vld [vmem:[#allocation55_spill] sm:$0xff]  ;;  %v8366_v13 = vld [vmem:[#allocation28_spill] sm:$0xff] }
 0x6f5   :  { %5205 = vrot.lane.b32.xlu1 %v5161_v9, %s6273_s3  ;;  %5195 = vrot.lane.b32.xlu0 %v5156_v49, %s6273_s3  ;;  %v5143_v15 = vsub.f32 %v7576_v60, %v5106_v28  ;;  %v3641_v9 = vsel %vm991_vm4, %v3600_v1, 0.0  ;;  %v3271_v49 = vsel %vm136_vm0, %v3251_v11, 0.0  ;;  %v3252_v3 = vand.u32 2147483647, %v8355_v14 }
 0x6f6   :  { %v3604_v1 = vsel %vm949_vm3, %v3602_v62, %v3603_v48  ;;  %v3570_v57 = vand.u32 2147483647, %v3554_v51  ;;  %v7808_v25 = vand.u32 2147483647, %v3555_v45  ;;  %v3400_v28 = vand.u32 2147483647, %v3384_v42 }
 0x6f7   :  { %v5159_v10 = vand.u32 2147483647, %v5143_v15  ;;  %v5146_v41 = vsub.f32 %v8365_v20, %v5112_v47  ;;  %v3556_v12 = vsub.f32 %v8357_v27, %v3520_v43  ;;  %v2598_v40 = vsel %vm816_vm5, %v8366_v13, 0.0  ;;  %v8367_v51 = vld [vmem:[#allocation31_spill] sm:$0xff] }
 0x6f8   :  { %v4316_v53 = vpop.permute.xlu1 %4315  ;;  %v5108_v23 = vpop.permute.xlu0 %5107  ;;  %v3273_v62 = vsel %vm136_vm0, %v3252_v3, 0.0  ;;  %v3253_v45 = vand.u32 2147483647, %v8356_v6  ;;  %v3643_v43 = vsel %vm136_vm0, %v3604_v1, 0.0  ;;  %v3557_v47 = vsub.f32 %v7227_v21, %v3522_v38  ;;  %v8370_v3 = vld [vmem:[#allocation56_spill] sm:$0xff] }
 0x6f9   :  { %v4362_v22 = vsel %vm816_vm5, %v4316_v53, 0.0  ;;  %4327 = vrot.lane.b32.xlu1 %v4281_v37, %s6273_s3  ;;  %4325 = vrot.lane.b32.xlu0 %v4280_v16, %s6273_s3  ;;  %v5144_v14 = vsub.f32 %v7582_v54, %v5108_v23  ;;  %v3272_v37 = vadd.f32 %v3271_v49, %v3270_v34  ;;  %v2595_v16 = vadd.f32 %v2594_v50, %v2593_v19  ;;  %v8368_v19 = vld [vmem:[#allocation52_spill] sm:$0xff] }
 0x6fa   :  { %v7810_v11 = vadd.f32 %v4362_v22, %v4361_v46  ;;  %v3642_v53 = vadd.f32 %v3641_v9, %v3640_v55  ;;  %v2596_v46 = vsel %vm816_vm5, %v8367_v51, 0.0  ;;  %v3605_v15 = vrot.slane %v3570_v57, 1  ;;  %v8369_v55 = vld [vmem:[#allocation50_spill] sm:$0xff] }
 0x6fb   :  { %v3606_v34 = vrot.slane %v7808_v25, 1  ;;  %v4266_v9 = vsub.f32 %v8369_v55, %v8368_v19  ;;  %v5162_v49 = vand.u32 2147483647, %v5146_v41  ;;  %v5160_v50 = vand.u32 2147483647, %v5144_v14 }
 0x6fc   :  { %v5114_v42 = vpop.permute.xlu0 %5113  ;;  %v3274_v6 = vadd.f32 %v3273_v62, %v3272_v37  ;;  %v2597_v23 = vadd.f32 %v2596_v46, %v2595_v16  ;;  %v3572_v1 = vand.u32 2147483647, %v3556_v12  ;;  %v3644_v51 = vadd.f32 %v3643_v43, %v3642_v53  ;;  %v8372_v46 = vld [vmem:[#allocation48_spill] sm:$0xff] }
 0x6fd   :  { %5201 = vrot.lane.b32.xlu1 %v5159_v10, %s6273_s3  ;;  %3447 = vrot.lane.b32.xlu0 %v3400_v28, %s6273_s3  ;;  %v5147_v22 = vsub.f32 %v8370_v3, %v5114_v42  ;;  %v3523_v10 = vrot.slane %v7251_v33, 7  ;;  %v3524_v28 = vrot.slane %v7257_v63, 7  ;;  %v3255_v38 = vand.u32 2147483647, %v7227_v21 }
 0x6fe   :  { %v3275_v57 = vsel %vm136_vm0, %v3253_v45, 0.0  ;;  %v8371_v41 = vand.u32 2147483647, %v8357_v27  ;;  %v3645_v37 = vsel %vm991_vm4, %v3603_v48, 0.0  ;;  %v3607_v16 = vsel %vm949_vm3, %v3605_v15, %v3606_v34  ;;  %v8373_v15 = vld [vmem:[#allocation29_spill] sm:$0xff] }
 0x6ff   :  { %v4282_v53 = vand.u32 2147483647, %v4266_v9  ;;  %v5163_v62 = vand.u32 2147483647, %v5147_v22  ;;  %v7843_v42 = vand.u32 2147483647, %v3557_v47  ;;  %v2599_v43 = vadd.f32 %v2598_v40, %v2597_v23 }
 0x700   :  { %v5116_v13 = vpop.permute.xlu1 %5115  ;;  %v3436_v25 = vpop.permute.xlu0 %3435  ;;  %v3277_v14 = vsel %vm136_vm0, %v8371_v41, 0.0  ;;  %v3276_v19 = vadd.f32 %v3275_v57, %v3274_v6  ;;  %v3525_v27 = vsel %vm860_vm2, %v3523_v10, %v3524_v28  ;;  %v3646_v41 = vadd.f32 %v3645_v37, %v3644_v51 }
 0x701   :  { %5207 = vrot.lane.b32.xlu0 %v5162_v49, %s6273_s3  ;;  %5203 = vrot.lane.b32.xlu1 %v5160_v50, %s6273_s3  ;;  %v3482_v12 = vsel %vm816_vm5, %v3436_v25, 0.0  ;;  %v5148_v21 = vsub.f32 %v7597_v24, %v5116_v13  ;;  %v3608_v50 = vrot.slane %v3572_v1, 1  ;;  %v3279_v48 = vsel %vm136_vm0, %v3255_v38, 0.0 }
 0x702   :  { %v3483_v45 = vadd.f32 %v3482_v12, %v8372_v46  ;;  %v2600_v25 = vsel %vm816_vm5, %v8373_v15, 0.0  ;;  %v3526_v47 = vrot.slane %v7235_v7, 7  ;;  %v3647_v40 = vsel %vm136_vm0, %v3607_v16, 0.0  ;;  %v8374_v16 = vld [vmem:[#allocation34_spill] sm:$0xff] }
 0x703   :  { %v3558_v23 = vsub.f32 %v7251_v33, %v3523_v10  ;;  %v3559_v28 = vsub.f32 %v7257_v63, %v3525_v27  ;;  %v5164_v13 = vand.u32 2147483647, %v5148_v21  ;;  %v3609_v51 = vrot.slane %v7843_v42, 1 }
 0x704   :  { %v3438_v49 = vpop.permute.xlu1 %3437  ;;  %v4318_v9 = vpop.permute.xlu0 %4317  ;;  %v3278_v38 = vadd.f32 %v3277_v14, %v3276_v19  ;;  %v3527_v57 = vrot.slane %v7243_v4, 7  ;;  %v2601_v37 = vadd.f32 %v2600_v25, %v2599_v43  ;;  %v3256_v46 = vand.u32 2147483647, %v7251_v33 }
 0x705   :  { %4329 = vrot.lane.b32.xlu1 %v4282_v53, %s6273_s3  ;;  %5209 = vrot.lane.b32.xlu0 %v5163_v62, %s6273_s3  ;;  %v3484_v22 = vsel %vm816_vm5, %v3438_v49, 0.0  ;;  %v4364_v6 = vsel %vm816_vm5, %v4318_v9, 0.0  ;;  %v3648_v53 = vadd.f32 %v3647_v40, %v3646_v41  ;;  %v2602_v62 = vsel %vm816_vm5, %v8374_v16, 0.0 }
 0x706   :  { %v4365_v1 = vadd.f32 %v4364_v6, %v7810_v11  ;;  %v3485_v49 = vadd.f32 %v3484_v22, %v3483_v45  ;;  %v3258_v21 = vand.u32 2147483647, %v7235_v7  ;;  %v3649_v11 = vsel %vm991_vm4, %v3606_v34, 0.0 }
 0x707   :  { %v3560_v43 = vsub.f32 %v7235_v7, %v3526_v47  ;;  %v3574_v19 = vand.u32 2147483647, %v3558_v23  ;;  %v7869_v27 = vand.u32 2147483647, %v3559_v28  ;;  %v3610_v33 = vsel %vm949_vm3, %v3608_v50, %v3609_v51 }
 0x708   :  { %v4320_v12 = vpop.permute.xlu1 %4319  ;;  %v3440_v10 = vpop.permute.xlu0 %3439  ;;  %v3528_v45 = vsel %vm860_vm2, %v3526_v47, %v3527_v57  ;;  %v2603_v15 = vadd.f32 %v2602_v62, %v2601_v37  ;;  %v3280_v25 = vadd.f32 %v3279_v48, %v3278_v38  ;;  %v3650_v9 = vadd.f32 %v3649_v11, %v3648_v53 }
 0x709   :  { %5211 = vrot.lane.b32.xlu1 %v5164_v13, %s6273_s3  ;;  %v4366_v14 = vsel %vm816_vm5, %v4320_v12, 0.0  ;;  %v3486_v42 = vsel %vm816_vm5, %v3440_v10, 0.0  ;;  %v3281_v34 = vsel %vm136_vm0, %v3256_v46, 0.0  ;;  %v3257_v40 = vand.u32 2147483647, %v7257_v63  ;;  %v8375_v13 = vld [vmem:[#allocation35_spill] sm:$0xff] }
 0x70a   :  { %v7871_v41 = vadd.f32 %v3486_v42, %v3485_v49  ;;  %v4367_v22 = vadd.f32 %v4366_v14, %v4365_v1  ;;  %v2604_v7 = vsel %vm816_vm5, %v8375_v13, 0.0  ;;  %v3529_v23 = vrot.slane %v7261_v29, 7  ;;  %v8378_v14 = vld [vmem:[#allocation32_spill] sm:$0xff]  ;;  %s2422_s3 = smul.f32 0.00048828125, %s6122_s17 }
 0x70b   :  { %v3530_v28 = vrot.slane %v8363_v31, 7  ;;  %v3611_v12 = vrot.slane %v3574_v19, 1  ;;  %v3612_v47 = vrot.slane %v7869_v27, 1  ;;  %v8376_v38 = vrot.slane %v7693_v56, 1 }
 0x70c   :  { %v4322_v6 = vpop.permute.xlu0 %4321  ;;  %v3651_v63 = vsel %vm136_vm0, %v3610_v33, 0.0  ;;  %v3576_v1 = vand.u32 2147483647, %v3560_v43  ;;  %v3561_v37 = vsub.f32 %v7243_v4, %v3528_v45  ;;  %v3282_v53 = vadd.f32 %v3281_v34, %v3280_v25  ;;  %v8379_v45 = vld [vmem:[#allocation37_spill] sm:$0xff]  ;;  %v8380_v25 = vld [vmem:[#allocation38_spill] sm:$0xff] }
 0x70d   :  { %v4368_v50 = vsel %vm816_vm5, %v4322_v6, 0.0  ;;  %v2779_v57 = vsel %vm991_vm4, %v8376_v38, 0.0  ;;  %v3652_v16 = vadd.f32 %v3651_v63, %v3650_v9  ;;  %v2605_v62 = vadd.f32 %v2604_v7, %v2603_v15 }
 0x70e   :  { %v4369_v48 = vadd.f32 %v4368_v50, %v4367_v22  ;;  %v3283_v46 = vsel %vm136_vm0, %v3257_v40, 0.0  ;;  %v8377_v10 = vrot.slane %v7728_v32, 1  ;;  %v3285_v56 = vsel %vm136_vm0, %v3258_v21, 0.0 }
 0x70f   :  { %v2606_v42 = vsel %vm816_vm5, %v8378_v14, 0.0  ;;  %v7897_v43 = vadd.f32 %v2779_v57, %v7763_v58  ;;  %v3531_v19 = vsel %vm860_vm2, %v3529_v23, %v3530_v28  ;;  %v3653_v27 = vsel %vm991_vm4, %v3609_v51, 0.0  ;;  %v8381_v57 = vld [vmem:[#allocation39_spill] sm:$0xff] }
 0x710   :  { %v2564_v49 = vpop.permute.xlu0 %2563  ;;  %v2737_v11 = vsel %vm949_vm3, %v7736_v18, %v8377_v10  ;;  %v3613_v33 = vsel %vm949_vm3, %v3611_v12, %v3612_v47  ;;  %v4128_v15 = vand.u32 2147483647, %v8379_v45  ;;  %v4129_v9 = vand.u32 2147483647, %v8380_v25 }
 0x711   :  { %v3614_v34 = vrot.slane %v3576_v1, 1  ;;  %v3259_v18 = vand.u32 2147483647, %v7243_v4  ;;  %v7905_v21 = vand.u32 2147483647, %v3561_v37  ;;  %v3284_v40 = vadd.f32 %v3283_v46, %v3282_v53  ;;  %v8382_v37 = vld [vmem:[#allocation33_spill] sm:$0xff] }
 0x712   :  { %v2607_v22 = vadd.f32 %v2606_v42, %v2605_v62  ;;  %v3562_v58 = vsub.f32 %v7261_v29, %v3529_v23  ;;  %v3563_v13 = vsub.f32 %v8363_v31, %v3531_v19  ;;  %v3654_v7 = vadd.f32 %v3653_v27, %v3652_v16 }
 0x713   :  { %v4390_v51 = vrot.slane %v8379_v45, 7  ;;  %v4391_v28 = vrot.slane %v8380_v25, 7  ;;  %v3655_v12 = vsel %vm136_vm0, %v3613_v33, 0.0  ;;  %v4144_v4 = vsel %vm136_vm0, %v4128_v15, 0.0 }
 0x714   :  { %v4324_v6 = vpop.permute.xlu0 %4323  ;;  %v4145_v38 = vsel %vm136_vm0, %v4129_v9, 0.0  ;;  %v4130_v63 = vand.u32 2147483647, %v8381_v57  ;;  %v3615_v23 = vrot.slane %v7905_v21, 1  ;;  %v2608_v53 = vsel %vm816_vm5, %v8382_v37, 0.0 }
 0x715   :  { %v4370_v50 = vsel %vm816_vm5, %v4324_v6, 0.0  ;;  %v3260_v16 = vand.u32 2147483647, %v7261_v29  ;;  %v3286_v62 = vadd.f32 %v3285_v56, %v3284_v40  ;;  %v3578_v46 = vand.u32 2147483647, %v3562_v58 }
 0x716   :  { %v7916_v1 = vadd.f32 %v4370_v50, %v4369_v48  ;;  %v2609_v10 = vadd.f32 %v2608_v53, %v2607_v22  ;;  %v7922_v14 = vand.u32 2147483647, %v3563_v13  ;;  %v3656_v42 = vadd.f32 %v3655_v12, %v3654_v7  ;;  %v8383_v48 = vld [vmem:[#allocation40_spill] sm:$0xff] }
 0x717   :  { %v4146_v19 = vadd.f32 %v4145_v38, %v4144_v4  ;;  %v4392_v27 = vsel %vm860_vm2, %v4390_v51, %v4391_v28  ;;  %v4393_v33 = vrot.slane %v8381_v57, 7  ;;  %v4394_v15 = vrot.slane %v8383_v48, 7 }
 0x718   :  { %v3657_v9 = vsel %vm991_vm4, %v3612_v47, 0.0  ;;  %v4147_v21 = vsel %vm136_vm0, %v4130_v63, 0.0  ;;  %v4131_v6 = vand.u32 2147483647, %v8383_v48  ;;  %v3287_v29 = vsel %vm136_vm0, %v3259_v18, 0.0  ;;  %v2566_v40 = vpop.permute.xlu0 %2565 }
 0x719   :  { %v4430_v56 = vsub.f32 %v8379_v45, %v4390_v51  ;;  %v3261_v22 = vand.u32 2147483647, %v8363_v31  ;;  %v3288_v58 = vadd.f32 %v3287_v29, %v3286_v62  ;;  %v3289_v13 = vsel %vm136_vm0, %v3260_v16, 0.0  ;;  %v8384_v51 = vld [vmem:[#allocation42_spill] sm:$0xff] }
 0x71a   :  { %v3617_v7 = vrot.slane %v3578_v46, 1  ;;  %v4431_v28 = vsub.f32 %v8380_v25, %v4392_v27  ;;  %v2610_v50 = vsel %vm816_vm5, %v2564_v49, 0.0  ;;  %v3616_v47 = vsel %vm949_vm3, %v3614_v34, %v3615_v23 }
 0x71b   :  { %v4148_v12 = vadd.f32 %v4147_v21, %v4146_v19  ;;  %v4395_v4 = vsel %vm860_vm2, %v4393_v33, %v4394_v15  ;;  %v3618_v18 = vrot.slane %v7922_v14, 1  ;;  %v3658_v38 = vadd.f32 %v3657_v9, %v3656_v42 }
 0x71c   :  { %v4149_v45 = vsel %vm136_vm0, %v4131_v6, 0.0  ;;  %v4132_v31 = vand.u32 2147483647, %v8384_v51  ;;  %v2612_v63 = vsel %vm816_vm5, %v2566_v40, 0.0  ;;  %v2781_v37 = vsel %vm136_vm0, %v2737_v11, 0.0 }
 0x71d   :  { %v4446_v53 = vand.u32 2147483647, %v4430_v56  ;;  %v2611_v25 = vadd.f32 %v2610_v50, %v2609_v10  ;;  %v3290_v16 = vadd.f32 %v3289_v13, %v3288_v58  ;;  %v3291_v49 = vsel %vm136_vm0, %v3261_v22, 0.0  ;;  %v8385_v10 = vld [vmem:[#allocation44_spill] sm:$0xff]  ;;  %v8387_v13 = vld [vmem:[#allocation43_spill] sm:$0xff] }
 0x71e   :  { %v4447_v34 = vand.u32 2147483647, %v4431_v28  ;;  %v4432_v62 = vsub.f32 %v8381_v57, %v4393_v33  ;;  %v4433_v46 = vsub.f32 %v8383_v48, %v4395_v4  ;;  %v3659_v14 = vsel %vm136_vm0, %v3616_v47, 0.0  ;;  %v8388_v4 = vld [vmem:[#allocation41_spill] sm:$0xff] }
 0x71f   :  { %v4150_v42 = vadd.f32 %v4149_v45, %v4148_v12  ;;  %v2613_v19 = vadd.f32 %v2612_v63, %v2611_v25  ;;  %v3619_v27 = vsel %vm949_vm3, %v3617_v7, %v3618_v18  ;;  %v3660_v15 = vadd.f32 %v3659_v14, %v3658_v38  ;;  %v8389_v45 = vld [vmem:[#allocation45_spill] sm:$0xff] }
 0x720   :  { %v4151_v9 = vsel %vm136_vm0, %v4132_v31, 0.0  ;;  %v4396_v11 = vrot.slane %v8384_v51, 7  ;;  %v4133_v21 = vand.u32 2147483647, %v8385_v10  ;;  %v4397_v6 = vrot.slane %v8385_v10, 7 }
 0x721   :  { %v4478_v29 = vrot.slane %v4446_v53, 1  ;;  %v2782_v57 = vadd.f32 %v2781_v37, %v7897_v43  ;;  %v8386_v33 = vrot.slane %v7728_v32, 1  ;;  %v3661_v56 = vsel %vm991_vm4, %v3615_v23, 0.0 }
 0x722   :  { %v4479_v40 = vrot.slane %v4447_v34, 1  ;;  %v4448_v22 = vand.u32 2147483647, %v4432_v62  ;;  %v4449_v58 = vand.u32 2147483647, %v4433_v46  ;;  %v4403_v7 = vrot.slane %v8387_v13, 7 }
 0x723   :  { %v2783_v48 = vsel %vm991_vm4, %v8386_v33, 0.0  ;;  %v4152_v28 = vadd.f32 %v4151_v9, %v4150_v42  ;;  %v3292_v50 = vadd.f32 %v3291_v49, %v3290_v16  ;;  %v3662_v47 = vadd.f32 %v3661_v56, %v3660_v15  ;;  %v8390_v42 = vld [vmem:[#allocation47_spill] sm:$0xff] }
 0x724   :  { %2614 = vadd.xlane.f32.xlu0 %v2613_v19  ;;  %v3663_v12 = vsel %vm136_vm0, %v3619_v27, 0.0  ;;  %v4402_v38 = vrot.slane %v8388_v4, 7  ;;  %v4153_v43 = vsel %vm136_vm0, %v4133_v21, 0.0  ;;  %v4398_v32 = vsel %vm860_vm2, %v4396_v11, %v4397_v6 }
 0x725   :  { %v4134_v31 = vand.u32 2147483647, %v8389_v45  ;;  %v2784_v23 = vadd.f32 %v2783_v48, %v2782_v57  ;;  %v4480_v63 = vsel %vm949_vm3, %v4478_v29, %v4479_v40  ;;  %v4481_v37 = vrot.slane %v4448_v22, 1 }
 0x726   :  { %v4482_v53 = vrot.slane %v4449_v58, 1  ;;  %v4404_v25 = vsel %vm860_vm2, %v4402_v38, %v4403_v7  ;;  %v4434_v16 = vsub.f32 %v8384_v51, %v4396_v11  ;;  %v4154_v49 = vadd.f32 %v4153_v43, %v4152_v28 }
 0x727   :  { %v4435_v34 = vsub.f32 %v8385_v10, %v4398_v32  ;;  %v3664_v62 = vadd.f32 %v3663_v12, %v3662_v47  ;;  %v4155_v46 = vsel %vm136_vm0, %v4134_v31, 0.0  ;;  %v4399_v14 = vrot.slane %v8389_v45, 7 }
 0x728   :  { %3293 = vadd.xlane.f32.xlu0 %v3292_v50  ;;  %v4135_v19 = vand.u32 2147483647, %v8390_v42  ;;  %v4400_v27 = vrot.slane %v8390_v42, 7  ;;  %v4518_v15 = vsel %vm136_vm0, %v4480_v63, 0.0  ;;  %v4519_v9 = vsel %vm991_vm4, %v4479_v40, 0.0 }
 0x729   :  { %v4439_v21 = vsub.f32 %v8387_v13, %v4404_v25  ;;  %v3665_v51 = vsel %vm991_vm4, %v3618_v18, 0.0  ;;  %v4483_v11 = vsel %vm949_vm3, %v4481_v37, %v4482_v53  ;;  %v4438_v10 = vsub.f32 %v8388_v4, %v4402_v38 }
 0x72a   :  { %v4450_v6 = vand.u32 2147483647, %v4434_v16  ;;  %v4451_v29 = vand.u32 2147483647, %v4435_v34  ;;  %v4156_v57 = vadd.f32 %v4155_v46, %v4154_v49  ;;  %v4520_v33 = vadd.f32 %v4519_v9, %v4518_v15 }
 0x72b   :  { %v4157_v48 = vsel %vm136_vm0, %v4135_v19, 0.0  ;;  %v4401_v56 = vsel %vm860_vm2, %v4399_v14, %v4400_v27  ;;  %v3666_v22 = vadd.f32 %v3665_v51, %v3664_v62  ;;  %v4521_v40 = vsel %vm136_vm0, %v4483_v11, 0.0 }
 0x72c   :  { %v4136_v58 = vand.u32 2147483647, %v8388_v4  ;;  %v4455_v7 = vand.u32 2147483647, %v4439_v21  ;;  %v4409_v18 = vrot.slane %v8359_v8, 7  ;;  %v4436_v47 = vsub.f32 %v8389_v45, %v4399_v14 }
 0x72d   :  { %2785 = vadd.xlane.f32.xlu1 %v2784_v23  ;;  %v4454_v28 = vand.u32 2147483647, %v4438_v10  ;;  %v4137_v50 = vand.u32 2147483647, %v8387_v13  ;;  %v4408_v12 = vrot.slane %v7423_v39, 7  ;;  %v4484_v38 = vrot.slane %v4450_v6, 1 }
 0x72e   :  { %v4485_v43 = vrot.slane %v4451_v29, 1  ;;  %v4158_v32 = vadd.f32 %v4157_v48, %v4156_v57  ;;  %v4437_v31 = vsub.f32 %v8390_v42, %v4401_v56  ;;  %v4522_v23 = vadd.f32 %v4521_v40, %v4520_v33 }
 0x72f   :  { %v4140_v63 = vand.u32 2147483647, %v7423_v39  ;;  %v4523_v4 = vsel %vm991_vm4, %v4482_v53, 0.0  ;;  %v4159_v37 = vsel %vm136_vm0, %v4136_v58, 0.0  ;;  %v4491_v25 = vrot.slane %v4455_v7, 1 }
 0x730   :  { %v4410_v13 = vsel %vm860_vm2, %v4408_v12, %v4409_v18  ;;  %v4490_v16 = vrot.slane %v4454_v28, 1  ;;  %v4161_v45 = vsel %vm136_vm0, %v4137_v50, 0.0  ;;  %v4452_v49 = vand.u32 2147483647, %v4436_v47 }
 0x731   :  { %3667 = vadd.xlane.f32.xlu1 %v3666_v22  ;;  %v4442_v34 = vsub.f32 %v7423_v39, %v4408_v12  ;;  %v4486_v62 = vsel %vm949_vm3, %v4484_v38, %v4485_v43  ;;  %v4160_v46 = vadd.f32 %v4159_v37, %v4158_v32  ;;  %v4453_v14 = vand.u32 2147483647, %v4437_v31 }
 0x732   :  { %v5273_v42 = vrot.slane %v7524_v17, 7  ;;  %v4524_v19 = vadd.f32 %v4523_v4, %v4522_v23  ;;  %v4167_v53 = vsel %vm136_vm0, %v4140_v63, 0.0  ;;  %v4443_v27 = vsub.f32 %v8359_v8, %v4410_v13 }
 0x733   :  { %v4138_v15 = vand.u32 2147483647, %v7441_v2  ;;  %v4492_v9 = vsel %vm949_vm3, %v4490_v16, %v4491_v25  ;;  %v4405_v21 = vrot.slane %v7441_v2, 7  ;;  %v5272_v51 = vrot.slane %v7518_v26, 7 }
 0x734   :  { %v5276_v39 = vrot.slane %v7535_v52, 7  ;;  %v4525_v11 = vsel %vm136_vm0, %v4486_v62, 0.0  ;;  %v4487_v10 = vrot.slane %v4452_v49, 1  ;;  %v4458_v6 = vand.u32 2147483647, %v4442_v34 }
 0x735   :  { %v4406_v29 = vrot.slane %v7448_v30, 7  ;;  %v4488_v57 = vrot.slane %v4453_v14, 1  ;;  %v4162_v33 = vadd.f32 %v4161_v45, %v4160_v46  ;;  %v5274_v48 = vsel %vm860_vm2, %v5272_v51, %v5273_v42 }
 0x736   :  { %v5275_v56 = vrot.slane %v7530_v44, 7  ;;  %v8006_v22 = vsel %vm991_vm4, %v4491_v25, 0.0  ;;  %v8008_v40 = vand.u32 2147483647, %v4443_v27  ;;  %v4163_v58 = vsel %vm136_vm0, %v4138_v15, 0.0 }
 0x737   :  { %v4139_v7 = vand.u32 2147483647, %v7448_v30  ;;  %v4526_v18 = vadd.f32 %v4525_v11, %v4524_v19  ;;  %v8013_v28 = vsel %vm136_vm0, %v4492_v9, 0.0  ;;  %v4440_v50 = vsub.f32 %v7441_v2, %v4405_v21 }
 0x738   :  { %v5277_v47 = vsel %vm860_vm2, %v5275_v56, %v5276_v39  ;;  %v4527_v12 = vsel %vm991_vm4, %v4485_v43, 0.0  ;;  %v4141_v38 = vand.u32 2147483647, %v8359_v8  ;;  %v4407_v32 = vsel %vm860_vm2, %v4405_v21, %v4406_v29 }
 0x739   :  { %v5313_v31 = vsub.f32 %v7524_v17, %v5274_v48  ;;  %v4496_v23 = vrot.slane %v4458_v6, 1  ;;  %v4489_v63 = vsel %vm949_vm3, %v4487_v10, %v4488_v57  ;;  %v4164_v4 = vadd.f32 %v4163_v58, %v4162_v33 }
 0x73a   :  { %v5279_v37 = vrot.slane %v7547_v61, 7  ;;  %v4497_v25 = vrot.slane %v8008_v40, 1  ;;  %v4165_v2 = vsel %vm136_vm0, %v4139_v7, 0.0  ;;  %v5312_v13 = vsub.f32 %v7518_v26, %v5272_v51  ;;  %v8040_v51 = vpop.permute.xlu1 %3441 }
 0x73b   :  { %v5315_v43 = vsub.f32 %v7535_v52, %v5277_v47  ;;  %v4528_v16 = vadd.f32 %v4527_v12, %v4526_v18  ;;  %v4456_v8 = vand.u32 2147483647, %v4440_v50  ;;  %v4441_v45 = vsub.f32 %v7448_v30, %v4407_v32 }
 0x73c   :  { %v5278_v49 = vrot.slane %v7540_v0, 7  ;;  %v4529_v34 = vsel %vm136_vm0, %v4489_v63, 0.0  ;;  %v4411_v62 = vrot.slane %v8361_v5, 7  ;;  %v5329_v46 = vand.u32 2147483647, %v5313_v31 }
 0x73d   :  { %v5314_v14 = vsub.f32 %v7530_v44, %v5275_v56  ;;  %v4166_v42 = vadd.f32 %v4165_v2, %v4164_v4  ;;  %v4142_v19 = vand.u32 2147483647, %v8361_v5  ;;  %v8035_v15 = vsel %vm136_vm0, %v4141_v38, 0.0 }
 0x73e   :  { %v5280_v27 = vsel %vm860_vm2, %v5278_v49, %v5279_v37  ;;  %v4531_v9 = vsel %vm991_vm4, %v4488_v57, 0.0  ;;  %v5328_v30 = vand.u32 2147483647, %v5312_v13  ;;  %v8038_v21 = vand.u32 2147483647, %v5315_v43  ;;  %v8071_v13 = vpop.permute.xlu1 %3443 }
 0x73f   :  { %v4498_v39 = vsel %vm949_vm3, %v4496_v23, %v4497_v25  ;;  %v4530_v11 = vadd.f32 %v4529_v34, %v4528_v16  ;;  %v4493_v10 = vrot.slane %v4456_v8, 1  ;;  %v8043_v6 = vand.u32 2147483647, %v4441_v45 }
 0x740   :  { %v5282_v29 = vrot.slane %v7566_v36, 7  ;;  %v8049_v33 = vsub.f32 %v8361_v5, %v4411_v62  ;;  %v5361_v48 = vrot.slane %v5329_v46, 1  ;;  %v5330_v57 = vand.u32 2147483647, %v5314_v14 }
 0x741   :  { %v5317_v56 = vsub.f32 %v7547_v61, %v5280_v27  ;;  %v5281_v40 = vrot.slane %v7558_v35, 7  ;;  %v8053_v58 = vadd.f32 %v4167_v53, %v4166_v42  ;;  %v8056_v7 = vsel %vm136_vm0, %v4142_v19, 0.0 }
 0x742   :  { %v8059_v18 = vsel %vm136_vm0, %v4498_v39, 0.0  ;;  %v5360_v50 = vrot.slane %v5328_v30, 1  ;;  %v5011_v47 = vand.u32 2147483647, %v7524_v17  ;;  %v5364_v12 = vrot.slane %v8038_v21, 1 }
 0x743   :  { %v5316_v38 = vsub.f32 %v7540_v0, %v5278_v49  ;;  %v4532_v32 = vadd.f32 %v4531_v9, %v4530_v11  ;;  %v4494_v31 = vrot.slane %v8043_v6, 1  ;;  %v5010_v23 = vand.u32 2147483647, %v7518_v26 }
 0x744   :  { %v5283_v53 = vsel %vm860_vm2, %v5281_v40, %v5282_v29  ;;  %v5362_v63 = vsel %vm949_vm3, %v5360_v50, %v5361_v48  ;;  %v5012_v4 = vand.u32 2147483647, %v7530_v44  ;;  %v5363_v37 = vrot.slane %v5330_v57, 1  ;;  %v8096_v57 = vpop.permute.xlu1 %3445 }
 0x745   :  { %v8069_v2 = vand.u32 2147483647, %v5317_v56  ;;  %v4460_v17 = vand.u32 2147483647, %v8049_v33  ;;  %v4412_v43 = vrot.slane %v8369_v55, 7  ;;  %v8077_v8 = vsel %vm991_vm4, %v4497_v25, 0.0 }
 0x746   :  { %v5013_v16 = vand.u32 2147483647, %v7535_v52  ;;  %v5027_v26 = vsel %vm136_vm0, %v5011_v47, 0.0  ;;  %v5365_v45 = vsel %vm949_vm3, %v5363_v37, %v5364_v12  ;;  %v5332_v49 = vand.u32 2147483647, %v5316_v38  ;;  %v8391_v47 = vld [vmem:[#allocation53_spill] sm:$0xff] }
 0x747   :  { %v5319_v44 = vsub.f32 %v7566_v36, %v5283_v53  ;;  %v5400_v34 = vsel %vm136_vm0, %v5362_v63, 0.0  ;;  %v5401_v46 = vsel %vm991_vm4, %v5361_v48, 0.0  ;;  %v5014_v14 = vand.u32 2147483647, %v7540_v0 }
 0x748   :  { %v4143_v42 = vand.u32 2147483647, %v8369_v55  ;;  %v5026_v52 = vsel %vm136_vm0, %v5010_v23, 0.0  ;;  %v5029_v25 = vsel %vm136_vm0, %v5012_v4, 0.0  ;;  %v5367_v19 = vrot.slane %v8069_v2, 1 }
 0x749   :  { %v5318_v27 = vsub.f32 %v7558_v35, %v5281_v40  ;;  %v5028_v9 = vadd.f32 %v5027_v26, %v5026_v52  ;;  %v5031_v30 = vsel %vm136_vm0, %v5013_v16, 0.0  ;;  %v5403_v21 = vsel %vm136_vm0, %v5365_v45, 0.0 }
 0x74a   :  { %v5285_v39 = vrot.slane %v7549_v59, 7  ;;  %v5402_v11 = vadd.f32 %v5401_v46, %v5400_v34  ;;  %v5366_v29 = vrot.slane %v5332_v49, 1  ;;  %v5015_v0 = vand.u32 2147483647, %v7547_v61 }
 0x74b   :  { %v8094_v48 = vand.u32 2147483647, %v5319_v44  ;;  %v5030_v56 = vadd.f32 %v5029_v25, %v5028_v9  ;;  %v5033_v50 = vsel %vm136_vm0, %v5014_v14, 0.0  ;;  %v5284_v40 = vrot.slane %v8391_v47, 7 }
 0x74c   :  { %v4413_v38 = vsel %vm860_vm2, %v4411_v62, %v4412_v43  ;;  %v5404_v23 = vadd.f32 %v5403_v21, %v5402_v11  ;;  %v5368_v53 = vsel %vm949_vm3, %v5366_v29, %v5367_v19  ;;  %v5016_v63 = vand.u32 2147483647, %v7558_v35  ;;  %v5182_v43 = vpop.permute.xlu1 %5181 }
 0x74d   :  { %v5334_v4 = vand.u32 2147483647, %v5318_v27  ;;  %v4534_v61 = vadd.f32 %v8013_v28, %v4532_v32  ;;  %v4495_v37 = vsel %vm949_vm3, %v4493_v10, %v4494_v31  ;;  %v5032_v2 = vadd.f32 %v5031_v30, %v5030_v56 }
 0x74e   :  { %v5286_v16 = vsel %vm860_vm2, %v5284_v40, %v5285_v39  ;;  %v5035_v26 = vsel %vm136_vm0, %v5015_v0, 0.0  ;;  %v5017_v5 = vand.u32 2147483647, %v7566_v36  ;;  %v5370_v62 = vrot.slane %v8094_v48, 1 }
 0x74f   :  { %v4445_v45 = vsub.f32 %v8369_v55, %v4413_v38  ;;  %v5405_v35 = vsel %vm991_vm4, %v5364_v12, 0.0  ;;  %v5034_v49 = vadd.f32 %v5033_v50, %v5032_v2  ;;  %v5407_v28 = vsel %vm136_vm0, %v5368_v53, 0.0  ;;  %v5184_v21 = vpop.permute.xlu0 %5183 }
 0x750   :  { %v5288_v32 = vrot.slane %v7582_v54, 7  ;;  %v5406_v10 = vadd.f32 %v5405_v35, %v5404_v23  ;;  %v5037_v44 = vsel %vm136_vm0, %v5016_v63, 0.0  ;;  %v5369_v34 = vrot.slane %v5334_v4, 1 }
 0x751   :  { %v5321_v46 = vsub.f32 %v7549_v59, %v5286_v16  ;;  %v5036_v14 = vadd.f32 %v5035_v26, %v5034_v49  ;;  %v5287_v36 = vrot.slane %v7576_v60, 7  ;;  %v8122_v52 = vadd.f32 %v8035_v15, %v8053_v58 }
 0x752   :  { %v4536_v12 = vadd.f32 %v8006_v22, %v4534_v61  ;;  %v5408_v25 = vadd.f32 %v5407_v28, %v5406_v10  ;;  %v5320_v27 = vsub.f32 %v8391_v47, %v5284_v40  ;;  %v5039_v9 = vsel %vm136_vm0, %v5017_v5, 0.0 }
 0x753   :  { %v5371_v30 = vsel %vm949_vm3, %v5369_v34, %v5370_v62  ;;  %v5186_v39 = vpop.permute.xlu1 %5185  ;;  %v5018_v11 = vand.u32 2147483647, %v8391_v47  ;;  %v5038_v29 = vadd.f32 %v5037_v44, %v5036_v14  ;;  %v5289_v0 = vsel %vm860_vm2, %v5287_v36, %v5288_v32  ;;  %v8392_v14 = vld [vmem:[#allocation54_spill] sm:$0xff] }
 0x754   :  { %v4537_v48 = vsel %vm136_vm0, %v4495_v37, 0.0  ;;  %v4539_v22 = vsel %vm991_vm4, %v4494_v31, 0.0  ;;  %v4499_v15 = vrot.slane %v4460_v17, 1  ;;  %v8136_v58 = vand.u32 2147483647, %v5321_v46 }
 0x755   :  { %v8138_v56 = vand.u32 2147483647, %v4445_v45  ;;  %v5409_v50 = vsel %vm991_vm4, %v5367_v19, 0.0  ;;  %v5040_v40 = vadd.f32 %v5039_v9, %v5038_v29  ;;  %v5411_v47 = vsel %vm136_vm0, %v5371_v30, 0.0 }
 0x756   :  { %v5230_v38 = vsel %vm816_vm5, %v5184_v21, 0.0  ;;  %v5410_v23 = vadd.f32 %v5409_v50, %v5408_v25  ;;  %v5336_v53 = vand.u32 2147483647, %v5320_v27  ;;  %v5323_v6 = vsub.f32 %v7582_v54, %v5289_v0 }
 0x757   :  { %v5188_v63 = vpop.permute.xlu0 %5187  ;;  %v4538_v4 = vadd.f32 %v4537_v48, %v4536_v12  ;;  %v5041_v33 = vsel %vm136_vm0, %v5018_v11, 0.0  ;;  %v5019_v17 = vand.u32 2147483647, %v7549_v59  ;;  %v5229_v61 = vsel %vm816_vm5, %v5182_v43, 0.0 }
 0x758   :  { %v5232_v19 = vsel %vm816_vm5, %v5186_v39, 0.0  ;;  %v5373_v37 = vrot.slane %v8136_v58, 1  ;;  %v5412_v2 = vadd.f32 %v5411_v47, %v5410_v23  ;;  %v5322_v16 = vsub.f32 %v7576_v60, %v5287_v36 }
 0x759   :  { %v5231_v26 = vadd.f32 %v5230_v38, %v5229_v61  ;;  %v5042_v5 = vadd.f32 %v5041_v33, %v5040_v40  ;;  %v5291_v45 = vrot.slane %v8365_v20, 7  ;;  %v5234_v35 = vsel %vm816_vm5, %v5188_v63, 0.0 }
 0x75a   :  { %v4500_v49 = vrot.slane %v8138_v56, 1  ;;  %v5372_v28 = vrot.slane %v5336_v53, 1  ;;  %v5020_v59 = vand.u32 2147483647, %v7576_v60  ;;  %v8154_v32 = vand.u32 2147483647, %v5323_v6 }
 0x75b   :  { %v5190_v31 = vpop.permute.xlu1 %5189  ;;  %v5233_v43 = vadd.f32 %v5232_v19, %v5231_v26  ;;  %v5043_v34 = vsel %vm136_vm0, %v5019_v17, 0.0  ;;  %v5413_v46 = vsel %vm991_vm4, %v5370_v62, 0.0  ;;  %v5290_v36 = vrot.slane %v8392_v14, 7 }
 0x75c   :  { %v5236_v12 = vsel %vm816_vm5, %v5190_v31, 0.0  ;;  %v5374_v25 = vsel %vm949_vm3, %v5372_v28, %v5373_v37  ;;  %v5414_v27 = vadd.f32 %v5413_v46, %v5412_v2  ;;  %v5338_v9 = vand.u32 2147483647, %v5322_v16 }
 0x75d   :  { %v5235_v30 = vadd.f32 %v5234_v35, %v5233_v43  ;;  %v5044_v21 = vadd.f32 %v5043_v34, %v5042_v5  ;;  %v5292_v60 = vsel %vm860_vm2, %v5290_v36, %v5291_v45  ;;  %v4540_v11 = vadd.f32 %v4539_v22, %v4538_v4 }
 0x75e   :  { %v5045_v29 = vsel %vm136_vm0, %v5020_v59, 0.0  ;;  %v5021_v0 = vand.u32 2147483647, %v7582_v54  ;;  %v5376_v62 = vrot.slane %v8154_v32, 1  ;;  %v5415_v40 = vsel %vm136_vm0, %v5374_v25, 0.0 }
 0x75f   :  { %v5198_v10 = vpop.permute.xlu1 %5197  ;;  %v5192_v44 = vpop.permute.xlu0 %5191  ;;  %v5237_v48 = vadd.f32 %v5236_v12, %v5235_v30  ;;  %v5293_v47 = vrot.slane %v8370_v3, 7  ;;  %v5294_v38 = vrot.slane %v7597_v24, 7  ;;  %v5416_v53 = vadd.f32 %v5415_v40, %v5414_v27 }
 0x760   :  { %v5238_v39 = vsel %vm816_vm5, %v5192_v44, 0.0  ;;  %v5375_v6 = vrot.slane %v5338_v9, 1  ;;  %v5325_v22 = vsub.f32 %v8365_v20, %v5292_v60  ;;  %v5324_v54 = vsub.f32 %v8392_v14, %v5290_v36 }
 0x761   :  { %v5239_v63 = vadd.f32 %v5238_v39, %v5237_v48  ;;  %v5046_v31 = vadd.f32 %v5045_v29, %v5044_v21  ;;  %v4172_v4 = vadd.f32 %v8056_v7, %v8122_v52  ;;  %v4501_v33 = vsel %vm949_vm3, %v4499_v15, %v4500_v49 }
 0x762   :  { %v5022_v17 = vand.u32 2147483647, %v8392_v14  ;;  %v5047_v61 = vsel %vm136_vm0, %v5021_v0, 0.0  ;;  %v5377_v19 = vsel %vm949_vm3, %v5375_v6, %v5376_v62  ;;  %v5417_v5 = vsel %vm991_vm4, %v5373_v37, 0.0 }
 0x763   :  { %v5194_v58 = vpop.permute.xlu1 %5193  ;;  %v5200_v50 = vpop.permute.xlu0 %5199  ;;  %v3488_v45 = vsel %vm816_vm5, %v8040_v51, 0.0  ;;  %v5295_v52 = vsel %vm860_vm2, %v5293_v47, %v5294_v38  ;;  %v8187_v15 = vand.u32 2147483647, %v5325_v22  ;;  %v4542_v28 = vadd.f32 %v8059_v18, %v4540_v11 }
 0x764   :  { %v5240_v23 = vsel %vm816_vm5, %v5194_v58, 0.0  ;;  %v5418_v59 = vadd.f32 %v5417_v5, %v5416_v53  ;;  %v5340_v32 = vand.u32 2147483647, %v5324_v54  ;;  %v5048_v43 = vadd.f32 %v5047_v61, %v5046_v31 }
 0x765   :  { %v5241_v2 = vadd.f32 %v5240_v23, %v5239_v63  ;;  %v3490_v44 = vsel %vm816_vm5, %v8071_v13, 0.0  ;;  %v5419_v37 = vsel %vm136_vm0, %v5377_v19, 0.0  ;;  %v5326_v34 = vsub.f32 %v8370_v3, %v5293_v47 }
 0x766   :  { %v3489_v51 = vadd.f32 %v3488_v45, %v7871_v41  ;;  %v4173_v36 = vsel %vm136_vm0, %v4143_v42, 0.0  ;;  %v5327_v18 = vsub.f32 %v7597_v24, %v5295_v52  ;;  %v5049_v12 = vsel %vm136_vm0, %v5022_v17, 0.0 }
 0x767   :  { %v8180_v16 = vpop.permute.xlu1 %5205  ;;  %v5196_v26 = vpop.permute.xlu0 %5195  ;;  %v3492_v25 = vsel %vm816_vm5, %v8096_v57, 0.0  ;;  %v5244_v13 = vsel %vm816_vm5, %v5198_v10, 0.0  ;;  %v4545_v27 = vsel %vm136_vm0, %v4501_v33, 0.0  ;;  %v5379_v9 = vrot.slane %v8187_v15, 1 }
 0x768   :  { %v5242_v7 = vsel %vm816_vm5, %v5196_v26, 0.0  ;;  %v3491_v41 = vadd.f32 %v3490_v44, %v3489_v51  ;;  %v5420_v21 = vadd.f32 %v5419_v37, %v5418_v59  ;;  %v5378_v60 = vrot.slane %v5340_v32, 1 }
 0x769   :  { %v5243_v35 = vadd.f32 %v5242_v7, %v5241_v2  ;;  %v5023_v55 = vand.u32 2147483647, %v8365_v20  ;;  %v4544_v42 = vadd.f32 %v8077_v8, %v4542_v28  ;;  %v5050_v39 = vadd.f32 %v5049_v12, %v5048_v43 }
 0x76a   :  { %v5421_v11 = vsel %vm991_vm4, %v5376_v62, 0.0  ;;  %v5342_v29 = vand.u32 2147483647, %v5326_v34  ;;  %v3493_v0 = vadd.f32 %v3492_v25, %v3491_v41  ;;  %v5343_v10 = vand.u32 2147483647, %v5327_v18 }
 0x76b   :  { %v4328_v46 = vpop.permute.xlu1 %4327  ;;  %v4326_v14 = vpop.permute.xlu0 %4325  ;;  %v5245_v30 = vadd.f32 %v5244_v13, %v5243_v35  ;;  %v5246_v58 = vsel %vm816_vm5, %v5200_v50, 0.0  ;;  %v5380_v8 = vsel %vm949_vm3, %v5378_v60, %v5379_v9  ;;  %v5422_v53 = vadd.f32 %v5421_v11, %v5420_v21 }
 0x76c   :  { %v4372_v40 = vsel %vm816_vm5, %v4326_v14, 0.0  ;;  %v5024_v62 = vand.u32 2147483647, %v8370_v3  ;;  %v4174_v6 = vadd.f32 %v4173_v36, %v4172_v4  ;;  %v5381_v22 = vrot.slane %v5342_v29, 1 }
 0x76d   :  { %v5247_v23 = vadd.f32 %v5246_v58, %v5245_v30  ;;  %v4373_v63 = vadd.f32 %v4372_v40, %v7916_v1  ;;  %v5382_v33 = vrot.slane %v5343_v10, 1  ;;  %v4546_v61 = vadd.f32 %v4545_v27, %v4544_v42 }
 0x76e   :  { %v5051_v19 = vsel %vm136_vm0, %v5023_v55, 0.0  ;;  %v5423_v2 = vsel %vm136_vm0, %v5380_v8, 0.0  ;;  %v4547_v3 = vsel %vm991_vm4, %v4500_v49, 0.0  ;;  %v5252_v1 = vsel %vm816_vm5, %v8180_v16, 0.0 }
 0x76f   :  { %v5202_v57 = vpop.permute.xlu1 %5201  ;;  %v3448_v48 = vpop.permute.xlu0 %3447  ;;  %v5052_v4 = vadd.f32 %v5051_v19, %v5050_v39  ;;  %v5424_v5 = vadd.f32 %v5423_v2, %v5422_v53  ;;  %v4374_v45 = vsel %vm816_vm5, %v4328_v46, 0.0  ;;  %v5025_v7 = vand.u32 2147483647, %v7597_v24 }
 0x770   :  { %v5248_v47 = vsel %vm816_vm5, %v5202_v57, 0.0  ;;  %v3494_v38 = vsel %vm816_vm5, %v3448_v48, 0.0  ;;  %v5053_v52 = vsel %vm136_vm0, %v5024_v62, 0.0  ;;  %v4375_v28 = vadd.f32 %v4374_v45, %v4373_v63 }
 0x771   :  { %v3495_v20 = vadd.f32 %v3494_v38, %v3493_v0  ;;  %v5249_v54 = vadd.f32 %v5248_v47, %v5247_v23  ;;  %v5383_v56 = vsel %vm949_vm3, %v5381_v22, %v5382_v33  ;;  %v4548_v43 = vadd.f32 %v4547_v3, %v4546_v61 }
 0x772   :  { %v5425_v16 = vsel %vm991_vm4, %v5379_v9, 0.0  ;;  %v5054_v34 = vadd.f32 %v5053_v52, %v5052_v4  ;;  %v5055_v46 = vsel %vm136_vm0, %v5025_v7, 0.0  ;;  %v5427_v14 = vsel %vm136_vm0, %v5383_v56, 0.0 }
 0x773   :  { %v5204_v31 = vpop.permute.xlu1 %5203  ;;  %3496 = vadd.xlane.f32.xlu0 %v3495_v20  ;;  %v5208_v50 = vpop.permute.xlu0 %5207  ;;  %v5426_v24 = vadd.f32 %v5425_v16, %v5424_v5  ;;  %v5429_v9 = vsel %vm991_vm4, %v5382_v33, 0.0 }
 0x774   :  { %v5250_v17 = vsel %vm816_vm5, %v5204_v31, 0.0  ;;  %v5254_v49 = vsel %vm816_vm5, %v5208_v50, 0.0  ;;  %v5056_v13 = vadd.f32 %v5055_v46, %v5054_v34 }
 0x775   :  { %v5251_v26 = vadd.f32 %v5250_v17, %v5249_v54  ;;  %v5428_v27 = vadd.f32 %v5427_v14, %v5426_v24 }
 0x777   :  { %v5253_v15 = vadd.f32 %v5252_v1, %v5251_v26  ;;  %v4330_v35 = vpop.permute.xlu1 %4329  ;;  %4175 = vadd.xlane.f32.xlu0 %v4174_v6  ;;  %v5210_v59 = vpop.permute.xlu0 %5209  ;;  %v5430_v41 = vadd.f32 %v5429_v9, %v5428_v27 }
 0x778   :  { %v4376_v32 = vsel %vm816_vm5, %v4330_v35, 0.0  ;;  %v5256_v51 = vsel %vm816_vm5, %v5210_v59, 0.0 }
 0x779   :  { %v5255_v44 = vadd.f32 %v5254_v49, %v5253_v15  ;;  %v4377_v37 = vadd.f32 %v4376_v32, %v4375_v28 }
 0x77b   :  { %v5257_v36 = vadd.f32 %v5256_v51, %v5255_v44  ;;  %v5212_v18 = vpop.permute.xlu1 %5211  ;;  %4378 = vadd.xlane.f32.xlu1 %v4377_v37  ;;  %4549 = vadd.xlane.f32.xlu0 %v4548_v43 }
 0x77c   :  { %v5258_v12 = vsel %vm816_vm5, %v5212_v18, 0.0 }
 0x77d   :  { %v5259_v25 = vadd.f32 %v5258_v12, %v5257_v36 }
 0x77f   :  { %5260 = vadd.xlane.f32.xlu0 %v5259_v25  ;;  %5057 = vadd.xlane.f32.xlu1 %v5056_v13 }
 0x783   :  { %5431 = vadd.xlane.f32.xlu1 %v5430_v41 }
 0x7ad   :  { %v2615_v30 = vpop.xlane.xlu0 %2614 }
 0x7ae   :  { %v2616_v21 = vrot.slane %v2615_v30, 4 }
 0x7b0   :  { %v2617_v60 = vadd.f32 %v2616_v21, %v2615_v30 }
 0x7b1   :  { %v3294_v55 = vpop.xlane.xlu0 %3293 }
 0x7b2   :  { %v2618_v42 = vrot.slane %v2617_v60, 2  ;;  %v3295_v39 = vrot.slane %v3294_v55, 4 }
 0x7b4   :  { %v3296_v11 = vadd.f32 %v3295_v39, %v3294_v55  ;;  %v2619_v29 = vadd.f32 %v2618_v42, %v2617_v60 }
 0x7b6   :  { %v3297_v0 = vrot.slane %v3296_v11, 2  ;;  %v2786_v57 = vpop.xlane.xlu1 %2785  ;;  %v2620_v48 = vrot.slane %v2619_v29, 1 }
 0x7b7   :  { %v2787_v10 = vrot.slane %v2786_v57, 4 }
 0x7b8   :  { %v2621_v58 = vadd.f32 %v2620_v48, %v2619_v29  ;;  %v3298_v47 = vadd.f32 %v3297_v0, %v3296_v11 }
 0x7b9   :  { %v2788_v40 = vadd.f32 %v2787_v10, %v2786_v57 }
 0x7ba   :  { %6123 = vpush %v2621_v58  ;;  %v3299_v20 = vrot.slane %v3298_v47, 1  ;;  %v3668_v6 = vpop.xlane.xlu1 %3667 }
 0x7bb   :  { %v2789_v38 = vrot.slane %v2788_v40, 2  ;;  %v3669_v22 = vrot.slane %v3668_v6, 4 }
 0x7bc   :  { %v3300_v62 = vadd.f32 %v3299_v20, %v3298_v47 }
 0x7bd   :  { %v2790_v23 = vadd.f32 %v2789_v38, %v2788_v40  ;;  %v3670_v63 = vadd.f32 %v3669_v22, %v3668_v6 }
 0x7bf   :  { %v2791_v8 = vrot.slane %v2790_v23, 1  ;;  %v3671_v54 = vrot.slane %v3670_v63, 2 }
 0x7c1   :  { %v2792_v53 = vadd.f32 %v2791_v8, %v2790_v23  ;;  %v3672_v61 = vadd.f32 %v3671_v54, %v3670_v63 }
 0x7c3   :  { %6125 = vpush %v2792_v53  ;;  %v3673_v1 = vrot.slane %v3672_v61, 1 }
 0x7c4   :  { %6127 = vpush %v3300_v62 }
 0x7c5   :  { %v3674_v43 = vadd.f32 %v3673_v1, %v3672_v61 }
 0x7eb   :  { %s6124_s19 = spop %6123 }
 0x7ec   :  { %s2625_s27 = smul.f32 0.00052083336, %s6124_s19 }
 0x7f4   :  { %s6126_s21 = spop %6125 }
 0x7f5   :  { %s2796_s24 = smul.f32 0.00052083336, %s6126_s21  ;;  %s6128_s29 = spop %6127 }
 0x7f6   :  { %s3304_s13 = smul.f32 0.00048828125, %s6128_s29 }
 0x7f7   :  { %s2797_s30 = sadd.f32 %s2796_s24, %s2625_s27 }
 0x7f9   :  { %s2798_s2 = smul.f32 0.01, %s2797_s30 }
 0x7fb   :  { %s2799_s15 = sadd.f32 %s2798_s2, %s2422_s3 }
 0x7fc   :  { %v3497_v31 = vpop.xlane.xlu0 %3496 }
 0x7fd   :  { %v3498_v50 = vrot.slane %v3497_v31, 4  ;;  %s2800_s21 = smul.f32 0.12, %s2799_s15 }
 0x7ff   :  { %v3499_v33 = vadd.f32 %v3498_v50, %v3497_v31 }
 0x800   :  { %v4176_v17 = vpop.xlane.xlu0 %4175 }
 0x801   :  { %v3500_v19 = vrot.slane %v3499_v33, 2  ;;  %v4177_v2 = vrot.slane %v4176_v17, 4 }
 0x803   :  { %v4178_v26 = vadd.f32 %v4177_v2, %v4176_v17  ;;  %v3501_v3 = vadd.f32 %v3500_v19, %v3499_v33 }
 0x804   :  { %v4379_v4 = vpop.xlane.xlu1 %4378  ;;  %v4550_v5 = vpop.xlane.xlu0 %4549 }
 0x805   :  { %v4179_v45 = vrot.slane %v4178_v26, 2  ;;  %v4380_v7 = vrot.slane %v4379_v4, 4  ;;  %v4551_v52 = vrot.slane %v4550_v5, 4  ;;  %v3502_v15 = vrot.slane %v3501_v3, 1 }
 0x807   :  { %v4381_v35 = vadd.f32 %v4380_v7, %v4379_v4  ;;  %v4552_v28 = vadd.f32 %v4551_v52, %v4550_v5  ;;  %v3503_v59 = vadd.f32 %v3502_v15, %v3501_v3  ;;  %v4180_v56 = vadd.f32 %v4179_v45, %v4178_v26 }
 0x808   :  { %v5261_v49 = vpop.xlane.xlu0 %5260  ;;  %v5058_v32 = vpop.xlane.xlu1 %5057 }
 0x809   :  { %v4382_v16 = vrot.slane %v4381_v35, 2  ;;  %v4553_v44 = vrot.slane %v4552_v28, 2  ;;  %v5262_v37 = vrot.slane %v5261_v49, 4  ;;  %v5059_v34 = vrot.slane %v5058_v32, 4  ;;  %6129 = vpush %v3503_v59 }
 0x80a   :  { %6131 = vpush %v3674_v43  ;;  %v4181_v24 = vrot.slane %v4180_v56, 1 }
 0x80b   :  { %v5263_v51 = vadd.f32 %v5262_v37, %v5261_v49  ;;  %v5060_v46 = vadd.f32 %v5059_v34, %v5058_v32  ;;  %v4383_v14 = vadd.f32 %v4382_v16, %v4381_v35  ;;  %v4554_v36 = vadd.f32 %v4553_v44, %v4552_v28 }
 0x80c   :  { %v5432_v18 = vpop.xlane.xlu1 %5431  ;;  %v4182_v12 = vadd.f32 %v4181_v24, %v4180_v56 }
 0x80d   :  { %v5264_v25 = vrot.slane %v5263_v51, 2  ;;  %v5061_v13 = vrot.slane %v5060_v46, 2  ;;  %v5433_v27 = vrot.slane %v5432_v18, 4  ;;  %v4384_v9 = vrot.slane %v4383_v14, 1 }
 0x80e   :  { %6133 = vpush %v4182_v12  ;;  %v4555_v41 = vrot.slane %v4554_v36, 1 }
 0x80f   :  { %v5265_v30 = vadd.f32 %v5264_v25, %v5263_v51  ;;  %v5434_v21 = vadd.f32 %v5433_v27, %v5432_v18  ;;  %v4385_v60 = vadd.f32 %v4384_v9, %v4383_v14  ;;  %v5062_v55 = vadd.f32 %v5061_v13, %v5060_v46 }
 0x810   :  { %v4556_v42 = vadd.f32 %v4555_v41, %v4554_v36 }
 0x811   :  { %v5435_v39 = vrot.slane %v5434_v21, 2  ;;  %6135 = vpush %v4385_v60  ;;  %v5063_v11 = vrot.slane %v5062_v55, 1  ;;  %v5266_v29 = vrot.slane %v5265_v30, 1 }
 0x812   :  { %6137 = vpush %v4556_v42 }
 0x813   :  { %v5436_v0 = vadd.f32 %v5435_v39, %v5434_v21  ;;  %v5064_v57 = vadd.f32 %v5063_v11, %v5062_v55  ;;  %v5267_v48 = vadd.f32 %v5266_v29, %v5265_v30 }
 0x815   :  { %6139 = vpush %v5064_v57  ;;  %v5437_v10 = vrot.slane %v5436_v0, 1 }
 0x816   :  { %6141 = vpush %v5267_v48 }
 0x817   :  { %v5438_v58 = vadd.f32 %v5437_v10, %v5436_v0 }
 0x819   :  { %6143 = vpush %v5438_v58 }
 0x83a   :  { %s6130_s1 = spop %6129 }
 0x83b   :  { %s3507_s5 = smul.f32 0.00052083336, %s6130_s1  ;;  %s6132_s6 = spop %6131 }
 0x83c   :  { %s3678_s7 = smul.f32 0.00052083336, %s6132_s6  ;;  %s1919_s6 = sadd.f32 %s1918_s10, %s1036_s26 }
 0x83e   :  { %s3679_s11 = sadd.f32 %s3678_s7, %s3507_s5 }
 0x83f   :  { %s6134_s14 = spop %6133  ;;  %s2801_s3 = sadd.f32 %s2800_s21, %s1919_s6 }
 0x840   :  { %s3680_s12 = smul.f32 0.01, %s3679_s11 }
 0x841   :  { %s4186_s24 = smul.f32 0.00048828125, %s6134_s14  ;;  %s6274_s14 = smov [#allocation10]  }
 0x842   :  { %s6136_s16 = spop %6135  ;;  %s3681_s25 = sadd.f32 %s3680_s12, %s3304_s13 }
 0x843   :  { %s4389_s18 = smul.f32 0.00052083336, %s6136_s16  ;;  %s6138_s19 = spop %6137 }
 0x844   :  { %s4560_s20 = smul.f32 0.00052083336, %s6138_s19 }
 0x845   :  { %s3682_s0 = smul.f32 0.12, %s3681_s25 }
 0x846   :  { %s6140_s22 = spop %6139  ;;  %s4561_s27 = sadd.f32 %s4560_s20, %s4389_s18 }
 0x847   :  { %s6142_s28 = spop %6141  ;;  %s5068_s7 = smul.f32 0.00048828125, %s6140_s22 }
 0x848   :  { %s4562_s17 = smul.f32 0.01, %s4561_s27  ;;  %s3683_s15 = sadd.f32 %s3682_s0, %s2801_s3 }
 0x849   :  { %s5271_s30 = smul.f32 0.00052083336, %s6142_s28  ;;  %s5456_s18 = sshll.u32 %s6274_s14, 4  ;;  %s5457_s18 = int_to_ptr.vmem [resolvable:$true] %s5456_s18 }
 0x84a   :  { %s6144_s1 = spop %6143  ;;  %s4563_s5 = sadd.f32 %s4562_s17, %s4186_s24 }
 0x84b   :  { %s5442_s29 = smul.f32 0.00052083336, %s6144_s1  ;;  %s6236_s23 = scalar_lea.vmem %s5457_s18, 128 }
 0x84c   :  { %s4564_s11 = smul.f32 0.12, %s4563_s5  ;;  %p6237_p6 = scmp.ne.s32.totalorder %s5457_s18, %s6236_s23 }
 0x84d   :  { %s5443_s2 = sadd.f32 %s5442_s29, %s5271_s30  ;;  %p6241_p7 = scmp.lt.s32.totalorder %s5457_s18, %s5457_s18 }
 0x84e   :  { %s4565_s12 = sadd.f32 %s4564_s11, %s3683_s15  ;;  %p6242_p8 = scmp.lt.s32.totalorder %s6236_s23, %s6236_s23 }
 0x84f   :  { %s5444_s16 = smul.f32 0.01, %s5443_s2 }
 0x850   :  { %p6243_p9 = por %p6242_p8, %p6241_p7 }
 0x851   :  { %s5445_s19 = sadd.f32 %s5444_s16, %s5068_s7 }
 0x852   :  { %p6244_p10 = pnand %p6243_p9, %p6237_p6 }
 0x853   :  { %s5446_s13 = smul.f32 0.12, %s5445_s19 }
 0x855   :  { %s5447_s9 = sadd.f32 %s5446_s13, %s4565_s12 }
 0x857   :  { %v5448_v40 = vstv %s5447_s9 }
 0x858   :  { %5449 = vst [vmem:[#allocation10] sm:$0xff] %v5448_v40 }
 0x859   :  { %6247 = shalt.err (!%p6244_p10)
}
 0x85a   :  { %5459 = dma.vmem_to_hbm [thread:$0]  %s5457_s18, 128, %s8250_s4, [#allocation4]  }
 0x85b   :  { %6262 = dma.done.wait [#allocation4], 128  }
 0x85c   :  { %6263 = vsyncadd [#allocation4], 4294967168 }
 0x85d   :  { %5463 = vsyncpa [#allocation3], 1 }
 0x85e   :  { %5464 = vsyncpa [#allocation6], 1 }
 0x85f   :  { %5465 = vsyncpa [#allocation9], 1 }
 0x860   :  { %5466 = vsyncpa [#allocation4], 1 }

</bundles_post_ra>
